<compile_context>
chip_gen: v7x
topology: tpu7x:2x2x1
jax: 0.10.0
libtpu: 0.0.40
codegen_flags: <defaults>
</compile_context>

<pallas_src>
import jax
import jax.numpy as jnp
from jax import lax
from jax.experimental import pallas as pl
from jax.experimental.pallas import tpu as pltpu

# ---------------- config ----------------
N, H, W = 2, 16, 16
IN_CH = 8
CH = 8
DILATIONS = (1, 6, 12)            # first entry -> 1x1 conv (ASPPModule convention)
PAD = max(DILATIONS[1:])          # max spatial padding needed for dilated 3x3 convs
NUM_BRANCH = len(DILATIONS) + 1   # + image pool branch
CAT_CH = NUM_BRANCH * CH          # 32
HP, WP = H + 2 * PAD, W + 2 * PAD # 40, 40

# distinct input row offsets used by {1x1, 3x3 d=6, 3x3 d=12} branches
ROW_OFFSETS = tuple(sorted({PAD} | {PAD + (ky - 1) * d
                                    for d in DILATIONS[1:] for ky in range(3)}))


# ---------------- Pallas kernel ----------------
def aspp_kernel(xp_ref, wl_ref, mpool_ref, wbl_ref, bias_ref, bb_ref, out_ref):
    xp = xp_ref[0]                                          # (HP, WP*IN_CH) = (40, 320)

    # ---- image-pool branch, folded: mean, 1x1 conv and the 1x1->HxW bilinear
    # resize (constant broadcast) are all baked into mpool (wrapper side).
    colsum = jnp.sum(xp, axis=0, keepdims=True)             # (1, 320)  (padding rows are 0)
    pool_row = jnp.dot(colsum, mpool_ref[...],
                       preferred_element_type=jnp.float32)  # (1, W*CAT_CH)

    # ---- all four branches accumulate into ONE lane-dense (H, W*CAT_CH) slab.
    # Each lowered weight places its branch into its own CAT_CH column slice,
    # so no concat is needed.  Biases (per-branch, tiled over w) added once.
    acc = jnp.broadcast_to(pool_row + bias_ref[...], (H, W * CAT_CH))
    for i, r in enumerate(ROW_OFFSETS):
        acc = acc + jnp.dot(xp[r:r + H, :], wl_ref[i],
                            preferred_element_type=jnp.float32)
    cat = jnp.maximum(acc, 0.0)                             # ReLU'd concat, (16, 512)

    # ---- bottleneck 3x3 (pad=1) + ReLU.
    # Width taps / width zero-padding are baked into the lowered weights
    # wbl[ky] (512, 128).  The +/-1 row taps are realized with tiny shift
    # matmuls (zero-fill at the borders comes for free from the shift matrix),
    # keeping everything on the MXU with no unaligned scratch traffic.
    ri = lax.broadcasted_iota(jnp.int32, (H, H), 0)
    ci = lax.broadcasted_iota(jnp.int32, (H, H), 1)
    shift_dn = (ri == ci + 1).astype(jnp.float32)           # row h <- row h-1 (row 0 -> 0)
    shift_up = (ri + 1 == ci).astype(jnp.float32)           # row h <- row h+1 (row H-1 -> 0)

    y0 = jnp.dot(cat, wbl_ref[0], preferred_element_type=jnp.float32)  # needs row h-1
    y1 = jnp.dot(cat, wbl_ref[1], preferred_element_type=jnp.float32)  # center row
    y2 = jnp.dot(cat, wbl_ref[2], preferred_element_type=jnp.float32)  # needs row h+1
    out = (jnp.dot(shift_dn, y0, preferred_element_type=jnp.float32)
           + y1
           + jnp.dot(shift_up, y2, preferred_element_type=jnp.float32))
    out = jnp.maximum(out + bb_ref[...], 0.0)               # (16, 128), lane-dense

    out_ref[0] = out


# ---------------- wrapper-side weight lowering (done once, plain JAX) --------
def lower_params(params):
    """Lower the ASPP parameters into lane-dense banded matrices.

    Returns:
      wl:       (len(ROW_OFFSETS), WP*IN_CH, W*CAT_CH) branch conv weights
      m_pool:   (WP*IN_CH, W*CAT_CH) pooled-branch matrix (mean+1x1 conv+spread)
      wbl:      (3, W*CAT_CH, W*CH) bottleneck weights (one per ky)
      bias_row: (1, W*CAT_CH) per-position branch biases
      bb_row:   (1, W*CH) per-position bottleneck bias
    """
    w_pool, b_pool, w0, b0, w1, b1, w2, b2, wb, bb = params
    row_idx = {r: i for i, r in enumerate(ROW_OFFSETS)}

    def tap_matrix(wmat, kx_off, ch_off):
        # place wmat (IN_CH, CH) so that, for every output width w,
        # input lanes (w + kx_off)*IN_CH + ci feed output lanes w*CAT_CH + ch_off + co
        sel = jnp.zeros((WP, W), jnp.float32)
        sel = sel.at[jnp.arange(W) + kx_off, jnp.arange(W)].set(1.0)
        wfull = jnp.zeros((IN_CH, CAT_CH), jnp.float32)
        wfull = wfull.at[:, ch_off:ch_off + CH].set(wmat)
        m = jnp.einsum('pw,ic->piwc', sel, wfull)
        return m.reshape(WP * IN_CH, W * CAT_CH)

    wl = jnp.zeros((len(ROW_OFFSETS), WP * IN_CH, W * CAT_CH), jnp.float32)
    # dilation entry 1 -> 1x1 conv, channel slot 1 (slot 0 is the pool branch)
    wl = wl.at[row_idx[PAD]].add(tap_matrix(w0, PAD, 1 * CH))
    # 3x3 dilated convs, channel slots 2 and 3
    for slot, (wk, d) in enumerate(((w1, DILATIONS[1]), (w2, DILATIONS[2])), start=2):
        for ky in range(3):
            for kx in range(3):
                wl = wl.at[row_idx[PAD + (ky - 1) * d]].add(
                    tap_matrix(wk[ky, kx], PAD + (kx - 1) * d, slot * CH))

    # pooled branch: colsum(1, WP*IN_CH) @ m_pool = tile_w(mean @ w_pool) in slot 0
    r = jnp.zeros((WP * IN_CH, IN_CH), jnp.float32)
    r = r.at[jnp.arange(WP * IN_CH),
             jnp.tile(jnp.arange(IN_CH), WP)].set(1.0 / float(H * W))
    spread = jnp.zeros((CH, W * CAT_CH), jnp.float32)
    spread = spread.at[jnp.tile(jnp.arange(CH), W),
                       jnp.repeat(jnp.arange(W), CH) * CAT_CH
                       + jnp.tile(jnp.arange(CH), W)].set(1.0)
    m_pool = r @ w_pool @ spread                               # (320, 512)

    # per-position branch biases: tile of [b_pool, b0, b1, b2] over w
    bias_row = jnp.tile(jnp.concatenate([b_pool, b0, b1, b2], axis=-1), (1, W))

    # bottleneck 3x3 lowered per ky; width padding baked in (out-of-range w dropped)
    wbl = jnp.zeros((3, W * CAT_CH, W * CH), jnp.float32)
    for ky in range(3):
        for kx in range(3):
            wlo, whi = max(0, 1 - kx), min(W, W + 1 - kx)
            ws = jnp.arange(wlo, whi)
            sel = jnp.zeros((W, W), jnp.float32).at[ws + kx - 1, ws].set(1.0)
            m = jnp.einsum('pw,ic->piwc', sel, wb[ky, kx]).reshape(W * CAT_CH, W * CH)
            wbl = wbl.at[ky].add(m)
    bb_row = jnp.tile(bb, (1, W))                              # (1, 128)

    return wl, m_pool, wbl, bias_row, bb_row


# ---------------- pallas_call wrapper ----------------
def aspp_forward(x_nchw, lowered):
    """x_nchw: (N, IN_CH, H, W) float32 -> (N, CH, H, W) float32."""
    wl, m_pool, wbl, bias_row, bb_row = lowered

    x = jnp.transpose(x_nchw, (0, 2, 3, 1))                    # NCHW -> NHWC
    xp = jnp.pad(x, ((0, 0), (PAD, PAD), (PAD, PAD), (0, 0)))  # zero pad (glue)
    xp2d = xp.reshape(N, HP, WP * IN_CH)                       # fold W,C onto lanes

    out2d = pl.pallas_call(
        aspp_kernel,
        out_shape=jax.ShapeDtypeStruct((N, H, W * CH), jnp.float32),  # lane-dense: 128 lanes
        grid_spec=pltpu.PrefetchScalarGridSpec(
            num_scalar_prefetch=0,
            grid=(N,),
            in_specs=[
                pl.BlockSpec((1, HP, WP * IN_CH), lambda b: (b, 0, 0)),
                pl.BlockSpec(wl.shape, lambda b: (0, 0, 0)),
                pl.BlockSpec(m_pool.shape, lambda b: (0, 0)),
                pl.BlockSpec(wbl.shape, lambda b: (0, 0, 0)),
                pl.BlockSpec(bias_row.shape, lambda b: (0, 0)),
                pl.BlockSpec(bb_row.shape, lambda b: (0, 0)),
            ],
            out_specs=pl.BlockSpec((1, H, W * CH), lambda b: (b, 0, 0)),
        ),
        compiler_params=pltpu.CompilerParams(
            dimension_semantics=("parallel",),         # v7x megacore: 1 image per TC
            vmem_limit_bytes=32 * 1024 * 1024),
    )(xp2d, wl, m_pool, wbl, bias_row, bb_row)

    out = out2d.reshape(N, H, W, CH)                           # undo lane folding (glue)
    return jnp.transpose(out, (0, 3, 1, 2))                    # back to NCHW


# ---------------- pure-JAX reference (for correctness check) ----------------
def aspp_reference(x_nchw, params):
    w_pool, b_pool, w0, b0, w1, b1, w2, b2, wb, bb = params
    x = jnp.transpose(x_nchw, (0, 2, 3, 1))
    hi = lax.Precision.HIGHEST

    mean = jnp.mean(x, axis=(1, 2), keepdims=True)
    pooled = jnp.maximum(
        jnp.einsum('nhwc,co->nhwo', mean, w_pool, precision=hi)
        + b_pool.reshape(1, 1, 1, CH), 0.0)
    pool_out = jnp.broadcast_to(pooled, (N, H, W, CH))

    def conv(xx, w, b, d, p, k):
        if k == 1:
            y = jnp.einsum('nhwc,co->nhwo', xx, w, precision=hi)
        else:
            y = lax.conv_general_dilated(
                xx, w, (1, 1), [(p, p), (p, p)], rhs_dilation=(d, d),
                dimension_numbers=('NHWC', 'HWIO', 'NHWC'), precision=hi)
        return jnp.maximum(y + b.reshape(1, 1, 1, -1), 0.0)

    y0 = conv(x, w0, b0, 1, 0, 1)
    y1 = conv(x, w1, b1, DILATIONS[1], DILATIONS[1], 3)
    y2 = conv(x, w2, b2, DILATIONS[2], DILATIONS[2], 3)
    cat = jnp.concatenate([pool_out, y0, y1, y2], axis=-1)
    out = conv(cat, wb, bb, 1, 1, 3)
    return jnp.transpose(out, (0, 3, 1, 2))


# ---------------- parameter init (deterministic, synthetic) ----------------
def init_params(key):
    ks = jax.random.split(key, 10)
    scale = 0.1
    w_pool = scale * jax.random.normal(ks[0], (IN_CH, CH), jnp.float32)
    b_pool = scale * jax.random.normal(ks[1], (1, CH), jnp.float32)
    w0 = scale * jax.random.normal(ks[2], (IN_CH, CH), jnp.float32)
    b0 = scale * jax.random.normal(ks[3], (1, CH), jnp.float32)
    w1 = scale * jax.random.normal(ks[4], (3, 3, IN_CH, CH), jnp.float32)
    b1 = scale * jax.random.normal(ks[5], (1, CH), jnp.float32)
    w2 = scale * jax.random.normal(ks[6], (3, 3, IN_CH, CH), jnp.float32)
    b2 = scale * jax.random.normal(ks[7], (1, CH), jnp.float32)
    wb = scale * jax.random.normal(ks[8], (3, 3, CAT_CH, CH), jnp.float32)
    bb = scale * jax.random.normal(ks[9], (1, CH), jnp.float32)
    return (w_pool, b_pool, w0, b0, w1, b1, w2, b2, wb, bb)


if __name__ == "__main__":
    key = jax.random.PRNGKey(0)
    kx, kp = jax.random.split(key)
    x = jax.random.normal(kx, (N, IN_CH, H, W), jnp.float32)   # PyTorch-style NCHW input
    params = init_params(kp)
    lowered = lower_params(params)                             # one-time weight lowering

    out = jax.block_until_ready(aspp_forward(x, lowered))
    ref = jax.block_until_ready(aspp_reference(x, params))

    assert out.shape == (N, CH, H, W), out.shape
    assert jnp.allclose(out, ref, atol=5e-4, rtol=5e-4), float(jnp.max(jnp.abs(out - ref)))
    print("KERNEL_OK")
</pallas_src>

<mosaic_0001>
module attributes {stable_mosaic.version = 11 : i64} {
  func.func @aspp_kernel(%arg0: i32, %arg1: memref<1x40x320xf32, #tpu.memory_space<vmem>>, %arg2: memref<5x320x512xf32, #tpu.memory_space<vmem>>, %arg3: memref<320x512xf32, #tpu.memory_space<vmem>>, %arg4: memref<3x512x128xf32, #tpu.memory_space<vmem>>, %arg5: memref<1x512xf32, #tpu.memory_space<vmem>>, %arg6: memref<1x128xf32, #tpu.memory_space<vmem>>, %arg7: memref<1x16x128xf32, #tpu.memory_space<vmem>>) attributes {dimension_semantics = [#tpu.dimension_semantics<parallel>], iteration_bounds = array<i64: 2>, scalar_prefetch = 0 : i64, scratch_operands = 0 : i64, tpu.core_type = #tpu.core_type<tc>, window_params = [{transform_indices = @transform_0, window_bounds = array<i64: 1, 40, 320>}, {pipeline_mode = #tpu.pipeline_mode<synchronous>, transform_indices = @transform_1, window_bounds = array<i64: 5, 320, 512>}, {pipeline_mode = #tpu.pipeline_mode<synchronous>, transform_indices = @transform_2, window_bounds = array<i64: 320, 512>}, {pipeline_mode = #tpu.pipeline_mode<synchronous>, transform_indices = @transform_3, window_bounds = array<i64: 3, 512, 128>}, {pipeline_mode = #tpu.pipeline_mode<synchronous>, transform_indices = @transform_4, window_bounds = array<i64: 1, 512>}, {pipeline_mode = #tpu.pipeline_mode<synchronous>, transform_indices = @transform_5, window_bounds = array<i64: 1, 128>}, {transform_indices = @transform_6, window_bounds = array<i64: 1, 16, 128>}]} {
    %c0 = arith.constant 0 : index
    %c0_0 = arith.constant 0 : index
    %c0_1 = arith.constant 0 : index
    %0 = vector.load %arg1[%c0, %c0_0, %c0_1] : memref<1x40x320xf32, #tpu.memory_space<vmem>>, vector<1x40x320xf32>
    %1 = vector.shape_cast %0 : vector<1x40x320xf32> to vector<40x320xf32>
    %cst = arith.constant dense<0.000000e+00> : vector<320xf32>
    %2 = vector.multi_reduction <add>, %1, %cst [0] : vector<40x320xf32> to vector<320xf32>
    %3 = vector.shape_cast %2 : vector<320xf32> to vector<1x320xf32>
    %c0_2 = arith.constant 0 : index
    %c0_3 = arith.constant 0 : index
    %4 = vector.load %arg3[%c0_2, %c0_3] : memref<320x512xf32, #tpu.memory_space<vmem>>, vector<320x512xf32>
    %cst_4 = arith.constant dense<0.000000e+00> : vector<1x512xf32>
    %5 = tpu.matmul %3, %4, %cst_4 {dimension_numbers = #tpu.dot_dimension_numbers<[1], [0], [0], [1], [0, 0, 1, 1], [], []>} : vector<1x320xf32>, vector<320x512xf32>, vector<1x512xf32> -> vector<1x512xf32>
    %c0_5 = arith.constant 0 : index
    %c0_6 = arith.constant 0 : index
    %6 = vector.load %arg5[%c0_5, %c0_6] : memref<1x512xf32, #tpu.memory_space<vmem>>, vector<1x512xf32>
    %7 = arith.addf %5, %6 : vector<1x512xf32>
    %8 = vector.shape_cast %7 : vector<1x512xf32> to vector<1x512xf32>
    %9 = vector.broadcast %8 : vector<1x512xf32> to vector<16x512xf32>
    %10 = vector.extract_strided_slice %1 {offsets = [0, 0], sizes = [16, 320], strides = [1, 1]} : vector<40x320xf32> to vector<16x320xf32>
    %c0_7 = arith.constant 0 : index
    %c0_8 = arith.constant 0 : index
    %c0_9 = arith.constant 0 : index
    %11 = vector.load %arg2[%c0_7, %c0_8, %c0_9] : memref<5x320x512xf32, #tpu.memory_space<vmem>>, vector<1x320x512xf32>
    %12 = vector.shape_cast %11 : vector<1x320x512xf32> to vector<320x512xf32>
    %cst_10 = arith.constant dense<0.000000e+00> : vector<16x512xf32>
    %13 = tpu.matmul %10, %12, %cst_10 {dimension_numbers = #tpu.dot_dimension_numbers<[1], [0], [0], [1], [0, 0, 1, 1], [], []>} : vector<16x320xf32>, vector<320x512xf32>, vector<16x512xf32> -> vector<16x512xf32>
    %14 = arith.addf %9, %13 : vector<16x512xf32>
    %15 = vector.extract_strided_slice %1 {offsets = [6, 0], sizes = [16, 320], strides = [1, 1]} : vector<40x320xf32> to vector<16x320xf32>
    %c1 = arith.constant 1 : index
    %c0_11 = arith.constant 0 : index
    %c0_12 = arith.constant 0 : index
    %16 = vector.load %arg2[%c1, %c0_11, %c0_12] : memref<5x320x512xf32, #tpu.memory_space<vmem>>, vector<1x320x512xf32>
    %17 = vector.shape_cast %16 : vector<1x320x512xf32> to vector<320x512xf32>
    %cst_13 = arith.constant dense<0.000000e+00> : vector<16x512xf32>
    %18 = tpu.matmul %15, %17, %cst_13 {dimension_numbers = #tpu.dot_dimension_numbers<[1], [0], [0], [1], [0, 0, 1, 1], [], []>} : vector<16x320xf32>, vector<320x512xf32>, vector<16x512xf32> -> vector<16x512xf32>
    %19 = arith.addf %14, %18 : vector<16x512xf32>
    %20 = vector.extract_strided_slice %1 {offsets = [12, 0], sizes = [16, 320], strides = [1, 1]} : vector<40x320xf32> to vector<16x320xf32>
    %c2 = arith.constant 2 : index
    %c0_14 = arith.constant 0 : index
    %c0_15 = arith.constant 0 : index
    %21 = vector.load %arg2[%c2, %c0_14, %c0_15] : memref<5x320x512xf32, #tpu.memory_space<vmem>>, vector<1x320x512xf32>
    %22 = vector.shape_cast %21 : vector<1x320x512xf32> to vector<320x512xf32>
    %cst_16 = arith.constant dense<0.000000e+00> : vector<16x512xf32>
    %23 = tpu.matmul %20, %22, %cst_16 {dimension_numbers = #tpu.dot_dimension_numbers<[1], [0], [0], [1], [0, 0, 1, 1], [], []>} : vector<16x320xf32>, vector<320x512xf32>, vector<16x512xf32> -> vector<16x512xf32>
    %24 = arith.addf %19, %23 : vector<16x512xf32>
    %25 = vector.extract_strided_slice %1 {offsets = [18, 0], sizes = [16, 320], strides = [1, 1]} : vector<40x320xf32> to vector<16x320xf32>
    %c3 = arith.constant 3 : index
    %c0_17 = arith.constant 0 : index
    %c0_18 = arith.constant 0 : index
    %26 = vector.load %arg2[%c3, %c0_17, %c0_18] : memref<5x320x512xf32, #tpu.memory_space<vmem>>, vector<1x320x512xf32>
    %27 = vector.shape_cast %26 : vector<1x320x512xf32> to vector<320x512xf32>
    %cst_19 = arith.constant dense<0.000000e+00> : vector<16x512xf32>
    %28 = tpu.matmul %25, %27, %cst_19 {dimension_numbers = #tpu.dot_dimension_numbers<[1], [0], [0], [1], [0, 0, 1, 1], [], []>} : vector<16x320xf32>, vector<320x512xf32>, vector<16x512xf32> -> vector<16x512xf32>
    %29 = arith.addf %24, %28 : vector<16x512xf32>
    %30 = vector.extract_strided_slice %1 {offsets = [24, 0], sizes = [16, 320], strides = [1, 1]} : vector<40x320xf32> to vector<16x320xf32>
    %c4 = arith.constant 4 : index
    %c0_20 = arith.constant 0 : index
    %c0_21 = arith.constant 0 : index
    %31 = vector.load %arg2[%c4, %c0_20, %c0_21] : memref<5x320x512xf32, #tpu.memory_space<vmem>>, vector<1x320x512xf32>
    %32 = vector.shape_cast %31 : vector<1x320x512xf32> to vector<320x512xf32>
    %cst_22 = arith.constant dense<0.000000e+00> : vector<16x512xf32>
    %33 = tpu.matmul %30, %32, %cst_22 {dimension_numbers = #tpu.dot_dimension_numbers<[1], [0], [0], [1], [0, 0, 1, 1], [], []>} : vector<16x320xf32>, vector<320x512xf32>, vector<16x512xf32> -> vector<16x512xf32>
    %34 = arith.addf %29, %33 : vector<16x512xf32>
    %cst_23 = arith.constant 0.000000e+00 : f32
    %35 = vector.broadcast %cst_23 : f32 to vector<16x512xf32>
    %36 = arith.maximumf %34, %35 : vector<16x512xf32>
    %37 = tpu.iota {dimensions = array<i32: 0>} : vector<16x16xi32>
    %38 = tpu.iota {dimensions = array<i32: 1>} : vector<16x16xi32>
    %c1_i32 = arith.constant 1 : i32
    %39 = vector.broadcast %c1_i32 : i32 to vector<16x16xi32>
    %40 = arith.addi %38, %39 : vector<16x16xi32>
    %41 = arith.cmpi eq, %37, %40 : vector<16x16xi32>
    %42 = arith.extui %41 : vector<16x16xi1> to vector<16x16xi32>
    %43 = arith.sitofp %42 : vector<16x16xi32> to vector<16x16xf32>
    %c1_i32_24 = arith.constant 1 : i32
    %44 = vector.broadcast %c1_i32_24 : i32 to vector<16x16xi32>
    %45 = arith.addi %37, %44 : vector<16x16xi32>
    %46 = arith.cmpi eq, %45, %38 : vector<16x16xi32>
    %47 = arith.extui %46 : vector<16x16xi1> to vector<16x16xi32>
    %48 = arith.sitofp %47 : vector<16x16xi32> to vector<16x16xf32>
    %c0_25 = arith.constant 0 : index
    %c0_26 = arith.constant 0 : index
    %c0_27 = arith.constant 0 : index
    %49 = vector.load %arg4[%c0_25, %c0_26, %c0_27] : memref<3x512x128xf32, #tpu.memory_space<vmem>>, vector<1x512x128xf32>
    %50 = vector.shape_cast %49 : vector<1x512x128xf32> to vector<512x128xf32>
    %cst_28 = arith.constant dense<0.000000e+00> : vector<16x128xf32>
    %51 = tpu.matmul %36, %50, %cst_28 {dimension_numbers = #tpu.dot_dimension_numbers<[1], [0], [0], [1], [0, 0, 1, 1], [], []>} : vector<16x512xf32>, vector<512x128xf32>, vector<16x128xf32> -> vector<16x128xf32>
    %c1_29 = arith.constant 1 : index
    %c0_30 = arith.constant 0 : index
    %c0_31 = arith.constant 0 : index
    %52 = vector.load %arg4[%c1_29, %c0_30, %c0_31] : memref<3x512x128xf32, #tpu.memory_space<vmem>>, vector<1x512x128xf32>
    %53 = vector.shape_cast %52 : vector<1x512x128xf32> to vector<512x128xf32>
    %cst_32 = arith.constant dense<0.000000e+00> : vector<16x128xf32>
    %54 = tpu.matmul %36, %53, %cst_32 {dimension_numbers = #tpu.dot_dimension_numbers<[1], [0], [0], [1], [0, 0, 1, 1], [], []>} : vector<16x512xf32>, vector<512x128xf32>, vector<16x128xf32> -> vector<16x128xf32>
    %c2_33 = arith.constant 2 : index
    %c0_34 = arith.constant 0 : index
    %c0_35 = arith.constant 0 : index
    %55 = vector.load %arg4[%c2_33, %c0_34, %c0_35] : memref<3x512x128xf32, #tpu.memory_space<vmem>>, vector<1x512x128xf32>
    %56 = vector.shape_cast %55 : vector<1x512x128xf32> to vector<512x128xf32>
    %cst_36 = arith.constant dense<0.000000e+00> : vector<16x128xf32>
    %57 = tpu.matmul %36, %56, %cst_36 {dimension_numbers = #tpu.dot_dimension_numbers<[1], [0], [0], [1], [0, 0, 1, 1], [], []>} : vector<16x512xf32>, vector<512x128xf32>, vector<16x128xf32> -> vector<16x128xf32>
    %cst_37 = arith.constant dense<0.000000e+00> : vector<16x128xf32>
    %58 = tpu.matmul %43, %51, %cst_37 {dimension_numbers = #tpu.dot_dimension_numbers<[1], [0], [0], [1], [0, 0, 1, 1], [], []>} : vector<16x16xf32>, vector<16x128xf32>, vector<16x128xf32> -> vector<16x128xf32>
    %59 = arith.addf %58, %54 : vector<16x128xf32>
    %cst_38 = arith.constant dense<0.000000e+00> : vector<16x128xf32>
    %60 = tpu.matmul %48, %57, %cst_38 {dimension_numbers = #tpu.dot_dimension_numbers<[1], [0], [0], [1], [0, 0, 1, 1], [], []>} : vector<16x16xf32>, vector<16x128xf32>, vector<16x128xf32> -> vector<16x128xf32>
    %61 = arith.addf %59, %60 : vector<16x128xf32>
    %c0_39 = arith.constant 0 : index
    %c0_40 = arith.constant 0 : index
    %62 = vector.load %arg6[%c0_39, %c0_40] : memref<1x128xf32, #tpu.memory_space<vmem>>, vector<1x128xf32>
    %63 = vector.broadcast %62 : vector<1x128xf32> to vector<16x128xf32>
    %64 = arith.addf %61, %63 : vector<16x128xf32>
    %cst_41 = arith.constant 0.000000e+00 : f32
    %65 = vector.broadcast %cst_41 : f32 to vector<16x128xf32>
    %66 = arith.maximumf %64, %65 : vector<16x128xf32>
    %c0_42 = arith.constant 0 : index
    %c0_43 = arith.constant 0 : index
    %c0_44 = arith.constant 0 : index
    %67 = vector.load %arg7[%c0_42, %c0_43, %c0_44] : memref<1x16x128xf32, #tpu.memory_space<vmem>>, vector<1x16x128xf32>
    %68 = vector.shape_cast %67 : vector<1x16x128xf32> to vector<16x128xf32>
    %69 = vector.shape_cast %66 : vector<16x128xf32> to vector<1x16x128xf32>
    tpu.vector_store %arg7[%c0_42, %c0_43, %c0_44], %69 {strides = array<i32>} : memref<1x16x128xf32, #tpu.memory_space<vmem>>, vector<1x16x128xf32>,
    return
  }
  func.func @transform_0(%arg0: i32) -> (i32, i32, i32) {
    %c0_i32 = arith.constant 0 : i32
    %c0_i32_0 = arith.constant 0 : i32
    %c0_i32_1 = arith.constant 0 : i32
    return %arg0, %c0_i32, %c0_i32_0 : i32, i32, i32
  }
  func.func @transform_1(%arg0: i32) -> (i32, i32, i32) {
    %c0_i32 = arith.constant 0 : i32
    %c0_i32_0 = arith.constant 0 : i32
    %c0_i32_1 = arith.constant 0 : i32
    %c0_i32_2 = arith.constant 0 : i32
    return %c0_i32, %c0_i32_0, %c0_i32_1 : i32, i32, i32
  }
  func.func @transform_2(%arg0: i32) -> (i32, i32) {
    %c0_i32 = arith.constant 0 : i32
    %c0_i32_0 = arith.constant 0 : i32
    %c0_i32_1 = arith.constant 0 : i32
    return %c0_i32, %c0_i32_0 : i32, i32
  }
  func.func @transform_3(%arg0: i32) -> (i32, i32, i32) {
    %c0_i32 = arith.constant 0 : i32
    %c0_i32_0 = arith.constant 0 : i32
    %c0_i32_1 = arith.constant 0 : i32
    %c0_i32_2 = arith.constant 0 : i32
    return %c0_i32, %c0_i32_0, %c0_i32_1 : i32, i32, i32
  }
  func.func @transform_4(%arg0: i32) -> (i32, i32) {
    %c0_i32 = arith.constant 0 : i32
    %c0_i32_0 = arith.constant 0 : i32
    %c0_i32_1 = arith.constant 0 : i32
    return %c0_i32, %c0_i32_0 : i32, i32
  }
  func.func @transform_5(%arg0: i32) -> (i32, i32) {
    %c0_i32 = arith.constant 0 : i32
    %c0_i32_0 = arith.constant 0 : i32
    %c0_i32_1 = arith.constant 0 : i32
    return %c0_i32, %c0_i32_0 : i32, i32
  }
  func.func @transform_6(%arg0: i32) -> (i32, i32, i32) {
    %c0_i32 = arith.constant 0 : i32
    %c0_i32_0 = arith.constant 0 : i32
    %c0_i32_1 = arith.constant 0 : i32
    return %arg0, %c0_i32, %c0_i32_0 : i32, i32, i32
  }
}

</mosaic_0001>

<bundles_post_ra>
// kernel: tpu_custom_call.1
= control target key start
LH: loop header
LB: loop body
LE: loop exit
PB: predicated region body
PF: predicated region fallthrough
CT: control target
= control target key end

     0   :  { %11 = vsyncpa [#allocation3], 0  ;;  %s6902_s0 = inlined_call_operand.hbm [shape: f32[2,40,320], index: 0, kind: input, shape index: {}]   ;;  %s6903_s1 = inlined_call_operand.hbm [shape: f32[5,320,512], index: 1, kind: input, shape index: {}]   ;;  %s6904_s2 = inlined_call_operand.hbm [shape: f32[320,512], index: 2, kind: input, shape index: {}]   ;;  %s6905_s3 = inlined_call_operand.hbm [shape: f32[3,512,128], index: 3, kind: input, shape index: {}]   ;;  %s6906_s4 = inlined_call_operand.hbm [shape: f32[1,512], index: 4, kind: input, shape index: {}]   ;;  %s6907_s5 = inlined_call_operand.hbm [shape: f32[1,128], index: 5, kind: input, shape index: {}]   ;;  %s6908_s6 = inlined_call_operand.hbm [shape: f32[2,16,128], index: 6, kind: output, shape index: {}]  }
   0x1   :  { %13 = vsyncpa [#allocation3 + $0x1], 0 }
   0x2   :  { %14 = vsyncpa [#allocation6], 0 }
   0x3   :  { %15 = vsyncpa [#allocation9], 0 }
   0x4   :  { %16 = vsyncpa [#allocation12], 0 }
   0x5   :  { %17 = vsyncpa [#allocation4], 0 }
   0x6   :  { %19 = vsyncpa [#allocation4 + $0x1], 0  ;;  %s6323_s21 = smov 0   ;;  %s6325_s22 = smov 0  }
   0x7   :  { %s6327_s23 = smov 0   ;;  %s6329_s24 = smov 0  }
   0x8 LB: > { %s6272_s25 = smov [#allocation5]   ;;  %s6344_s27 = sadd.s32 4294967295, %s6270_s24   ;;  %s6270_s24 = sphi %s6329_s24, %s6933_s24   ;;  %s6266_s23 = sphi %s6327_s23, %s6932_s23   ;;  %s6262_s22 = sphi %s6325_s22, %s6931_s22   ;;  %s6258_s21 = sphi %s6323_s21, %s6930_s21  }
   0x9   : > { %s199_s26 = sshll.u32 %s6272_s25, 4  ;;  %p4340_p0 = scmp.ge.s32.totalorder %s6270_s24, 1  ;;  %s6349_s26 = int_to_ptr.vmem [resolvable:$true] %s199_s26 }
   0xa   : > { %p6909_p1 = scmp.eq.s32.totalorder %s6344_s27, 0  ;;  %p187_p2 = scmp.lt.s32.totalorder %s6270_s24, 3 }
   0xb   : > { %s6273_s29 = smov [#allocation8]   ;;  %s6274_s8 = smov [#allocation7]  }
   0xc   : > { %p6351_p3 = pnand %p4340_p0, %p187_p2  ;;  %s225_s30 = sshll.u32 %s6273_s29, 4  ;;  %s6364_s30 = int_to_ptr.vmem [resolvable:$true] %s225_s30 }
   0xd   : > { %s6366_s9 = sshll.u32 %s6274_s8, 4  ;;  %s6022_s12 = scalar_lea.hbm %s6903_s1, 102400  ;;  %s213_s9 = int_to_ptr.vmem [resolvable:$true] %s6366_s9 }
   0xe   : > { %s6912_s28 = scalar_select %p6351_p3, 1, 0 }
   0xf   : > { %p5921_p5 = pneg %p6351_p3  ;;  %p6023_p7 = scmp.ne.s32.totalorder %s6903_s1, %s6022_s12 }
  0x10   : > { %p6029_p11 = scmp.lt.u32.totalorder %s6022_s12, %s6903_s1 }
  0x11   : > { %p6360_p6 = pnand %p5921_p5, %p6909_p1 }
  0x13   : > { %p6376_p8 = pneg %p6360_p6 }
  0x15   : > { %p6025_p9 = pnand %p6376_p8, %p6023_p7 }
  0x17   : > { %p6026_p10 = pneg %p6025_p9 }
  0x19   : > { %p6031_p12 = pnand %p6029_p11, %p6026_p10 }
  0x1b   : > { %6034 = shalt.err (!%p6031_p12)
}
  0x1c   : > { %s6035_s18 = scalar_lea.vmem %s6349_s26, 102400  ;;  %p6043_p5 = scmp.lt.s32.totalorder %s6349_s26, %s6349_s26 }
  0x1d   : > { %p6036_p13 = scmp.ne.s32.totalorder %s6349_s26, %s6035_s18  ;;  %p6044_p4 = scmp.lt.s32.totalorder %s6035_s18, %s6035_s18 }
  0x1f   : > { %p6038_p0 = pnand %p6036_p13, %p6376_p8  ;;  %p6045_p7 = por %p6044_p4, %p6043_p5 }
  0x21   : > { %p6039_p2 = pneg %p6038_p0 }
  0x23   : > { %p6046_p9 = pnand %p6045_p7, %p6039_p2 }
  0x25   : > { %6049 = shalt.err (!%p6046_p9)
}
  0x26   : > { %s6275_s19 = smov 512   ;;  %s6276_s20 = smov 32  }
  0x27   : > { %5924 = dma.hbm_to_vmem [thread:$0]  (!%p6360_p6), %s6903_s1, 102400, %s6349_s26, [#allocation6], %s6275_s19, %s6275_s19, %s6276_s20  }
  0x28   : > { %s6050_s11 = scalar_lea.hbm %s6905_s3, 24576 }
  0x29   : > { %p6051_p4 = scmp.ne.s32.totalorder %s6905_s3, %s6050_s11  ;;  %p6057_p12 = scmp.lt.u32.totalorder %s6050_s11, %s6905_s3 }
  0x2b   : > { %p6053_p10 = pnand %p6051_p4, %p6376_p8 }
  0x2d   : > { %p6054_p11 = pneg %p6053_p10 }
  0x2f   : > { %p6059_p13 = pnand %p6057_p12, %p6054_p11 }
  0x31   : > { %6062 = shalt.err (!%p6059_p13)
}
  0x32   : > { %s6063_s26 = scalar_lea.vmem %s6364_s30, 24576  ;;  %p6071_p7 = scmp.lt.s32.totalorder %s6364_s30, %s6364_s30 }
  0x33   : > { %p6064_p0 = scmp.ne.s32.totalorder %s6364_s30, %s6063_s26  ;;  %p6072_p9 = scmp.lt.s32.totalorder %s6063_s26, %s6063_s26 }
  0x35   : > { %p6066_p2 = pnand %p6064_p0, %p6376_p8  ;;  %p6073_p4 = por %p6072_p9, %p6071_p7 }
  0x37   : > { %p6067_p5 = pneg %p6066_p2 }
  0x39   : > { %p6074_p10 = pnand %p6073_p4, %p6067_p5 }
  0x3b   : > { %6077 = shalt.err (!%p6074_p10)
}
  0x3c   : > { %s6277_s17 = smov 128   ;;  %s6278_s18 = smov 8  }
  0x3d   : > { %5930 = dma.hbm_to_vmem [thread:$0]  (!%p6360_p6), %s6905_s3, 24576, %s6364_s30, [#allocation9], %s6277_s17, %s6277_s17, %s6278_s18  }
  0x3e   : > { %s6078_s11 = scalar_lea.hbm %s6904_s2, 20480 }
  0x3f   : > { %p6079_p11 = scmp.ne.s32.totalorder %s6904_s2, %s6078_s11  ;;  %p6085_p0 = scmp.lt.u32.totalorder %s6078_s11, %s6904_s2 }
  0x41   : > { %p6081_p12 = pnand %p6079_p11, %p6376_p8 }
  0x43   : > { %p6082_p13 = pneg %p6081_p12 }
  0x45   : > { %p6087_p2 = pnand %p6085_p0, %p6082_p13 }
  0x47   : > { %6090 = shalt.err (!%p6087_p2)
}
  0x48   : > { %s6091_s26 = scalar_lea.vmem %s213_s9, 20480  ;;  %p6099_p4 = scmp.lt.s32.totalorder %s213_s9, %s213_s9 }
  0x49   : > { %p6092_p5 = scmp.ne.s32.totalorder %s213_s9, %s6091_s26  ;;  %p6100_p10 = scmp.lt.s32.totalorder %s6091_s26, %s6091_s26 }
  0x4b   : > { %p6094_p7 = pnand %p6092_p5, %p6376_p8  ;;  %p6101_p1 = por %p6100_p10, %p6099_p4 }
  0x4d   : > { %p6095_p9 = pneg %p6094_p7 }
  0x4f   : > { %p6102_p3 = pnand %p6101_p1, %p6095_p9 }
  0x51   : > { %6105 = shalt.err (!%p6102_p3)
}
  0x52   : > { %5927 = dma.hbm_to_vmem [thread:$0]  (!%p6360_p6), %s6904_s2, 20480, %s213_s9, [#allocation6], %s6275_s19, %s6275_s19, %s6276_s20  }
  0x53   : > { %s6279_s18 = smov [#allocation10]   ;;  %s6280_s29 = smov [#allocation11]  }
  0x54   : > { %s239_s25 = sshll.u32 %s6279_s18, 4  ;;  %s250_s8 = sshll.u32 %s6280_s29, 4  ;;  %s240_s25 = int_to_ptr.vmem [resolvable:$true] %s239_s25  ;;  %s251_s8 = int_to_ptr.vmem [resolvable:$true] %s250_s8 }
  0x55   : > { %s6106_s12 = scalar_lea.hbm %s6906_s4, 64 }
  0x56   : > { %p6107_p1 = scmp.ne.s32.totalorder %s6906_s4, %s6106_s12  ;;  %p6113_p12 = scmp.lt.u32.totalorder %s6106_s12, %s6906_s4 }
  0x58   : > { %p6109_p3 = pnand %p6107_p1, %p6376_p8 }
  0x5a   : > { %p6110_p11 = pneg %p6109_p3 }
  0x5c   : > { %p6115_p13 = pnand %p6113_p12, %p6110_p11 }
  0x5e   : > { %6118 = shalt.err (!%p6115_p13)
}
  0x5f   : > { %s6119_s9 = scalar_lea.vmem %s240_s25, 64  ;;  %p6127_p7 = scmp.lt.s32.totalorder %s240_s25, %s240_s25 }
  0x60   : > { %p6120_p0 = scmp.ne.s32.totalorder %s240_s25, %s6119_s9  ;;  %p6128_p9 = scmp.lt.s32.totalorder %s6119_s9, %s6119_s9 }
  0x62   : > { %p6122_p2 = pnand %p6120_p0, %p6376_p8  ;;  %p6129_p4 = por %p6128_p9, %p6127_p7 }
  0x64   : > { %p6123_p5 = pneg %p6122_p2 }
  0x66   : > { %p6130_p10 = pnand %p6129_p4, %p6123_p5 }
  0x68   : > { %6133 = shalt.err (!%p6130_p10)
}
  0x69   : > { %5933 = dma.hbm_to_vmem [thread:$0]  (!%p6360_p6), %s6906_s4, 64, %s240_s25, [#allocation9]  }
  0x6a   : > { %s6134_s18 = scalar_lea.hbm %s6907_s5, 16 }
  0x6b   : > { %p6135_p1 = scmp.ne.s32.totalorder %s6907_s5, %s6134_s18  ;;  %p6141_p12 = scmp.lt.u32.totalorder %s6134_s18, %s6907_s5 }
  0x6d   : > { %p6137_p3 = pnand %p6135_p1, %p6376_p8 }
  0x6f   : > { %p6138_p11 = pneg %p6137_p3 }
  0x71   : > { %p6143_p13 = pnand %p6141_p12, %p6138_p11 }
  0x73   : > { %6146 = shalt.err (!%p6143_p13)
}
  0x74   : > { %s6147_s13 = scalar_lea.vmem %s251_s8, 16  ;;  %s6154_s25 = scalar_lea.vmem %s251_s8, 32 }
  0x75   : > { %p6148_p0 = scmp.ne.s32.totalorder %s251_s8, %s6147_s13  ;;  %p6155_p7 = scmp.lt.s32.totalorder %s251_s8, %s251_s8 }
  0x76   : > { %p6156_p9 = scmp.lt.s32.totalorder %s6154_s25, %s6147_s13 }
  0x77   : > { %p6150_p2 = pnand %p6148_p0, %p6376_p8 }
  0x78   : > { %p6157_p4 = por %p6156_p9, %p6155_p7 }
  0x79   : > { %p6151_p5 = pneg %p6150_p2 }
  0x7b   : > { %p6158_p10 = pnand %p6157_p4, %p6151_p5 }
  0x7d   : > { %6161 = shalt.err (!%p6158_p10)
}
  0x7e   : > { %5936 = dma.hbm_to_vmem [thread:$0]  (!%p6360_p6), %s6907_s5, 16, %s251_s8, [#allocation12]  }
  0x7f   : > { %s4339_s15 = sadd.s32 4294967294, %s6270_s24   ;;  %s6483_s7 = sadd.s32 1, %s6270_s24  }
  0x80   : > { %s32_s26 = sadd.s32 1, %s6266_s23  ;;  %s29_s9 = ssub.s32 %s6270_s24, %s6483_s7 }
  0x81   : > { %p39_p8 = scmp.ne.s32.totalorder %s6266_s23, %s6262_s22  ;;  %p30_p1 = scmp.eq.s32.totalorder %s29_s9, 0 }
  0x82   : > { %p40_p3 = scmp.eq.s32.totalorder %s6270_s24, 0  ;;  %p45_p11 = scmp.ne.s32.totalorder %s6262_s22, %s6258_s21 }
  0x83   : > { %p174_p12 = scmp.eq.s32.totalorder %s6344_s27, 1  ;;  %p6915_p0 = scmp.eq.s32.totalorder %s6344_s27, 0 }
  0x84   : > { %s6495_s19 = scalar_select %p30_p1, %s6266_s23, %s32_s26  }
  0x85   : > { %p41_p13 = por %p40_p3, %p39_p8  ;;  %p6499_p2 = por %p6915_p0, %p45_p11 }
  0x86   : > { %p6503_p6 = por %p174_p12, %p39_p8  ;;  %p180_p5 = scmp.eq.s32.totalorder %s4339_s15, 1 }
  0x87   : > { %p5950_p7 = scmp.lt.s32.totalorder %s6270_s24, 2  ;;  %s261_s30 = sand.u32 1, %s6266_s23  }
  0x88   : > { %s6917_s8 = scalar_select %p6503_p6, 1, 0 }
  0x89   : > { %p6509_p9 = por %p180_p5, %p45_p11  ;;  %s5894_s18 = smul.u32 120, %s261_s30 }
  0x8a   : > { %p6513_p4 = pnand %p5950_p7, %p41_p13  ;;  %s5895_s10 = smul.u32 1920, %s6270_s24 }
  0x8b   : > { %s6918_s17 = scalar_select %p6509_p9, 1, 0 }
  0x8c   : > { %s6521_s13 = scalar_lea.hbm %s6902_s0, %s5895_s10  ;;  %s265_s25 = scalar_lea.vmem [#allocation2], %s5894_s18 }
  0x8d   : > { %s272_s14 = sshll.u32 %s265_s25, 4  ;;  %s6525_s16 = scalar_lea.sflag [#allocation3], %s261_s30  ;;  %s6523_s14 = int_to_ptr.vmem [resolvable:$true] %s272_s14 }
  0x8e   : > { %s6162_s15 = scalar_lea.hbm %s6521_s13, 1920  ;;  %p6164_p8 = pneg %p6513_p4 }
  0x8f   : > { %p6163_p10 = scmp.ne.s32.totalorder %s6521_s13, %s6162_s15  ;;  %s6167_s10 = scalar_lea.hbm %s6902_s0, 3840 }
  0x90   : > { %p6168_p11 = scmp.lt.u32.totalorder %s6521_s13, %s6902_s0  ;;  %p6169_p12 = scmp.lt.u32.totalorder %s6167_s10, %s6162_s15 }
  0x91   : > { %p6165_p1 = pnand %p6164_p8, %p6163_p10  ;;  %p6171_p0 = scmp.lt.u32.totalorder %s6162_s15, %s6521_s13 }
  0x92   : > { %p6170_p13 = por %p6169_p12, %p6168_p11 }
  0x93   : > { %p6166_p3 = pneg %p6165_p1 }
  0x94   : > { %p6172_p5 = por %p6171_p0, %p6170_p13 }
  0x96   : > { %p6173_p7 = pnand %p6172_p5, %p6166_p3 }
  0x98   : > { %6176 = shalt.err (!%p6173_p7)
}
  0x99   : > { %s6177_s30 = scalar_lea.vmem %s6523_s14, 1920  ;;  %s6281_s18 = smov [#allocation2]  }
  0x9a   : > { %p6178_p10 = scmp.ne.s32.totalorder %s6523_s14, %s6177_s30  ;;  %s6182_s25 = sshll.u32 %s6281_s18, 4  ;;  %s6183_s25 = int_to_ptr.vmem [resolvable:$false] %s6182_s25 }
  0x9b   : > { %s6184_s26 = scalar_lea.vmem %s6183_s25, 3840  ;;  %p6185_p6 = scmp.lt.s32.totalorder %s6523_s14, %s6183_s25 }
  0x9c   : > { %p6180_p1 = pnand %p6178_p10, %p6164_p8  ;;  %p6186_p11 = scmp.lt.s32.totalorder %s6184_s26, %s6177_s30 }
  0x9e   : > { %p6181_p9 = pneg %p6180_p1  ;;  %p6187_p12 = por %p6186_p11, %p6185_p6 }
  0xa0   : > { %p6188_p13 = pnand %p6187_p12, %p6181_p9 }
  0xa2   : > { %6191 = shalt.err (!%p6188_p13)
}
  0xa3   : > { %s6282_s15 = smov 384   ;;  %s6283_s9 = smov 24  }
  0xa4   : > { %5940 = dma.hbm_to_vmem [thread:$0]  (!%p6513_p4), %s6521_s13, 1920, %s6523_s14, %s6525_s16, %s6282_s15, %s6282_s15, %s6283_s9  }
  0xa5   : > { %p6920_p8 = scmp.ne.s32.totalorder %s6912_s28, 0 }
  0xa6   : > { %s6556_s10 = sand.u32 (!%p6920_p8), 1, %s6262_s22  }
  0xa7   : > { %284 = sbr.rel (%p6920_p8) target bundleno = 1414 (0x586), region = 44  ;;  %s287_s12 = scalar_lea.sflag (!%p6920_p8), [#allocation3], %s6556_s10 }
  0xa8   : > { %s5896_s11 = smul.u32 (!%p6920_p8), 120, %s6556_s10 }
  0xaa   : > { %s6560_s30 = scalar_lea.vmem (!%p6920_p8), [#allocation2], %s5896_s11 }
  0xae   : > { %6237 = dma.done.wait (%p6499_p2), %s287_s12, 1920  }
  0xaf   : > { %6239 = vsyncadd (%p6499_p2), %s287_s12, 4294965376  ;;  %p6921_p6 = scmp.eq.s32.totalorder %s6344_s27, 0 }
  0xb1   : > { %6241 = dma.done.wait (%p6921_p6), [#allocation6], 122880   ;;  %p6922_p9 = pmov %p6921_p6 }
  0xb2   : > { %p6923_p4 = pmov %p6921_p6 }
  0xb3   : > { %6243 = vsyncadd (%p6922_p9), [#allocation6], 4294844416 }
  0xb4   : > { %6245 = dma.done.wait (%p6923_p4), [#allocation9], 24640   ;;  %p6924_p3 = pmov %p6923_p4 }
  0xb6   : > { %6247 = vsyncadd (%p6924_p3), [#allocation9], 4294942656  ;;  %p6925_p0 = pmov %p6924_p3 }
  0xb8   : > { %6249 = dma.done.wait (%p6925_p0), [#allocation12], 16   ;;  %p6926_p5 = pmov %p6925_p0 }
  0xb9   : > { %v391_v0 = vld [vmem:[#allocation7 + $0x8] sm:$0xff]  ;;  %v393_v2 = vld [vmem:[#allocation7 + $0x18] sm:$0xff]  ;;  %v390_v5 = vld [vmem:[#allocation7] sm:$0xff]  ;;  %vm374_vm0 = vcmask 523264   ;;  %vm1525_vm1 = vcmask 1041408   ;;  %vm2029_vm2 = vcmask 1043456  }
  0xba   : > { %6251 = vsyncadd (%p6926_p5), [#allocation12], 4294967280  ;;  %v395_v1 = vld [vmem:[#allocation7 + $0x28] sm:$0xff]  ;;  %v397_v4 = vld [vmem:[#allocation7 + $0x38] sm:$0xff]  ;;  %vm2533_vm3 = vcmask 1045504   ;;  %vm4026_vm4 = vcmask 130048  }
  0xbb   : > { %v4642_v3 = vpack.c.bf16 %v395_v1, %v391_v0  ;;  %v394_v6 = vld [vmem:[#allocation7 + $0x20] sm:$0xff]  ;;  %v4722_v7 = vpack.c.bf16 %v397_v4, %v393_v2  ;;  %v392_v9 = vld [vmem:[#allocation7 + $0x10] sm:$0xff]  ;;  %v399_v11 = vld [vmem:[#allocation7 + $0x48] sm:$0xff]  ;;  %s4354_s28 = sshll.u32 %s6556_s10, 4  ;;  %s4391_s13 = sshll.u32 %s6344_s27, 8 }
  0xbc   : > { %v4644_v8 = vpack.c.bf16 %v394_v6, %v390_v5  ;;  %v396_v10 = vld [vmem:[#allocation7 + $0x30] sm:$0xff]  ;;  %v403_v13 = vld [vmem:[#allocation7 + $0x68] sm:$0xff]  ;;  %v401_v14 = vld [vmem:[#allocation7 + $0x58] sm:$0xff]  ;;  %s338_s20 = scalar_lea.vmem [#allocation13], %s4354_s28  ;;  %s6858_s18 = scalar_lea.hbm %s6908_s6, %s4391_s13 }
  0xbd   : > { %4643 = vmatprep.subr.bf16.mxu0 %v4642_v3  ;;  %v4724_v12 = vpack.c.bf16 %v396_v10, %v392_v9  ;;  %v405_v15 = vld [vmem:[#allocation7 + $0x78] sm:$0xff]  ;;  %4723 = vmatprep.subr.bf16.mxu1 %v4722_v7  ;;  %v4646_v16 = vpack.c.bf16 %v403_v13, %v399_v11  ;;  %v398_v18 = vld [vmem:[#allocation7 + $0x40] sm:$0xff]  ;;  %v400_v20 = vld [vmem:[#allocation7 + $0x50] sm:$0xff]  ;;  %s4218_s29 = sshll.u32 %s338_s20, 4  ;;  %s4205_s25 = scalar_lea.sflag [#allocation4], %s6556_s10  ;;  %s6853_s29 = int_to_ptr.vmem [resolvable:$true] %s4218_s29 }
  0xbe   : > { %4645 = vmatpush1.bf16.msra.mxu0 %v4644_v8  ;;  %v4726_v17 = vpack.c.bf16 %v405_v15, %v401_v14  ;;  %v402_v19 = vld [vmem:[#allocation7 + $0x60] sm:$0xff]  ;;  %v404_v22 = vld [vmem:[#allocation7 + $0x70] sm:$0xff]  ;;  %v407_v23 = vld [vmem:[#allocation7 + $0x88] sm:$0xff]  ;;  %s6192_s26 = scalar_lea.vmem %s6853_s29, 256  ;;  %p6927_p7 = scmp.ne.s32.totalorder %s6917_s8, 0 }
  0xbf   : > { %4725 = vmatpush1.bf16.msra.mxu1 %v4724_v12  ;;  %v4648_v21 = vpack.c.bf16 %v402_v19, %v398_v18  ;;  %v411_v24 = vld [vmem:[#allocation7 + $0xa8] sm:$0xff]  ;;  %4647 = vmatprep.subr.bf16.mxu0 %v4646_v16  ;;  %v4728_v25 = vpack.c.bf16 %v404_v22, %v400_v20  ;;  %v409_v27 = vld [vmem:[#allocation7 + $0x98] sm:$0xff]  ;;  %v406_v29 = vld [vmem:[#allocation7 + $0x80] sm:$0xff]  ;;  %p6193_p2 = scmp.ne.s32.totalorder %s6853_s29, %s6192_s26  ;;  %s6285_s27 = smov [#allocation13]  }
  0xc0   : > { %4727 = vmatprep.subr.bf16.mxu1 %v4726_v17  ;;  %v4650_v26 = vpack.c.bf16 %v411_v24, %v407_v23  ;;  %v413_v28 = vld [vmem:[#allocation7 + $0xb8] sm:$0xff]  ;;  %v410_v31 = vld [vmem:[#allocation7 + $0xa0] sm:$0xff]  ;;  %v408_v32 = vld [vmem:[#allocation7 + $0x90] sm:$0xff]  ;;  %s6196_s15 = sshll.u32 %s6285_s27, 4  ;;  %s6197_s15 = int_to_ptr.vmem [resolvable:$false] %s6196_s15 }
  0xc1   : > { %v4730_v30 = vpack.c.bf16 %v413_v28, %v409_v27  ;;  %v412_v33 = vld [vmem:[#allocation7 + $0xb0] sm:$0xff]  ;;  %v4652_v34 = vpack.c.bf16 %v410_v31, %v406_v29  ;;  %v415_v35 = vld [vmem:[#allocation7 + $0xc8] sm:$0xff]  ;;  %v417_v37 = vld [vmem:[#allocation7 + $0xd8] sm:$0xff]  ;;  %p6194_p10 = pnand %p6193_p2, %p6927_p7  ;;  %s6198_s9 = scalar_lea.vmem %s6197_s15, 512 }
  0xc2   : > { %4649 = vmatpush1.bf16.msra.mxu0 %v4648_v21  ;;  %v419_v36 = vld [vmem:[#allocation7 + $0xe8] sm:$0xff]  ;;  %v4732_v38 = vpack.c.bf16 %v412_v33, %v408_v32  ;;  %v421_v40 = vld [vmem:[#allocation7 + $0xf8] sm:$0xff]  ;;  %v414_v41 = vld [vmem:[#allocation7 + $0xc0] sm:$0xff]  ;;  %p6199_p11 = scmp.lt.s32.totalorder %s6853_s29, %s6197_s15  ;;  %p6200_p12 = scmp.lt.s32.totalorder %s6198_s9, %s6192_s26 }
  0xc3   : > { %4729 = vmatpush1.bf16.msra.mxu1 %v4728_v25  ;;  %4651 = vmatprep.subr.bf16.mxu0 %v4650_v26  ;;  %v4654_v39 = vpack.c.bf16 %v419_v36, %v415_v35  ;;  %v418_v42 = vld [vmem:[#allocation7 + $0xe0] sm:$0xff]  ;;  %v4734_v43 = vpack.c.bf16 %v421_v40, %v417_v37  ;;  %v416_v44 = vld [vmem:[#allocation7 + $0xd0] sm:$0xff]  ;;  %v423_v46 = vld [vmem:[#allocation7 + $0x108] sm:$0xff]  ;;  %p6195_p1 = pneg %p6194_p10 }
  0xc4   : > { %4731 = vmatprep.subr.bf16.mxu1 %v4730_v30  ;;  %v420_v45 = vld [vmem:[#allocation7 + $0xf0] sm:$0xff]  ;;  %v427_v47 = vld [vmem:[#allocation7 + $0x128] sm:$0xff]  ;;  %v425_v48 = vld [vmem:[#allocation7 + $0x118] sm:$0xff]  ;;  %v4656_v50 = vpack.c.bf16 %v418_v42, %v414_v41  ;;  %p6201_p13 = por %p6200_p12, %p6199_p11 }
  0xc5   : > { %v429_v49 = vld [vmem:[#allocation7 + $0x138] sm:$0xff]  ;;  %v4736_v51 = vpack.c.bf16 %v420_v45, %v416_v44  ;;  %v4658_v52 = vpack.c.bf16 %v427_v47, %v423_v46  ;;  %v422_v53 = vld [vmem:[#allocation7 + $0x100] sm:$0xff]  ;;  %v424_v55 = vld [vmem:[#allocation7 + $0x110] sm:$0xff] }
  0xc6   : > { %4653 = vmatpush1.bf16.msra.mxu0 %v4652_v34  ;;  %v426_v54 = vld [vmem:[#allocation7 + $0x120] sm:$0xff]  ;;  %v4738_v56 = vpack.c.bf16 %v429_v49, %v425_v48  ;;  %v428_v57 = vld [vmem:[#allocation7 + $0x130] sm:$0xff]  ;;  %v431_v58 = vld [vmem:[#allocation7 + $0x148] sm:$0xff]  ;;  %p6202_p8 = pnand %p6201_p13, %p6195_p1 }
  0xc7   : > { %4733 = vmatpush1.bf16.msra.mxu1 %v4732_v38  ;;  %4655 = vmatprep.subr.bf16.mxu0 %v4654_v39  ;;  %v435_v59 = vld [vmem:[#allocation7 + $0x168] sm:$0xff]  ;;  %v433_v60 = vld [vmem:[#allocation7 + $0x158] sm:$0xff]  ;;  %v4660_v62 = vpack.c.bf16 %v426_v54, %v422_v53  ;;  %v4740_v63 = vpack.c.bf16 %v428_v57, %v424_v55  ;;  %v430_v1 = vld [vmem:[#allocation7 + $0x140] sm:$0xff] }
  0xc8   : > { %4735 = vmatprep.subr.bf16.mxu1 %v4734_v43  ;;  %v437_v61 = vld [vmem:[#allocation7 + $0x178] sm:$0xff]  ;;  %v4662_v0 = vpack.c.bf16 %v435_v59, %v431_v58  ;;  %v434_v2 = vld [vmem:[#allocation7 + $0x160] sm:$0xff]  ;;  %v432_v3 = vld [vmem:[#allocation7 + $0x150] sm:$0xff] }
  0xc9   : > { %v4742_v4 = vpack.c.bf16 %v437_v61, %v433_v60  ;;  %v436_v5 = vld [vmem:[#allocation7 + $0x170] sm:$0xff]  ;;  %v439_v6 = vld [vmem:[#allocation7 + $0x188] sm:$0xff]  ;;  %v441_v8 = vld [vmem:[#allocation7 + $0x198] sm:$0xff]  ;;  %v4664_v10 = vpack.c.bf16 %v434_v2, %v430_v1 }
  0xca   : > { %4657 = vmatpush1.bf16.msra.mxu0 %v4656_v50  ;;  %v443_v7 = vld [vmem:[#allocation7 + $0x1a8] sm:$0xff]  ;;  %v445_v9 = vld [vmem:[#allocation7 + $0x1b8] sm:$0xff]  ;;  %v4744_v11 = vpack.c.bf16 %v436_v5, %v432_v3  ;;  %v438_v13 = vld [vmem:[#allocation7 + $0x180] sm:$0xff] }
  0xcb   : > { %4737 = vmatpush1.bf16.msra.mxu1 %v4736_v51  ;;  %4659 = vmatprep.subr.bf16.mxu0 %v4658_v52  ;;  %v4666_v12 = vpack.c.bf16 %v443_v7, %v439_v6  ;;  %v442_v14 = vld [vmem:[#allocation7 + $0x1a0] sm:$0xff]  ;;  %v440_v15 = vld [vmem:[#allocation7 + $0x190] sm:$0xff]  ;;  %v4746_v16 = vpack.c.bf16 %v445_v9, %v441_v8  ;;  %v447_v18 = vld [vmem:[#allocation7 + $0x1c8] sm:$0xff] }
  0xcc   : > { %4739 = vmatprep.subr.bf16.mxu1 %v4738_v56  ;;  %v444_v17 = vld [vmem:[#allocation7 + $0x1b0] sm:$0xff]  ;;  %v451_v19 = vld [vmem:[#allocation7 + $0x1e8] sm:$0xff]  ;;  %v449_v20 = vld [vmem:[#allocation7 + $0x1d8] sm:$0xff]  ;;  %v4668_v22 = vpack.c.bf16 %v442_v14, %v438_v13 }
  0xcd   : > { %v453_v21 = vld [vmem:[#allocation7 + $0x1f8] sm:$0xff]  ;;  %v4748_v23 = vpack.c.bf16 %v444_v17, %v440_v15  ;;  %v4670_v24 = vpack.c.bf16 %v451_v19, %v447_v18  ;;  %v446_v25 = vld [vmem:[#allocation7 + $0x1c0] sm:$0xff]  ;;  %v448_v27 = vld [vmem:[#allocation7 + $0x1d0] sm:$0xff] }
  0xce   : > { %4661 = vmatpush1.bf16.msra.mxu0 %v4660_v62  ;;  %v450_v26 = vld [vmem:[#allocation7 + $0x1e0] sm:$0xff]  ;;  %v4750_v28 = vpack.c.bf16 %v453_v21, %v449_v20  ;;  %v452_v29 = vld [vmem:[#allocation7 + $0x1f0] sm:$0xff]  ;;  %v455_v30 = vld [vmem:[#allocation7 + $0x208] sm:$0xff] }
  0xcf   : > { %4741 = vmatpush1.bf16.msra.mxu1 %v4740_v63  ;;  %4663 = vmatprep.subr.bf16.mxu0 %v4662_v0  ;;  %v459_v31 = vld [vmem:[#allocation7 + $0x228] sm:$0xff]  ;;  %v457_v32 = vld [vmem:[#allocation7 + $0x218] sm:$0xff]  ;;  %v4672_v34 = vpack.c.bf16 %v450_v26, %v446_v25  ;;  %v4752_v35 = vpack.c.bf16 %v452_v29, %v448_v27  ;;  %v454_v37 = vld [vmem:[#allocation7 + $0x200] sm:$0xff] }
  0xd0   : > { %4743 = vmatprep.subr.bf16.mxu1 %v4742_v4  ;;  %v461_v33 = vld [vmem:[#allocation7 + $0x238] sm:$0xff]  ;;  %v4674_v36 = vpack.c.bf16 %v459_v31, %v455_v30  ;;  %v458_v38 = vld [vmem:[#allocation7 + $0x220] sm:$0xff]  ;;  %v456_v39 = vld [vmem:[#allocation7 + $0x210] sm:$0xff] }
  0xd1   : > { %v4754_v40 = vpack.c.bf16 %v461_v33, %v457_v32  ;;  %v460_v41 = vld [vmem:[#allocation7 + $0x230] sm:$0xff]  ;;  %v463_v42 = vld [vmem:[#allocation7 + $0x248] sm:$0xff]  ;;  %v465_v44 = vld [vmem:[#allocation7 + $0x258] sm:$0xff]  ;;  %v4676_v46 = vpack.c.bf16 %v458_v38, %v454_v37 }
  0xd2   : > { %4665 = vmatpush1.bf16.msra.mxu0 %v4664_v10  ;;  %v467_v43 = vld [vmem:[#allocation7 + $0x268] sm:$0xff]  ;;  %v469_v45 = vld [vmem:[#allocation7 + $0x278] sm:$0xff]  ;;  %v4756_v47 = vpack.c.bf16 %v460_v41, %v456_v39  ;;  %v462_v49 = vld [vmem:[#allocation7 + $0x240] sm:$0xff] }
  0xd3   : > { %4745 = vmatpush1.bf16.msra.mxu1 %v4744_v11  ;;  %4667 = vmatprep.subr.bf16.mxu0 %v4666_v12  ;;  %v4678_v48 = vpack.c.bf16 %v467_v43, %v463_v42  ;;  %v466_v50 = vld [vmem:[#allocation7 + $0x260] sm:$0xff]  ;;  %v464_v51 = vld [vmem:[#allocation7 + $0x250] sm:$0xff]  ;;  %v4758_v52 = vpack.c.bf16 %v469_v45, %v465_v44  ;;  %v471_v54 = vld [vmem:[#allocation7 + $0x288] sm:$0xff] }
  0xd4   : > { %4747 = vmatprep.subr.bf16.mxu1 %v4746_v16  ;;  %v468_v53 = vld [vmem:[#allocation7 + $0x270] sm:$0xff]  ;;  %v475_v55 = vld [vmem:[#allocation7 + $0x2a8] sm:$0xff]  ;;  %v473_v56 = vld [vmem:[#allocation7 + $0x298] sm:$0xff]  ;;  %v4680_v58 = vpack.c.bf16 %v466_v50, %v462_v49 }
  0xd5   : > { %v477_v57 = vld [vmem:[#allocation7 + $0x2b8] sm:$0xff]  ;;  %v4760_v59 = vpack.c.bf16 %v468_v53, %v464_v51  ;;  %v4682_v60 = vpack.c.bf16 %v475_v55, %v471_v54  ;;  %v470_v61 = vld [vmem:[#allocation7 + $0x280] sm:$0xff]  ;;  %v472_v63 = vld [vmem:[#allocation7 + $0x290] sm:$0xff] }
  0xd6   : > { %4669 = vmatpush1.bf16.msra.mxu0 %v4668_v22  ;;  %v474_v62 = vld [vmem:[#allocation7 + $0x2a0] sm:$0xff]  ;;  %v4762_v0 = vpack.c.bf16 %v477_v57, %v473_v56  ;;  %v476_v1 = vld [vmem:[#allocation7 + $0x2b0] sm:$0xff]  ;;  %v479_v2 = vld [vmem:[#allocation7 + $0x2c8] sm:$0xff] }
  0xd7   : > { %4749 = vmatpush1.bf16.msra.mxu1 %v4748_v23  ;;  %4671 = vmatprep.subr.bf16.mxu0 %v4670_v24  ;;  %v483_v3 = vld [vmem:[#allocation7 + $0x2e8] sm:$0xff]  ;;  %v481_v4 = vld [vmem:[#allocation7 + $0x2d8] sm:$0xff]  ;;  %v4684_v6 = vpack.c.bf16 %v474_v62, %v470_v61  ;;  %v478_v7 = vld [vmem:[#allocation7 + $0x2c0] sm:$0xff]  ;;  %v4764_v10 = vpack.c.bf16 %v476_v1, %v472_v63 }
  0xd8   : > { %4751 = vmatprep.subr.bf16.mxu1 %v4750_v28  ;;  %v485_v5 = vld [vmem:[#allocation7 + $0x2f8] sm:$0xff]  ;;  %v482_v8 = vld [vmem:[#allocation7 + $0x2e0] sm:$0xff]  ;;  %v480_v9 = vld [vmem:[#allocation7 + $0x2d0] sm:$0xff]  ;;  %v4686_v11 = vpack.c.bf16 %v483_v3, %v479_v2 }
  0xd9   : > { %v484_v12 = vld [vmem:[#allocation7 + $0x2f0] sm:$0xff]  ;;  %v487_v13 = vld [vmem:[#allocation7 + $0x308] sm:$0xff]  ;;  %v4766_v15 = vpack.c.bf16 %v485_v5, %v481_v4  ;;  %v489_v16 = vld [vmem:[#allocation7 + $0x318] sm:$0xff]  ;;  %v4688_v22 = vpack.c.bf16 %v482_v8, %v478_v7 }
  0xda   : > { %4673 = vmatpush1.bf16.msra.mxu0 %v4672_v34  ;;  %v491_v14 = vld [vmem:[#allocation7 + $0x328] sm:$0xff]  ;;  %v493_v17 = vld [vmem:[#allocation7 + $0x338] sm:$0xff]  ;;  %v486_v19 = vld [vmem:[#allocation7 + $0x300] sm:$0xff]  ;;  %v4768_v27 = vpack.c.bf16 %v484_v12, %v480_v9 }
  0xdb   : > { %4753 = vmatpush1.bf16.msra.mxu1 %v4752_v35  ;;  %4675 = vmatprep.subr.bf16.mxu0 %v4674_v36  ;;  %v6579_v18 = vld [vmem:[%s6560_s30 + $0x8] sm:$0xff]  ;;  %v6582_v20 = vld [vmem:[%s6560_s30 + $0x20] sm:$0xff]  ;;  %v346_v21 = vld [vmem:[%s6560_s30 + $0x38] sm:$0xff]  ;;  %v4690_v28 = vpack.c.bf16 %v491_v14, %v487_v13  ;;  %v4770_v32 = vpack.c.bf16 %v493_v17, %v489_v16 }
  0xdc   : > { %4755 = vmatprep.subr.bf16.mxu1 %v4754_v40  ;;  %v490_v23 = vld [vmem:[#allocation7 + $0x320] sm:$0xff]  ;;  %v488_v24 = vld [vmem:[#allocation7 + $0x310] sm:$0xff]  ;;  %v364_v26 = vadd.f32 %v6582_v20, %v6579_v18  ;;  %v495_v29 = vld [vmem:[#allocation7 + $0x348] sm:$0xff] }
  0xdd   : > { %v492_v25 = vld [vmem:[#allocation7 + $0x330] sm:$0xff]  ;;  %v349_v30 = vld [vmem:[%s6560_s30 + $0x50] sm:$0xff]  ;;  %v499_v33 = vld [vmem:[#allocation7 + $0x368] sm:$0xff]  ;;  %v4692_v41 = vpack.c.bf16 %v490_v23, %v486_v19 }
  0xde   : > { %4677 = vmatpush1.bf16.msra.mxu0 %v4676_v46  ;;  %v6589_v31 = vld [vmem:[%s6560_s30] sm:$0xff]  ;;  %v365_v34 = vadd.f32 %v364_v26, %v346_v21  ;;  %v6592_v35 = vld [vmem:[%s6560_s30 + $0x18] sm:$0xff]  ;;  %v345_v36 = vld [vmem:[%s6560_s30 + $0x30] sm:$0xff]  ;;  %v4772_v45 = vpack.c.bf16 %v492_v25, %v488_v24  ;;  %v4694_v46 = vpack.c.bf16 %v499_v33, %v495_v29 }
  0xdf   : > { %4757 = vmatpush1.bf16.msra.mxu1 %v4756_v47  ;;  %4679 = vmatprep.subr.bf16.mxu0 %v4678_v48  ;;  %v497_v37 = vld [vmem:[#allocation7 + $0x358] sm:$0xff]  ;;  %v354_v40 = vadd.f32 %v6592_v35, %v6589_v31  ;;  %v494_v42 = vld [vmem:[#allocation7 + $0x340] sm:$0xff]  ;;  %v496_v48 = vld [vmem:[#allocation7 + $0x350] sm:$0xff] }
  0xe0   : > { %4759 = vmatprep.subr.bf16.mxu1 %v4758_v52  ;;  %v501_v38 = vld [vmem:[#allocation7 + $0x378] sm:$0xff]  ;;  %v366_v43 = vadd.f32 %v365_v34, %v349_v30  ;;  %v498_v47 = vld [vmem:[#allocation7 + $0x360] sm:$0xff]  ;;  %v500_v49 = vld [vmem:[#allocation7 + $0x370] sm:$0xff] }
  0xe1   : > { %v352_v39 = vld [vmem:[%s6560_s30 + $0x68] sm:$0xff]  ;;  %v355_v50 = vadd.f32 %v354_v40, %v345_v36  ;;  %v4774_v51 = vpack.c.bf16 %v501_v38, %v497_v37  ;;  %v503_v52 = vld [vmem:[#allocation7 + $0x388] sm:$0xff]  ;;  %v4776_v62 = vpack.c.bf16 %v500_v49, %v496_v48  ;;  %v6601_v17 = vld [vmem:[%s6560_s30 + $0x10] sm:$0xff] }
  0xe2   : > { %4681 = vmatpush1.bf16.msra.mxu0 %v4680_v58  ;;  %v348_v44 = vld [vmem:[%s6560_s30 + $0x48] sm:$0xff]  ;;  %v507_v53 = vld [vmem:[#allocation7 + $0x3a8] sm:$0xff]  ;;  %v367_v54 = vadd.f32 %v366_v43, %v352_v39  ;;  %v375_v26 = vsel %vm374_vm0, %v6601_v17, 0.0  ;;  %v353_v38 = vld [vmem:[%s6560_s30 + $0x70] sm:$0xff] }
  0xe3   : > { %4761 = vmatpush1.bf16.msra.mxu1 %v4760_v59  ;;  %4683 = vmatprep.subr.bf16.mxu0 %v4682_v60  ;;  %v351_v55 = vld [vmem:[%s6560_s30 + $0x60] sm:$0xff]  ;;  %v505_v56 = vld [vmem:[#allocation7 + $0x398] sm:$0xff]  ;;  %v356_v58 = vadd.f32 %v355_v50, %v348_v44  ;;  %v4696_v59 = vpack.c.bf16 %v498_v47, %v494_v42  ;;  %v502_v60 = vld [vmem:[#allocation7 + $0x380] sm:$0xff]  ;;  %v4698_v63 = vpack.c.bf16 %v507_v53, %v503_v52 }
  0xe4   : > { %4763 = vmatprep.subr.bf16.mxu1 %v4762_v0  ;;  %v509_v57 = vld [vmem:[#allocation7 + $0x3b8] sm:$0xff]  ;;  %v368_v61 = vrot.slane %v367_v54, 4  ;;  %v506_v0 = vld [vmem:[#allocation7 + $0x3a0] sm:$0xff]  ;;  %v504_v1 = vld [vmem:[#allocation7 + $0x390] sm:$0xff] }
  0xe5   : > { %v508_v2 = vld [vmem:[#allocation7 + $0x3b0] sm:$0xff]  ;;  %v357_v3 = vadd.f32 %v356_v58, %v351_v55  ;;  %v4778_v4 = vpack.c.bf16 %v509_v57, %v505_v56  ;;  %v511_v5 = vld [vmem:[#allocation7 + $0x3c8] sm:$0xff]  ;;  %v513_v7 = vld [vmem:[#allocation7 + $0x3d8] sm:$0xff]  ;;  %v4700_v13 = vpack.c.bf16 %v506_v0, %v502_v60  ;;  %v382_v55 = vsel %vm374_vm0, %v353_v38, 0.0 }
  0xe6   : > { %4685 = vmatpush1.bf16.msra.mxu0 %v4684_v6  ;;  %v515_v6 = vld [vmem:[#allocation7 + $0x3e8] sm:$0xff]  ;;  %v369_v8 = vadd.f32 %v368_v61, %v367_v54  ;;  %v517_v9 = vld [vmem:[#allocation7 + $0x3f8] sm:$0xff]  ;;  %v512_v14 = vld [vmem:[#allocation7 + $0x3d0] sm:$0xff]  ;;  %v4780_v19 = vpack.c.bf16 %v508_v2, %v504_v1 }
  0xe7   : > { %4765 = vmatpush1.bf16.msra.mxu1 %v4764_v10  ;;  %4687 = vmatprep.subr.bf16.mxu0 %v4686_v11  ;;  %v510_v10 = vld [vmem:[#allocation7 + $0x3c0] sm:$0xff]  ;;  %v358_v12 = vrot.slane %v357_v3, 4  ;;  %v4702_v21 = vpack.c.bf16 %v515_v6, %v511_v5  ;;  %v6604_v23 = vld [vmem:[%s6560_s30 + $0x28] sm:$0xff]  ;;  %v347_v24 = vld [vmem:[%s6560_s30 + $0x40] sm:$0xff] }
  0xe8   : > { %4767 = vmatprep.subr.bf16.mxu1 %v4766_v15  ;;  %v514_v11 = vld [vmem:[#allocation7 + $0x3e0] sm:$0xff]  ;;  %v516_v15 = vld [vmem:[#allocation7 + $0x3f0] sm:$0xff]  ;;  %v370_v16 = vrot.slane %v369_v8, 2  ;;  %v519_v29 = vld [vmem:[#allocation7 + $0x408] sm:$0xff]  ;;  %v378_v33 = vsel %vm374_vm0, %v347_v24, 0.0 }
  0xe9   : > { %v350_v25 = vld [vmem:[%s6560_s30 + $0x58] sm:$0xff]  ;;  %v521_v34 = vld [vmem:[#allocation7 + $0x418] sm:$0xff]  ;;  %v4704_v40 = vpack.c.bf16 %v514_v11, %v510_v10  ;;  %v520_v48 = vld [vmem:[#allocation7 + $0x410] sm:$0xff] }
  0xea   : > { %4689 = vmatpush1.bf16.msra.mxu0 %v4688_v22  ;;  %v359_v22 = vadd.f32 %v358_v12, %v357_v3  ;;  %v523_v30 = vld [vmem:[#allocation7 + $0x428] sm:$0xff]  ;;  %v525_v36 = vld [vmem:[#allocation7 + $0x438] sm:$0xff]  ;;  %v518_v43 = vld [vmem:[#allocation7 + $0x400] sm:$0xff]  ;;  %v380_v44 = vsel %vm374_vm0, %v350_v25, 0.0 }
  0xeb   : > { %4769 = vmatpush1.bf16.msra.mxu1 %v4768_v27  ;;  %4691 = vmatprep.subr.bf16.mxu0 %v4690_v28  ;;  %v4782_v27 = vpack.c.bf16 %v517_v9, %v513_v7  ;;  %v371_v28 = vadd.f32 %v370_v16, %v369_v8  ;;  %v522_v47 = vld [vmem:[#allocation7 + $0x420] sm:$0xff]  ;;  %v524_v49 = vld [vmem:[#allocation7 + $0x430] sm:$0xff]  ;;  %v4786_v52 = vpack.c.bf16 %v525_v36, %v521_v34  ;;  %v527_v53 = vld [vmem:[#allocation7 + $0x448] sm:$0xff] }
  0xec   : > { %4771 = vmatprep.subr.bf16.mxu1 %v4770_v32  ;;  %v376_v32 = vsel %vm374_vm0, %v6604_v23, 0.0  ;;  %v360_v37 = vrot.slane %v359_v22, 2  ;;  %v531_v54 = vld [vmem:[#allocation7 + $0x468] sm:$0xff]  ;;  %v529_v57 = vld [vmem:[#allocation7 + $0x458] sm:$0xff]  ;;  %v4708_v60 = vpack.c.bf16 %v522_v47, %v518_v43  ;;  %v4788_v61 = vpack.c.bf16 %v524_v49, %v520_v48  ;;  %v526_v0 = vld [vmem:[#allocation7 + $0x440] sm:$0xff] }
  0xed   : > { %v377_v39 = vadd.f32 %v376_v32, %v375_v26  ;;  %v372_v42 = vrot.slane %v371_v28, 1  ;;  %v533_v58 = vld [vmem:[#allocation7 + $0x478] sm:$0xff]  ;;  %v530_v1 = vld [vmem:[#allocation7 + $0x460] sm:$0xff]  ;;  %v528_v2 = vld [vmem:[#allocation7 + $0x450] sm:$0xff]  ;;  %v6284_v26 = vmov 0.0  }
  0xee   : > { %4693 = vmatpush1.bf16.msra.mxu0 %v4692_v41  ;;  %v4784_v41 = vpack.c.bf16 %v516_v15, %v512_v14  ;;  %v532_v5 = vld [vmem:[#allocation7 + $0x470] sm:$0xff]  ;;  %v535_v6 = vld [vmem:[#allocation7 + $0x488] sm:$0xff]  ;;  %v537_v8 = vld [vmem:[#allocation7 + $0x498] sm:$0xff]  ;;  %v4712_v11 = vpack.c.bf16 %v530_v1, %v526_v0 }
  0xef   : > { %4773 = vmatpush1.bf16.msra.mxu1 %v4772_v45  ;;  %4695 = vmatprep.subr.bf16.mxu0 %v4694_v46  ;;  %v4706_v45 = vpack.c.bf16 %v523_v30, %v519_v29  ;;  %v361_v46 = vadd.f32 %v360_v37, %v359_v22  ;;  %v379_v50 = vadd.f32 %v378_v33, %v377_v39  ;;  %v539_v7 = vld [vmem:[#allocation7 + $0x4a8] sm:$0xff]  ;;  %v541_v9 = vld [vmem:[#allocation7 + $0x4b8] sm:$0xff]  ;;  %v534_v14 = vld [vmem:[#allocation7 + $0x480] sm:$0xff] }
  0xf0   : > { %4775 = vmatprep.subr.bf16.mxu1 %v4774_v51  ;;  %v373_v51 = vadd.f32 %v372_v42, %v371_v28  ;;  %v4792_v12 = vpack.c.bf16 %v532_v5, %v528_v2  ;;  %v538_v15 = vld [vmem:[#allocation7 + $0x4a0] sm:$0xff]  ;;  %v536_v16 = vld [vmem:[#allocation7 + $0x490] sm:$0xff]  ;;  %v543_v24 = vld [vmem:[#allocation7 + $0x4c8] sm:$0xff] }
  0xf1   : > { %v362_v56 = vrot.slane %v361_v46, 1  ;;  %v540_v22 = vld [vmem:[#allocation7 + $0x4b0] sm:$0xff]  ;;  %v547_v25 = vld [vmem:[#allocation7 + $0x4e8] sm:$0xff]  ;;  %v549_v28 = vld [vmem:[#allocation7 + $0x4f8] sm:$0xff]  ;;  %v4716_v30 = vpack.c.bf16 %v538_v15, %v534_v14 }
  0xf2   : > { %4697 = vmatpush1.bf16.msra.mxu0 %v4696_v59  ;;  %v381_v59 = vadd.f32 %v380_v44, %v379_v50  ;;  %639 = vmatprep.mubr.f32.mxu0 %v373_v51  ;;  %v4796_v32 = vpack.c.bf16 %v540_v22, %v536_v16  ;;  %v4718_v33 = vpack.c.bf16 %v547_v25, %v543_v24  ;;  %v542_v34 = vld [vmem:[#allocation7 + $0x4c0] sm:$0xff]  ;;  %v544_v37 = vld [vmem:[#allocation7 + $0x4d0] sm:$0xff]  ;;  %v880_v42 = vld [vmem:[#allocation5 + $0x28] sm:$0xff] }
  0xf3   : > { %4777 = vmatpush1.bf16.msra.mxu1 %v4776_v62  ;;  %4699 = vmatprep.subr.bf16.mxu0 %v4698_v63  ;;  %v363_v62 = vadd.f32 %v362_v56, %v361_v46  ;;  %v4710_v63 = vpack.c.bf16 %v531_v54, %v527_v53  ;;  %v546_v36 = vld [vmem:[#allocation7 + $0x4e0] sm:$0xff]  ;;  %v878_v44 = vld [vmem:[#allocation5 + $0x18] sm:$0xff]  ;;  %v881_v53 = vld [vmem:[#allocation5 + $0x30] sm:$0xff] }
  0xf4   : > { %4779 = vmatprep.subr.bf16.mxu1 %v4778_v4  ;;  %v383_v3 = vadd.f32 %v382_v55, %v381_v59  ;;  %781 = vmatprep.mubr.f32.mxu1 %v373_v51  ;;  %v4790_v4 = vpack.c.bf16 %v533_v58, %v529_v57  ;;  %v4720_v46 = vpack.c.bf16 %v546_v36, %v542_v34  ;;  %v875_v49 = vld [vmem:[#allocation5] sm:$0xff]  ;;  %v877_v51 = vld [vmem:[#allocation5 + $0x10] sm:$0xff]  ;;  %v884_v54 = vld [vmem:[#allocation5 + $0x48] sm:$0xff] }
  0xf5   : > { %v879_v50 = vld [vmem:[#allocation5 + $0x20] sm:$0xff]  ;;  %v888_v55 = vld [vmem:[#allocation5 + $0x68] sm:$0xff]  ;;  %v886_v57 = vld [vmem:[#allocation5 + $0x58] sm:$0xff] }
  0xf6   : > { %4701 = vmatpush1.bf16.msra.mxu0 %v4700_v13  ;;  %v384_v10 = vrot.slane %v383_v3, 4  ;;  %v4714_v13 = vpack.c.bf16 %v539_v7, %v535_v6  ;;  %v890_v58 = vld [vmem:[#allocation5 + $0x78] sm:$0xff]  ;;  %v4804_v59 = vpack.c.bf16 %v879_v50, %v875_v49  ;;  %v885_v0 = vld [vmem:[#allocation5 + $0x50] sm:$0xff]  ;;  %v900_v15 = vld [vmem:[#allocation5 + $0xc8] sm:$0xff] }
  0xf7   : > { %4781 = vmatpush1.bf16.msra.mxu1 %v4780_v19  ;;  %4703 = vmatprep.subr.bf16.mxu0 %v4702_v21  ;;  %v4794_v21 = vpack.c.bf16 %v541_v9, %v537_v8  ;;  %v4886_v1 = vpack.c.bf16 %v890_v58, %v886_v57  ;;  %v889_v2 = vld [vmem:[#allocation5 + $0x70] sm:$0xff]  ;;  %v894_v5 = vld [vmem:[#allocation5 + $0x98] sm:$0xff]  ;;  %v904_v16 = vld [vmem:[#allocation5 + $0xe8] sm:$0xff] }
  0xf8   : > { %4783 = vmatprep.subr.bf16.mxu1 %v4782_v27  ;;  %v385_v19 = vadd.f32 %v384_v10, %v383_v3  ;;  %v545_v27 = vld [vmem:[#allocation7 + $0x4d8] sm:$0xff]  ;;  %v892_v3 = vld [vmem:[#allocation5 + $0x88] sm:$0xff]  ;;  %v4888_v8 = vpack.c.bf16 %v889_v2, %v885_v0  ;;  %v891_v10 = vld [vmem:[#allocation5 + $0x80] sm:$0xff]  ;;  %v4814_v25 = vpack.c.bf16 %v904_v16, %v900_v15 }
  0xf9   : > { %v4798_v39 = vpack.c.bf16 %v549_v28, %v545_v27  ;;  %v898_v6 = vld [vmem:[#allocation5 + $0xb8] sm:$0xff]  ;;  %v897_v14 = vld [vmem:[#allocation5 + $0xb0] sm:$0xff]  ;;  %v899_v27 = vld [vmem:[#allocation5 + $0xc0] sm:$0xff] }
  0xfa   : > { %4705 = vmatpush1.bf16.msra.mxu0 %v4704_v40  ;;  %v386_v29 = vrot.slane %v385_v19, 2  ;;  %v548_v40 = vld [vmem:[#allocation7 + $0x4f0] sm:$0xff]  ;;  %v903_v28 = vld [vmem:[#allocation5 + $0xe0] sm:$0xff]  ;;  %v912_v34 = vld [vmem:[#allocation5 + $0x128] sm:$0xff] }
  0xfb   : > { %4785 = vmatpush1.bf16.msra.mxu1 %v4784_v41  ;;  %4707 = vmatprep.subr.bf16.mxu0 %v4706_v45  ;;  %v876_v41 = vld [vmem:[#allocation5 + $0x8] sm:$0xff]  ;;  %v882_v45 = vld [vmem:[#allocation5 + $0x38] sm:$0xff]  ;;  %v4800_v47 = vpack.c.bf16 %v548_v40, %v544_v37  ;;  %v907_v40 = vld [vmem:[#allocation5 + $0x100] sm:$0xff] }
  0xfc   : > { %4787 = vmatprep.subr.bf16.mxu1 %v4786_v52  ;;  %v387_v38 = vadd.f32 %v386_v29, %v385_v19  ;;  %v4802_v48 = vpack.c.bf16 %v880_v42, %v876_v41  ;;  %v4882_v52 = vpack.c.bf16 %v882_v45, %v878_v44  ;;  %v902_v19 = vld [vmem:[#allocation5 + $0xd8] sm:$0xff]  ;;  %v901_v29 = vld [vmem:[#allocation5 + $0xd0] sm:$0xff]  ;;  %v911_v41 = vld [vmem:[#allocation5 + $0x120] sm:$0xff] }
  0xfd   : > { %640 = vmatmul.mubr.f32.vlgmr.msra.gmra.mrb[0].mxu0 %v363_v62  ;;  %v910_v36 = vld [vmem:[#allocation5 + $0x118] sm:$0xff]  ;;  %v909_v42 = vld [vmem:[#allocation5 + $0x110] sm:$0xff]  ;;  %v916_v45 = vld [vmem:[#allocation5 + $0x148] sm:$0xff]  ;;  %v4820_v49 = vpack.c.bf16 %v911_v41, %v907_v40 }
  0xfe   : > { %4709 = vmatpush1.bf16.msra.mxu0 %v4708_v60  ;;  %782 = vmatmul.mubr.f32.vlgmr.msra.gmra.mrb[0].mxu1 %v363_v62  ;;  %v388_v43 = vrot.slane %v387_v38, 1  ;;  %v4884_v60 = vpack.c.bf16 %v881_v53, %v877_v51  ;;  %v883_v62 = vld [vmem:[#allocation5 + $0x40] sm:$0xff]  ;;  %v914_v37 = vld [vmem:[#allocation5 + $0x138] sm:$0xff]  ;;  %v913_v44 = vld [vmem:[#allocation5 + $0x130] sm:$0xff] }
  0xff   : > { %4789 = vmatpush1.bf16.msra.mxu1 %v4788_v61  ;;  %4711 = vmatprep.subr.bf16.mxu0 %v4710_v63  ;;  %v4806_v61 = vpack.c.bf16 %v888_v55, %v884_v54  ;;  %v887_v63 = vld [vmem:[#allocation5 + $0x60] sm:$0xff]  ;;  %v4900_v50 = vpack.c.bf16 %v913_v44, %v909_v42  ;;  %v917_v54 = vld [vmem:[#allocation5 + $0x150] sm:$0xff]  ;;  %v924_v57 = vld [vmem:[#allocation5 + $0x188] sm:$0xff] }
 0x100   : > { %4791 = vmatprep.subr.bf16.mxu1 %v4790_v4  ;;  %710 = vmatprep.mubr.f32.mxu0 %v6284_v26  ;;  %v389_v56 = vadd.f32 %v388_v43, %v387_v38  ;;  %v896_v4 = vld [vmem:[#allocation5 + $0xa8] sm:$0xff]  ;;  %v4808_v7 = vpack.c.bf16 %v887_v63, %v883_v62  ;;  %v4816_v38 = vpack.c.bf16 %v903_v28, %v899_v27  ;;  %v919_v53 = vld [vmem:[#allocation5 + $0x160] sm:$0xff]  ;;  %v925_v2 = vld [vmem:[#allocation5 + $0x190] sm:$0xff] }
 0x101   : > { %852 = vmatprep.mubr.f32.mxu1 %v6284_v26  ;;  %v4810_v9 = vpack.c.bf16 %v896_v4, %v892_v3  ;;  %v4898_v43 = vpack.c.bf16 %v914_v37, %v910_v36  ;;  %v928_v58 = vld [vmem:[#allocation5 + $0x1a8] sm:$0xff]  ;;  %v923_v0 = vld [vmem:[#allocation5 + $0x180] sm:$0xff]  ;;  %v929_v4 = vld [vmem:[#allocation5 + $0x1b0] sm:$0xff] }
 0x102   : > { %4713 = vmatpush1.bf16.msra.mxu0 %v4712_v11  ;;  %v895_v11 = vld [vmem:[#allocation5 + $0xa0] sm:$0xff]  ;;  %v4826_v63 = vpack.c.bf16 %v928_v58, %v924_v57  ;;  %v937_v16 = vld [vmem:[#allocation5 + $0x1f0] sm:$0xff]  ;;  %v948_v36 = vld [vmem:[#allocation5 + $0x248] sm:$0xff] }
 0x103   : > { %4793 = vmatpush1.bf16.msra.mxu1 %v4792_v12  ;;  %4715 = vmatprep.subr.bf16.mxu0 %v4714_v13  ;;  %v893_v12 = vld [vmem:[#allocation5 + $0x90] sm:$0xff]  ;;  %v4890_v13 = vpack.c.bf16 %v898_v6, %v894_v5  ;;  %v4812_v22 = vpack.c.bf16 %v895_v11, %v891_v10  ;;  %v932_v5 = vld [vmem:[#allocation5 + $0x1c8] sm:$0xff]  ;;  %v4908_v10 = vpack.c.bf16 %v929_v4, %v925_v2  ;;  %v947_v42 = vld [vmem:[#allocation5 + $0x240] sm:$0xff] }
 0x104   : > { %4795 = vmatprep.subr.bf16.mxu1 %v4794_v21  ;;  %v906_v21 = vld [vmem:[#allocation5 + $0xf8] sm:$0xff]  ;;  %v4892_v24 = vpack.c.bf16 %v897_v14, %v893_v12  ;;  %v936_v6 = vld [vmem:[#allocation5 + $0x1e8] sm:$0xff]  ;;  %v931_v12 = vld [vmem:[#allocation5 + $0x1c0] sm:$0xff] }
 0x105   : > { %v4830_v11 = vpack.c.bf16 %v936_v6, %v932_v5  ;;  %v933_v14 = vld [vmem:[#allocation5 + $0x1d0] sm:$0xff]  ;;  %v952_v37 = vld [vmem:[#allocation5 + $0x268] sm:$0xff]  ;;  %v963_v2 = vld [vmem:[#allocation5 + $0x2c0] sm:$0xff] }
 0x106   : > { %4717 = vmatpush1.bf16.msra.mxu0 %v4716_v30  ;;  %v4894_v30 = vpack.c.bf16 %v906_v21, %v902_v19  ;;  %v940_v19 = vld [vmem:[#allocation5 + $0x208] sm:$0xff]  ;;  %v4912_v27 = vpack.c.bf16 %v937_v16, %v933_v14  ;;  %v4838_v41 = vpack.c.bf16 %v952_v37, %v948_v36  ;;  %v949_v44 = vld [vmem:[#allocation5 + $0x250] sm:$0xff]  ;;  %v971_v14 = vld [vmem:[#allocation5 + $0x300] sm:$0xff] }
 0x107   : > { %4797 = vmatpush1.bf16.msra.mxu1 %v4796_v32  ;;  %4719 = vmatprep.subr.bf16.mxu0 %v4718_v33  ;;  %v905_v32 = vld [vmem:[#allocation5 + $0xf0] sm:$0xff]  ;;  %v908_v33 = vld [vmem:[#allocation5 + $0x108] sm:$0xff] }
 0x108   : > { %4799 = vmatprep.subr.bf16.mxu1 %v4798_v39  ;;  %v4818_v39 = vpack.c.bf16 %v912_v34, %v908_v33  ;;  %v944_v21 = vld [vmem:[#allocation5 + $0x228] sm:$0xff]  ;;  %v945_v34 = vld [vmem:[#allocation5 + $0x230] sm:$0xff] }
 0x109   : > { %v4834_v28 = vpack.c.bf16 %v944_v21, %v940_v19  ;;  %v961_v58 = vld [vmem:[#allocation5 + $0x2b0] sm:$0xff] }
 0x10a   : > { %4721 = vmatpush1.bf16.msra.mxu0 %v4720_v46  ;;  %v920_v46 = vld [vmem:[#allocation5 + $0x168] sm:$0xff]  ;;  %v965_v4 = vld [vmem:[#allocation5 + $0x2d0] sm:$0xff] }
 0x10b   : > { %4801 = vmatpush1.bf16.msra.mxu1 %v4800_v47  ;;  %4803 = vmatprep.subr.bf16.mxu0 %v4802_v48  ;;  %v918_v47 = vld [vmem:[#allocation5 + $0x158] sm:$0xff]  ;;  %v4822_v51 = vpack.c.bf16 %v920_v46, %v916_v45  ;;  %v953_v46 = vld [vmem:[#allocation5 + $0x270] sm:$0xff] }
 0x10c   : > { %4883 = vmatprep.subr.bf16.mxu1 %v4882_v52  ;;  %v922_v48 = vld [vmem:[#allocation5 + $0x178] sm:$0xff]  ;;  %v915_v52 = vld [vmem:[#allocation5 + $0x140] sm:$0xff]  ;;  %v969_v6 = vld [vmem:[#allocation5 + $0x2f0] sm:$0xff] }
 0x10d   : > { %4355 = vmatmul.mubr.msk.f32.vlgmr.msra.gmra.mrb[0].mxu0 %vm374_vm0, %v389_v56  ;;  %v4902_v55 = vpack.c.bf16 %v922_v48, %v918_v47  ;;  %v956_v47 = vld [vmem:[#allocation5 + $0x288] sm:$0xff]  ;;  %v973_v16 = vld [vmem:[#allocation5 + $0x310] sm:$0xff] }
 0x10e   : > { %4356 = vmatmul.mubr.msk.f32.vlgmr.msra.gmra.mrb[0].mxu1 %vm374_vm0, %v389_v56  ;;  %4805 = vmatpush1.bf16.msra.mxu0 %v4804_v59  ;;  %v921_v56 = vld [vmem:[#allocation5 + $0x170] sm:$0xff]  ;;  %v926_v59 = vld [vmem:[#allocation5 + $0x198] sm:$0xff]  ;;  %v960_v48 = vld [vmem:[#allocation5 + $0x2a8] sm:$0xff] }
 0x10f   : > { %4885 = vmatpush1.bf16.msra.mxu1 %v4884_v60  ;;  %4807 = vmatprep.subr.bf16.mxu0 %v4806_v61  ;;  %v930_v60 = vld [vmem:[#allocation5 + $0x1b8] sm:$0xff]  ;;  %v4824_v61 = vpack.c.bf16 %v919_v53, %v915_v52  ;;  %v4904_v62 = vpack.c.bf16 %v921_v56, %v917_v54  ;;  %v4920_v52 = vpack.c.bf16 %v953_v46, %v949_v44  ;;  %v955_v54 = vld [vmem:[#allocation5 + $0x280] sm:$0xff]  ;;  %v957_v56 = vld [vmem:[#allocation5 + $0x290] sm:$0xff] }
 0x110   : > { %4887 = vmatprep.subr.bf16.mxu1 %v4886_v1  ;;  %1105 = vmatprep.mubr.f32.mxu0 %v6579_v18  ;;  %v927_v1 = vld [vmem:[#allocation5 + $0x1a0] sm:$0xff]  ;;  %v4906_v3 = vpack.c.bf16 %v930_v60, %v926_v59  ;;  %v4842_v53 = vpack.c.bf16 %v960_v48, %v956_v47  ;;  %v964_v59 = vld [vmem:[#allocation5 + $0x2c8] sm:$0xff]  ;;  %v977_v21 = vld [vmem:[#allocation5 + $0x330] sm:$0xff] }
 0x111   : > { %1259 = vmatprep.mubr.f32.mxu1 %v6579_v18  ;;  %v4896_v18 = vpack.c.bf16 %v905_v32, %v901_v29  ;;  %v939_v29 = vld [vmem:[#allocation5 + $0x200] sm:$0xff]  ;;  %v941_v32 = vld [vmem:[#allocation5 + $0x210] sm:$0xff]  ;;  %v968_v60 = vld [vmem:[#allocation5 + $0x2e8] sm:$0xff] }
 0x112   : > { %4809 = vmatpush1.bf16.msra.mxu0 %v4808_v7  ;;  %v934_v7 = vld [vmem:[#allocation5 + $0x1d8] sm:$0xff]  ;;  %v4916_v40 = vpack.c.bf16 %v945_v34, %v941_v32  ;;  %v979_v32 = vld [vmem:[#allocation5 + $0x340] sm:$0xff]  ;;  %v981_v34 = vld [vmem:[#allocation5 + $0x350] sm:$0xff] }
 0x113   : > { %4889 = vmatpush1.bf16.msra.mxu1 %v4888_v8  ;;  %4811 = vmatprep.subr.bf16.mxu0 %v4810_v9  ;;  %v938_v8 = vld [vmem:[#allocation5 + $0x1f8] sm:$0xff]  ;;  %v4828_v9 = vpack.c.bf16 %v927_v1, %v923_v0  ;;  %v4924_v0 = vpack.c.bf16 %v961_v58, %v957_v56  ;;  %v4846_v1 = vpack.c.bf16 %v968_v60, %v964_v59  ;;  %v985_v37 = vld [vmem:[#allocation5 + $0x370] sm:$0xff]  ;;  %v987_v44 = vld [vmem:[#allocation5 + $0x380] sm:$0xff] }
 0x114   : > { %4891 = vmatprep.subr.bf16.mxu1 %v4890_v13  ;;  %v935_v13 = vld [vmem:[#allocation5 + $0x1e0] sm:$0xff]  ;;  %v4910_v15 = vpack.c.bf16 %v938_v8, %v934_v7  ;;  %v972_v7 = vld [vmem:[#allocation5 + $0x308] sm:$0xff]  ;;  %v989_v46 = vld [vmem:[#allocation5 + $0x390] sm:$0xff] }
 0x115   : > { %v976_v8 = vld [vmem:[#allocation5 + $0x328] sm:$0xff]  ;;  %v993_v48 = vld [vmem:[#allocation5 + $0x3b0] sm:$0xff]  ;;  %v995_v56 = vld [vmem:[#allocation5 + $0x3c0] sm:$0xff] }
 0x116   : > { %4813 = vmatpush1.bf16.msra.mxu0 %v4812_v22  ;;  %v942_v22 = vld [vmem:[#allocation5 + $0x218] sm:$0xff]  ;;  %v997_v58 = vld [vmem:[#allocation5 + $0x3d0] sm:$0xff] }
 0x117   : > { %4893 = vmatpush1.bf16.msra.mxu1 %v4892_v24  ;;  %4815 = vmatprep.subr.bf16.mxu0 %v4814_v25  ;;  %v946_v24 = vld [vmem:[#allocation5 + $0x238] sm:$0xff]  ;;  %v4832_v25 = vpack.c.bf16 %v935_v13, %v931_v12  ;;  %v4928_v12 = vpack.c.bf16 %v969_v6, %v965_v4  ;;  %v4850_v13 = vpack.c.bf16 %v976_v8, %v972_v7  ;;  %v1001_v60 = vld [vmem:[#allocation5 + $0x3f0] sm:$0xff]  ;;  %v1003_v4 = vld [vmem:[#allocation5 + $0x400] sm:$0xff] }
 0x118   : > { %4895 = vmatprep.subr.bf16.mxu1 %v4894_v30  ;;  %v943_v30 = vld [vmem:[#allocation5 + $0x220] sm:$0xff]  ;;  %v4914_v33 = vpack.c.bf16 %v946_v24, %v942_v22  ;;  %v980_v22 = vld [vmem:[#allocation5 + $0x348] sm:$0xff]  ;;  %v1005_v6 = vld [vmem:[#allocation5 + $0x410] sm:$0xff] }
 0x119   : > { %v984_v24 = vld [vmem:[#allocation5 + $0x368] sm:$0xff]  ;;  %v1009_v8 = vld [vmem:[#allocation5 + $0x430] sm:$0xff] }
 0x11a   : > { %4817 = vmatpush1.bf16.msra.mxu0 %v4816_v38  ;;  %v950_v38 = vld [vmem:[#allocation5 + $0x258] sm:$0xff] }
 0x11b   : > { %4897 = vmatpush1.bf16.msra.mxu1 %v4896_v18  ;;  %4819 = vmatprep.subr.bf16.mxu0 %v4818_v39  ;;  %v954_v18 = vld [vmem:[#allocation5 + $0x278] sm:$0xff]  ;;  %v4836_v39 = vpack.c.bf16 %v943_v30, %v939_v29  ;;  %v4932_v29 = vpack.c.bf16 %v977_v21, %v973_v16  ;;  %v4854_v30 = vpack.c.bf16 %v984_v24, %v980_v22  ;;  %v1011_v16 = vld [vmem:[#allocation5 + $0x440] sm:$0xff]  ;;  %v1013_v21 = vld [vmem:[#allocation5 + $0x450] sm:$0xff] }
 0x11c   : > { %4899 = vmatprep.subr.bf16.mxu1 %v4898_v43  ;;  %v951_v43 = vld [vmem:[#allocation5 + $0x260] sm:$0xff]  ;;  %v4918_v45 = vpack.c.bf16 %v954_v18, %v950_v38  ;;  %v988_v38 = vld [vmem:[#allocation5 + $0x388] sm:$0xff]  ;;  %v1017_v24 = vld [vmem:[#allocation5 + $0x470] sm:$0xff] }
 0x11d   : > { %v992_v18 = vld [vmem:[#allocation5 + $0x3a8] sm:$0xff] }
 0x11e   : > { %4821 = vmatpush1.bf16.msra.mxu0 %v4820_v49  ;;  %v958_v49 = vld [vmem:[#allocation5 + $0x298] sm:$0xff] }
 0x11f   : > { %4901 = vmatpush1.bf16.msra.mxu1 %v4900_v50  ;;  %4823 = vmatprep.subr.bf16.mxu0 %v4822_v51  ;;  %v962_v50 = vld [vmem:[#allocation5 + $0x2b8] sm:$0xff]  ;;  %v4840_v51 = vpack.c.bf16 %v951_v43, %v947_v42  ;;  %v4936_v42 = vpack.c.bf16 %v985_v37, %v981_v34  ;;  %v4858_v43 = vpack.c.bf16 %v992_v18, %v988_v38  ;;  %v1019_v34 = vld [vmem:[#allocation5 + $0x480] sm:$0xff]  ;;  %v1021_v37 = vld [vmem:[#allocation5 + $0x490] sm:$0xff] }
 0x120   : > { %4903 = vmatprep.subr.bf16.mxu1 %v4902_v55  ;;  %v959_v55 = vld [vmem:[#allocation5 + $0x2a0] sm:$0xff]  ;;  %v4922_v57 = vpack.c.bf16 %v962_v50, %v958_v49  ;;  %v996_v49 = vld [vmem:[#allocation5 + $0x3c8] sm:$0xff]  ;;  %v1025_v18 = vld [vmem:[#allocation5 + $0x4b0] sm:$0xff] }
 0x121   : > { %v1000_v50 = vld [vmem:[#allocation5 + $0x3e8] sm:$0xff] }
 0x122   : > { %4825 = vmatpush1.bf16.msra.mxu0 %v4824_v61  ;;  %v966_v61 = vld [vmem:[#allocation5 + $0x2d8] sm:$0xff] }
 0x123   : > { %4905 = vmatpush1.bf16.msra.mxu1 %v4904_v62  ;;  %4827 = vmatprep.subr.bf16.mxu0 %v4826_v63  ;;  %v970_v62 = vld [vmem:[#allocation5 + $0x2f8] sm:$0xff]  ;;  %v4844_v63 = vpack.c.bf16 %v959_v55, %v955_v54  ;;  %v4940_v54 = vpack.c.bf16 %v993_v48, %v989_v46  ;;  %v4862_v55 = vpack.c.bf16 %v1000_v50, %v996_v49  ;;  %v1031_v46 = vld [vmem:[#allocation5 + $0x4e0] sm:$0xff]  ;;  %v1033_v49 = vld [vmem:[#allocation5 + $0x4f0] sm:$0xff] }
 0x124   : > { %4907 = vmatprep.subr.bf16.mxu1 %v4906_v3  ;;  %v967_v3 = vld [vmem:[#allocation5 + $0x2e0] sm:$0xff]  ;;  %v4926_v5 = vpack.c.bf16 %v970_v62, %v966_v61  ;;  %v1004_v61 = vld [vmem:[#allocation5 + $0x408] sm:$0xff] }
 0x125   : > { %v1008_v62 = vld [vmem:[#allocation5 + $0x428] sm:$0xff] }
 0x126   : > { %4829 = vmatpush1.bf16.msra.mxu0 %v4828_v9  ;;  %v974_v9 = vld [vmem:[#allocation5 + $0x318] sm:$0xff]  ;;  %v1363_v50 = vld [vmem:[#allocation5 + $0x528] sm:$0xff] }
 0x127   : > { %4909 = vmatpush1.bf16.msra.mxu1 %v4908_v10  ;;  %4831 = vmatprep.subr.bf16.mxu0 %v4830_v11  ;;  %v978_v10 = vld [vmem:[#allocation5 + $0x338] sm:$0xff]  ;;  %v4848_v11 = vpack.c.bf16 %v967_v3, %v963_v2  ;;  %v4944_v2 = vpack.c.bf16 %v1001_v60, %v997_v58  ;;  %v4866_v3 = vpack.c.bf16 %v1008_v62, %v1004_v61  ;;  %v1367_v60 = vld [vmem:[#allocation5 + $0x548] sm:$0xff] }
 0x128   : > { %4911 = vmatprep.subr.bf16.mxu1 %v4910_v15  ;;  %v975_v15 = vld [vmem:[#allocation5 + $0x320] sm:$0xff]  ;;  %v4930_v19 = vpack.c.bf16 %v978_v10, %v974_v9  ;;  %v1012_v9 = vld [vmem:[#allocation5 + $0x448] sm:$0xff]  ;;  %v1369_v62 = vld [vmem:[#allocation5 + $0x558] sm:$0xff] }
 0x129   : > { %v1016_v10 = vld [vmem:[#allocation5 + $0x468] sm:$0xff] }
 0x12a   : > { %4833 = vmatpush1.bf16.msra.mxu0 %v4832_v25  ;;  %v982_v25 = vld [vmem:[#allocation5 + $0x358] sm:$0xff]  ;;  %v1371_v61 = vld [vmem:[#allocation5 + $0x568] sm:$0xff] }
 0x12b   : > { %4913 = vmatpush1.bf16.msra.mxu1 %v4912_v27  ;;  %4835 = vmatprep.subr.bf16.mxu0 %v4834_v28  ;;  %v986_v27 = vld [vmem:[#allocation5 + $0x378] sm:$0xff]  ;;  %v4852_v28 = vpack.c.bf16 %v975_v15, %v971_v14  ;;  %v4948_v14 = vpack.c.bf16 %v1009_v8, %v1005_v6  ;;  %v4870_v15 = vpack.c.bf16 %v1016_v10, %v1012_v9  ;;  %v1375_v8 = vld [vmem:[#allocation5 + $0x588] sm:$0xff] }
 0x12c   : > { %4915 = vmatprep.subr.bf16.mxu1 %v4914_v33  ;;  %v983_v33 = vld [vmem:[#allocation5 + $0x360] sm:$0xff]  ;;  %v4934_v36 = vpack.c.bf16 %v986_v27, %v982_v25  ;;  %v1020_v25 = vld [vmem:[#allocation5 + $0x488] sm:$0xff]  ;;  %v1377_v10 = vld [vmem:[#allocation5 + $0x598] sm:$0xff] }
 0x12d   : > { %v1024_v27 = vld [vmem:[#allocation5 + $0x4a8] sm:$0xff] }
 0x12e   : > { %4837 = vmatpush1.bf16.msra.mxu0 %v4836_v39  ;;  %v990_v39 = vld [vmem:[#allocation5 + $0x398] sm:$0xff]  ;;  %v1379_v9 = vld [vmem:[#allocation5 + $0x5a8] sm:$0xff] }
 0x12f   : > { %4917 = vmatpush1.bf16.msra.mxu1 %v4916_v40  ;;  %4839 = vmatprep.subr.bf16.mxu0 %v4838_v41  ;;  %v994_v40 = vld [vmem:[#allocation5 + $0x3b8] sm:$0xff]  ;;  %v4856_v41 = vpack.c.bf16 %v983_v33, %v979_v32  ;;  %v4952_v32 = vpack.c.bf16 %v1017_v24, %v1013_v21  ;;  %v4874_v33 = vpack.c.bf16 %v1024_v27, %v1020_v25  ;;  %v1378_v24 = vld [vmem:[#allocation5 + $0x5a0] sm:$0xff]  ;;  %v1376_v25 = vld [vmem:[#allocation5 + $0x590] sm:$0xff] }
 0x130   : > { %4919 = vmatprep.subr.bf16.mxu1 %v4918_v45  ;;  %v991_v45 = vld [vmem:[#allocation5 + $0x3a0] sm:$0xff]  ;;  %v4938_v47 = vpack.c.bf16 %v994_v40, %v990_v39  ;;  %v1028_v39 = vld [vmem:[#allocation5 + $0x4c8] sm:$0xff]  ;;  %v4970_v21 = vpack.c.bf16 %v1379_v9, %v1375_v8  ;;  %v1412_v9 = vld [vmem:[#allocation5 + $0x6b0] sm:$0xff] }
 0x131   : > { %v1032_v40 = vld [vmem:[#allocation5 + $0x4e8] sm:$0xff] }
 0x132   : > { %4841 = vmatpush1.bf16.msra.mxu0 %v4840_v51  ;;  %v998_v51 = vld [vmem:[#allocation5 + $0x3d8] sm:$0xff] }
 0x133   : > { %4921 = vmatpush1.bf16.msra.mxu1 %v4920_v52  ;;  %4843 = vmatprep.subr.bf16.mxu0 %v4842_v53  ;;  %v1002_v52 = vld [vmem:[#allocation5 + $0x3f8] sm:$0xff]  ;;  %v4860_v53 = vpack.c.bf16 %v991_v45, %v987_v44  ;;  %v4878_v44 = vpack.c.bf16 %v1032_v40, %v1028_v39  ;;  %v1027_v45 = vld [vmem:[#allocation5 + $0x4c0] sm:$0xff]  ;;  %v1384_v39 = vld [vmem:[#allocation5 + $0x5d0] sm:$0xff] }
 0x134   : > { %4923 = vmatprep.subr.bf16.mxu1 %v4922_v57  ;;  %v999_v57 = vld [vmem:[#allocation5 + $0x3e0] sm:$0xff]  ;;  %v4942_v59 = vpack.c.bf16 %v1002_v52, %v998_v51  ;;  %v1361_v51 = vld [vmem:[#allocation5 + $0x518] sm:$0xff] }
 0x135   : > { %v1365_v52 = vld [vmem:[#allocation5 + $0x538] sm:$0xff] }
 0x136   : > { %4845 = vmatpush1.bf16.msra.mxu0 %v4844_v63  ;;  %v1006_v63 = vld [vmem:[#allocation5 + $0x418] sm:$0xff]  ;;  %v5042_v58 = vpack.c.bf16 %v1365_v52, %v1361_v51  ;;  %v1399_v51 = vld [vmem:[#allocation5 + $0x648] sm:$0xff] }
 0x137   : > { %4925 = vmatpush1.bf16.msra.mxu1 %v4924_v0  ;;  %4847 = vmatprep.subr.bf16.mxu0 %v4846_v1  ;;  %v1010_v0 = vld [vmem:[#allocation5 + $0x438] sm:$0xff]  ;;  %v4864_v1 = vpack.c.bf16 %v999_v57, %v995_v56  ;;  %v1362_v56 = vld [vmem:[#allocation5 + $0x520] sm:$0xff]  ;;  %v1360_v57 = vld [vmem:[#allocation5 + $0x510] sm:$0xff] }
 0x138   : > { %4927 = vmatprep.subr.bf16.mxu1 %v4926_v5  ;;  %v1007_v5 = vld [vmem:[#allocation5 + $0x420] sm:$0xff]  ;;  %v4946_v7 = vpack.c.bf16 %v1010_v0, %v1006_v63  ;;  %v1373_v63 = vld [vmem:[#allocation5 + $0x578] sm:$0xff]  ;;  %v1403_v52 = vld [vmem:[#allocation5 + $0x668] sm:$0xff] }
 0x139   : > { %v5046_v6 = vpack.c.bf16 %v1373_v63, %v1369_v62  ;;  %v1407_v62 = vld [vmem:[#allocation5 + $0x688] sm:$0xff] }
 0x13a   : > { %4849 = vmatpush1.bf16.msra.mxu0 %v4848_v11  ;;  %v1014_v11 = vld [vmem:[#allocation5 + $0x458] sm:$0xff]  ;;  %v1411_v63 = vld [vmem:[#allocation5 + $0x6a8] sm:$0xff] }
 0x13b   : > { %4929 = vmatpush1.bf16.msra.mxu1 %v4928_v12  ;;  %4851 = vmatprep.subr.bf16.mxu0 %v4850_v13  ;;  %v1018_v12 = vld [vmem:[#allocation5 + $0x478] sm:$0xff]  ;;  %v4868_v13 = vpack.c.bf16 %v1007_v5, %v1003_v4  ;;  %v1370_v4 = vld [vmem:[#allocation5 + $0x560] sm:$0xff]  ;;  %v1368_v5 = vld [vmem:[#allocation5 + $0x550] sm:$0xff] }
 0x13c   : > { %4931 = vmatprep.subr.bf16.mxu1 %v4930_v19  ;;  %v1015_v19 = vld [vmem:[#allocation5 + $0x460] sm:$0xff]  ;;  %v4950_v22 = vpack.c.bf16 %v1018_v12, %v1014_v11  ;;  %v1381_v11 = vld [vmem:[#allocation5 + $0x5b8] sm:$0xff] }
 0x13d   : > { %v6003_v12 = vld [vmem:[%s6560_s30 + $0x8] sm:$0xff]  ;;  %v5050_v27 = vpack.c.bf16 %v1381_v11, %v1377_v10  ;;  %v1415_v10 = vld [vmem:[#allocation5 + $0x6c8] sm:$0xff] }
 0x13e   : > { %4853 = vmatpush1.bf16.msra.mxu0 %v4852_v28  ;;  %v1022_v28 = vld [vmem:[#allocation5 + $0x498] sm:$0xff]  ;;  %v1419_v11 = vld [vmem:[#allocation5 + $0x6e8] sm:$0xff] }
 0x13f   : > { %4933 = vmatpush1.bf16.msra.mxu1 %v4932_v29  ;;  %4855 = vmatprep.subr.bf16.mxu0 %v4854_v30  ;;  %v1026_v29 = vld [vmem:[#allocation5 + $0x4b8] sm:$0xff]  ;;  %v4872_v30 = vpack.c.bf16 %v1015_v19, %v1011_v16 }
 0x140   : > { %4935 = vmatprep.subr.bf16.mxu1 %v4934_v36  ;;  %v1023_v36 = vld [vmem:[#allocation5 + $0x4a0] sm:$0xff]  ;;  %v4954_v38 = vpack.c.bf16 %v1026_v29, %v1022_v28  ;;  %v1380_v28 = vld [vmem:[#allocation5 + $0x5b0] sm:$0xff]  ;;  %v1383_v29 = vld [vmem:[#allocation5 + $0x5c8] sm:$0xff] }
 0x142   : > { %4857 = vmatpush1.bf16.msra.mxu0 %v4856_v41  ;;  %v1030_v41 = vld [vmem:[#allocation5 + $0x4d8] sm:$0xff] }
 0x143   : > { %4937 = vmatpush1.bf16.msra.mxu1 %v4936_v42  ;;  %4859 = vmatprep.subr.bf16.mxu0 %v4858_v43  ;;  %v1034_v42 = vld [vmem:[#allocation5 + $0x4f8] sm:$0xff]  ;;  %v4956_v43 = vpack.c.bf16 %v1025_v18, %v1021_v37  ;;  %v1386_v18 = vld [vmem:[#allocation5 + $0x5e0] sm:$0xff] }
 0x144   : > { %4939 = vmatprep.subr.bf16.mxu1 %v4938_v47  ;;  %v1029_v47 = vld [vmem:[#allocation5 + $0x4d0] sm:$0xff]  ;;  %v4958_v48 = vpack.c.bf16 %v1034_v42, %v1030_v41  ;;  %v1391_v42 = vld [vmem:[#allocation5 + $0x608] sm:$0xff] }
 0x145   : > { %v1388_v41 = vld [vmem:[#allocation5 + $0x5f0] sm:$0xff] }
 0x146   : > { %4861 = vmatpush1.bf16.msra.mxu0 %v4860_v53  ;;  %v4960_v53 = vpack.c.bf16 %v1033_v49, %v1029_v47  ;;  %v1390_v47 = vld [vmem:[#allocation5 + $0x600] sm:$0xff]  ;;  %v1392_v49 = vld [vmem:[#allocation5 + $0x610] sm:$0xff] }
 0x147   : > { %4941 = vmatpush1.bf16.msra.mxu1 %v4940_v54  ;;  %4863 = vmatprep.subr.bf16.mxu0 %v4862_v55  ;;  %v1358_v55 = vld [vmem:[#allocation5 + $0x500] sm:$0xff] }
 0x148   : > { %4943 = vmatprep.subr.bf16.mxu1 %v4942_v59  ;;  %v1364_v59 = vld [vmem:[#allocation5 + $0x530] sm:$0xff]  ;;  %v4964_v0 = vpack.c.bf16 %v1362_v56, %v1358_v55  ;;  %v4982_v56 = vpack.c.bf16 %v1403_v52, %v1399_v51  ;;  %v1443_v51 = vld [vmem:[#allocation5 + $0x7a8] sm:$0xff]  ;;  %v1441_v52 = vld [vmem:[#allocation5 + $0x798] sm:$0xff] }
 0x14a   : > { %4865 = vmatpush1.bf16.msra.mxu0 %v4864_v1  ;;  %v5044_v1 = vpack.c.bf16 %v1364_v59, %v1360_v57  ;;  %v1398_v57 = vld [vmem:[#allocation5 + $0x640] sm:$0xff]  ;;  %v1400_v59 = vld [vmem:[#allocation5 + $0x650] sm:$0xff] }
 0x14b   : > { %4945 = vmatpush1.bf16.msra.mxu1 %v4944_v2  ;;  %4867 = vmatprep.subr.bf16.mxu0 %v4866_v3  ;;  %v4966_v2 = vpack.c.bf16 %v1371_v61, %v1367_v60  ;;  %v1366_v3 = vld [vmem:[#allocation5 + $0x540] sm:$0xff]  ;;  %v1404_v61 = vld [vmem:[#allocation5 + $0x670] sm:$0xff] }
 0x14c   : > { %4947 = vmatprep.subr.bf16.mxu1 %v4946_v7  ;;  %v1372_v7 = vld [vmem:[#allocation5 + $0x570] sm:$0xff]  ;;  %v4968_v16 = vpack.c.bf16 %v1370_v4, %v1366_v3  ;;  %v5064_v3 = vpack.c.bf16 %v1404_v61, %v1400_v59  ;;  %v4986_v4 = vpack.c.bf16 %v1411_v63, %v1407_v62  ;;  %v1447_v61 = vld [vmem:[#allocation5 + $0x7c8] sm:$0xff]  ;;  %v1449_v63 = vld [vmem:[#allocation5 + $0x7d8] sm:$0xff] }
 0x14d   : > { %1106 = vmatmul.mubr.f32.vlgmr.msra.gmra.mrb[2].mxu0 %v6589_v31  ;;  %v5048_v19 = vpack.c.bf16 %v1372_v7, %v1368_v5  ;;  %v1406_v5 = vld [vmem:[#allocation5 + $0x680] sm:$0xff]  ;;  %v1408_v7 = vld [vmem:[#allocation5 + $0x690] sm:$0xff]  ;;  %v1451_v62 = vld [vmem:[#allocation5 + $0x7e8] sm:$0xff] }
 0x14e   : > { %4869 = vmatpush1.bf16.msra.mxu0 %v4868_v13  ;;  %1260 = vmatmul.mubr.f32.vlgmr.msra.gmra.mrb[2].mxu1 %v6589_v31  ;;  %v4876_v31 = vpack.c.bf16 %v1023_v36, %v1019_v34  ;;  %v1529_v13 = vrot.slane %v6003_v12, 6  ;;  %v5052_v36 = vpack.c.bf16 %v1380_v28, %v1376_v25  ;;  %v1417_v12 = vld [vmem:[#allocation5 + $0x6d8] sm:$0xff]  ;;  %v1416_v25 = vld [vmem:[#allocation5 + $0x6d0] sm:$0xff] }
 0x14f   : > { %4949 = vmatpush1.bf16.msra.mxu1 %v4948_v14  ;;  %4871 = vmatprep.subr.bf16.mxu0 %v4870_v15  ;;  %v6634_v14 = vld [vmem:[%s6560_s30 + $0x20] sm:$0xff] }
 0x150   : > { %4951 = vmatprep.subr.bf16.mxu1 %v4950_v22  ;;  %1111 = vmatprep.mubr.f32.mxu0 %v6582_v20  ;;  %v1530_v15 = vrot.slane %v6634_v14, 6  ;;  %v1374_v22 = vld [vmem:[#allocation5 + $0x580] sm:$0xff]  ;;  %v1420_v28 = vld [vmem:[#allocation5 + $0x6f0] sm:$0xff] }
 0x151   : > { %1265 = vmatprep.mubr.f32.mxu1 %v6582_v20  ;;  %1112 = vmatmul.mubr.f32.gmra.mrb[4].mxu0 %v6592_v35  ;;  %v1359_v20 = vld [vmem:[#allocation5 + $0x508] sm:$0xff]  ;;  %v4972_v34 = vpack.c.bf16 %v1378_v24, %v1374_v22  ;;  %v1414_v22 = vld [vmem:[#allocation5 + $0x6c0] sm:$0xff] }
 0x152   : > { %4873 = vmatpush1.bf16.msra.mxu0 %v4872_v30  ;;  %1266 = vmatmul.mubr.f32.gmra.mrb[4].mxu1 %v6592_v35  ;;  %v4880_v35 = vpack.c.bf16 %v1031_v46, %v1027_v45  ;;  %v4962_v54 = vpack.c.bf16 %v1363_v50, %v1359_v20  ;;  %v1387_v30 = vld [vmem:[#allocation5 + $0x5e8] sm:$0xff]  ;;  %v1396_v50 = vld [vmem:[#allocation5 + $0x630] sm:$0xff]  ;;  %v1418_v24 = vld [vmem:[#allocation5 + $0x6e0] sm:$0xff] }
 0x153   : > { %4953 = vmatpush1.bf16.msra.mxu1 %v4952_v32  ;;  %4875 = vmatprep.subr.bf16.mxu0 %v4874_v33  ;;  %v1385_v32 = vld [vmem:[#allocation5 + $0x5d8] sm:$0xff]  ;;  %v4974_v37 = vpack.c.bf16 %v1387_v30, %v1383_v29  ;;  %v5060_v55 = vpack.c.bf16 %v1396_v50, %v1392_v49  ;;  %v1423_v29 = vld [vmem:[#allocation5 + $0x708] sm:$0xff] }
 0x154   : > { %4955 = vmatprep.subr.bf16.mxu1 %v4954_v38  ;;  %1182 = vmatprep.mubr.f32.mxu0 %v6284_v26  ;;  %v1389_v33 = vld [vmem:[#allocation5 + $0x5f8] sm:$0xff]  ;;  %v1382_v38 = vld [vmem:[#allocation5 + $0x5c0] sm:$0xff]  ;;  %v1427_v30 = vld [vmem:[#allocation5 + $0x728] sm:$0xff] }
 0x155   : > { %1336 = vmatprep.mubr.f32.mxu1 %v6284_v26  ;;  %v5054_v40 = vpack.c.bf16 %v1389_v33, %v1385_v32  ;;  %v4976_v45 = vpack.c.bf16 %v1386_v18, %v1382_v38  ;;  %v1425_v32 = vld [vmem:[#allocation5 + $0x718] sm:$0xff]  ;;  %v1426_v38 = vld [vmem:[#allocation5 + $0x720] sm:$0xff]  ;;  %v1424_v18 = vld [vmem:[#allocation5 + $0x710] sm:$0xff] }
 0x156   : > { %4877 = vmatpush1.bf16.msra.mxu0 %v4876_v31  ;;  %v1395_v31 = vld [vmem:[#allocation5 + $0x628] sm:$0xff]  ;;  %v1429_v33 = vld [vmem:[#allocation5 + $0x738] sm:$0xff] }
 0x157   : > { %4957 = vmatpush1.bf16.msra.mxu1 %v4956_v43  ;;  %4879 = vmatprep.subr.bf16.mxu0 %v4878_v44  ;;  %v1393_v43 = vld [vmem:[#allocation5 + $0x618] sm:$0xff]  ;;  %v4978_v46 = vpack.c.bf16 %v1395_v31, %v1391_v42  ;;  %v1435_v42 = vld [vmem:[#allocation5 + $0x768] sm:$0xff] }
 0x158   : > { %4959 = vmatprep.subr.bf16.mxu1 %v4958_v48  ;;  %v1397_v44 = vld [vmem:[#allocation5 + $0x638] sm:$0xff]  ;;  %v1394_v48 = vld [vmem:[#allocation5 + $0x620] sm:$0xff]  ;;  %v1439_v50 = vld [vmem:[#allocation5 + $0x788] sm:$0xff] }
 0x159   : > { %v5058_v20 = vpack.c.bf16 %v1397_v44, %v1393_v43  ;;  %v1433_v31 = vld [vmem:[#allocation5 + $0x758] sm:$0xff] }
 0x15a   : > { %4881 = vmatpush1.bf16.msra.mxu0 %v4880_v35  ;;  %v1401_v35 = vld [vmem:[#allocation5 + $0x658] sm:$0xff] }
 0x15b   : > { %4961 = vmatpush1.bf16.msra.mxu1 %v4960_v53  ;;  %4963 = vmatprep.subr.bf16.mxu0 %v4962_v54  ;;  %v1405_v53 = vld [vmem:[#allocation5 + $0x678] sm:$0xff]  ;;  %v4980_v54 = vpack.c.bf16 %v1394_v48, %v1390_v47  ;;  %v1434_v47 = vld [vmem:[#allocation5 + $0x760] sm:$0xff]  ;;  %v1432_v48 = vld [vmem:[#allocation5 + $0x750] sm:$0xff] }
 0x15c   : > { %5043 = vmatprep.subr.bf16.mxu1 %v5042_v58  ;;  %v1402_v58 = vld [vmem:[#allocation5 + $0x660] sm:$0xff]  ;;  %v5062_v60 = vpack.c.bf16 %v1405_v53, %v1401_v35  ;;  %v1437_v43 = vld [vmem:[#allocation5 + $0x778] sm:$0xff] }
 0x15d   : > { %4357 = vmatmul.mubr.msk.f32.vlgmr.msra.gmra.mrb[2].mxu0 %vm374_vm0, %v6601_v17  ;;  %v5078_v49 = vpack.c.bf16 %v1437_v43, %v1433_v31  ;;  %v1445_v35 = vld [vmem:[#allocation5 + $0x7b8] sm:$0xff] }
 0x15e   : > { %4359 = vmatmul.mubr.msk.f32.vlgmr.msra.gmra.mrb[2].mxu1 %vm374_vm0, %v6601_v17  ;;  %4965 = vmatpush1.bf16.msra.mxu0 %v4964_v0  ;;  %v1531_v17 = vsel %vm1525_vm1, %v1529_v13, %v1530_v15  ;;  %v1409_v0 = vld [vmem:[#allocation5 + $0x698] sm:$0xff]  ;;  %v5082_v59 = vpack.c.bf16 %v1445_v35, %v1441_v52 }
 0x15f   : > { %5045 = vmatpush1.bf16.msra.mxu1 %v5044_v1  ;;  %4967 = vmatprep.subr.bf16.mxu0 %v4966_v2  ;;  %v1413_v1 = vld [vmem:[#allocation5 + $0x6b8] sm:$0xff]  ;;  %v4984_v2 = vpack.c.bf16 %v1402_v58, %v1398_v57  ;;  %v1442_v57 = vld [vmem:[#allocation5 + $0x7a0] sm:$0xff]  ;;  %v1440_v58 = vld [vmem:[#allocation5 + $0x790] sm:$0xff] }
 0x160   : > { %5047 = vmatprep.subr.bf16.mxu1 %v5046_v6  ;;  %1188 = vmatprep.mubr.f32.mxu0 %v6284_v26  ;;  %v1410_v6 = vld [vmem:[#allocation5 + $0x6a0] sm:$0xff]  ;;  %v5066_v8 = vpack.c.bf16 %v1413_v1, %v1409_v0  ;;  %v1421_v13 = vld [vmem:[#allocation5 + $0x6f8] sm:$0xff] }
 0x161   : > { %1342 = vmatprep.mubr.f32.mxu1 %v6284_v26  ;;  %4358 = vmatmul.mubr.msk.f32.gmra.mrb[4].mxu0 %vm374_vm0, %v6604_v23  ;;  %v1453_v0 = vld [vmem:[#allocation5 + $0x7f8] sm:$0xff] }
 0x162   : > { %4969 = vmatpush1.bf16.msra.mxu0 %v4968_v16  ;;  %4360 = vmatmul.mubr.msk.f32.gmra.mrb[4].mxu1 %vm374_vm0, %v6604_v23  ;;  %v5056_v23 = vpack.c.bf16 %v1388_v41, %v1384_v39  ;;  %v4988_v16 = vpack.c.bf16 %v1410_v6, %v1406_v5  ;;  %v5074_v39 = vpack.c.bf16 %v1429_v33, %v1425_v32  ;;  %v1431_v41 = vld [vmem:[#allocation5 + $0x748] sm:$0xff]  ;;  %v1450_v5 = vld [vmem:[#allocation5 + $0x7e0] sm:$0xff]  ;;  %v1448_v6 = vld [vmem:[#allocation5 + $0x7d0] sm:$0xff] }
 0x163   : > { %5049 = vmatpush1.bf16.msra.mxu1 %v5048_v19  ;;  %4971 = vmatprep.subr.bf16.mxu0 %v4970_v21  ;;  %v5068_v19 = vpack.c.bf16 %v1412_v9, %v1408_v7  ;;  %v4990_v21 = vpack.c.bf16 %v1419_v11, %v1415_v10  ;;  %v5086_v7 = vpack.c.bf16 %v1453_v0, %v1449_v63  ;;  %v1455_v9 = vld [vmem:[#allocation5 + $0x808] sm:$0xff]  ;;  %v1457_v11 = vld [vmem:[#allocation5 + $0x818] sm:$0xff] }
 0x164   : > { %5051 = vmatprep.subr.bf16.mxu1 %v5050_v27  ;;  %1613 = vmatprep.mubr.f32.mxu0 %v1531_v17  ;;  %v5070_v27 = vpack.c.bf16 %v1421_v13, %v1417_v12  ;;  %v1459_v10 = vld [vmem:[#allocation5 + $0x828] sm:$0xff]  ;;  %v1461_v12 = vld [vmem:[#allocation5 + $0x838] sm:$0xff] }
 0x165   : > { %1767 = vmatprep.mubr.f32.mxu1 %v1531_v17  ;;  %v4992_v17 = vpack.c.bf16 %v1418_v24, %v1414_v22  ;;  %v1458_v22 = vld [vmem:[#allocation5 + $0x820] sm:$0xff]  ;;  %v1456_v24 = vld [vmem:[#allocation5 + $0x810] sm:$0xff]  ;;  %v1469_v32 = vld [vmem:[#allocation5 + $0x878] sm:$0xff] }
 0x166   : > { %4973 = vmatpush1.bf16.msra.mxu0 %v4972_v34  ;;  %v5072_v34 = vpack.c.bf16 %v1420_v28, %v1416_v25  ;;  %v5090_v25 = vpack.c.bf16 %v1461_v12, %v1457_v11  ;;  %v1463_v28 = vld [vmem:[#allocation5 + $0x848] sm:$0xff]  ;;  %v1477_v31 = vld [vmem:[#allocation5 + $0x8b8] sm:$0xff]  ;;  %v1492_v11 = vld [vmem:[#allocation5 + $0x930] sm:$0xff] }
 0x167   : > { %5053 = vmatpush1.bf16.msra.mxu1 %v5052_v36  ;;  %4975 = vmatprep.subr.bf16.mxu0 %v4974_v37  ;;  %v4994_v36 = vpack.c.bf16 %v1427_v30, %v1423_v29  ;;  %v1422_v37 = vld [vmem:[#allocation5 + $0x700] sm:$0xff]  ;;  %v1467_v29 = vld [vmem:[#allocation5 + $0x868] sm:$0xff]  ;;  %v1465_v30 = vld [vmem:[#allocation5 + $0x858] sm:$0xff] }
 0x168   : > { %5055 = vmatprep.subr.bf16.mxu1 %v5054_v40  ;;  %v1428_v40 = vld [vmem:[#allocation5 + $0x730] sm:$0xff]  ;;  %v4996_v44 = vpack.c.bf16 %v1426_v38, %v1422_v37  ;;  %v1466_v37 = vld [vmem:[#allocation5 + $0x860] sm:$0xff]  ;;  %v1485_v52 = vld [vmem:[#allocation5 + $0x8f8] sm:$0xff] }
 0x169   : > { %v1464_v38 = vld [vmem:[#allocation5 + $0x850] sm:$0xff]  ;;  %v1493_v63 = vld [vmem:[#allocation5 + $0x938] sm:$0xff]  ;;  %v1495_v12 = vld [vmem:[#allocation5 + $0x948] sm:$0xff] }
 0x16a   : > { %4977 = vmatpush1.bf16.msra.mxu0 %v4976_v45  ;;  %v5076_v45 = vpack.c.bf16 %v1428_v40, %v1424_v18  ;;  %v5094_v18 = vpack.c.bf16 %v1469_v32, %v1465_v30  ;;  %v1471_v40 = vld [vmem:[#allocation5 + $0x888] sm:$0xff]  ;;  %v1494_v32 = vld [vmem:[#allocation5 + $0x940] sm:$0xff] }
 0x16b   : > { %5057 = vmatpush1.bf16.msra.mxu1 %v5056_v23  ;;  %4979 = vmatprep.subr.bf16.mxu0 %v4978_v46  ;;  %v4998_v23 = vpack.c.bf16 %v1435_v42, %v1431_v41  ;;  %v1430_v46 = vld [vmem:[#allocation5 + $0x740] sm:$0xff]  ;;  %v1475_v41 = vld [vmem:[#allocation5 + $0x8a8] sm:$0xff]  ;;  %v1473_v42 = vld [vmem:[#allocation5 + $0x898] sm:$0xff] }
 0x16c   : > { %5059 = vmatprep.subr.bf16.mxu1 %v5058_v20  ;;  %v1436_v20 = vld [vmem:[#allocation5 + $0x770] sm:$0xff]  ;;  %v5000_v53 = vpack.c.bf16 %v1434_v47, %v1430_v46  ;;  %v1474_v46 = vld [vmem:[#allocation5 + $0x8a0] sm:$0xff] }
 0x16d   : > { %v1472_v47 = vld [vmem:[#allocation5 + $0x890] sm:$0xff] }
 0x16e   : > { %4981 = vmatpush1.bf16.msra.mxu0 %v4980_v54  ;;  %v5080_v54 = vpack.c.bf16 %v1436_v20, %v1432_v48  ;;  %v5098_v48 = vpack.c.bf16 %v1477_v31, %v1473_v42  ;;  %v1479_v20 = vld [vmem:[#allocation5 + $0x8c8] sm:$0xff] }
 0x16f   : > { %5061 = vmatpush1.bf16.msra.mxu1 %v5060_v55  ;;  %4983 = vmatprep.subr.bf16.mxu0 %v4982_v56  ;;  %v5002_v55 = vpack.c.bf16 %v1443_v51, %v1439_v50  ;;  %v1438_v56 = vld [vmem:[#allocation5 + $0x780] sm:$0xff]  ;;  %v1483_v50 = vld [vmem:[#allocation5 + $0x8e8] sm:$0xff]  ;;  %v1481_v51 = vld [vmem:[#allocation5 + $0x8d8] sm:$0xff] }
 0x170   : > { %5063 = vmatprep.subr.bf16.mxu1 %v5062_v60  ;;  %v1444_v60 = vld [vmem:[#allocation5 + $0x7b0] sm:$0xff]  ;;  %v5004_v1 = vpack.c.bf16 %v1442_v57, %v1438_v56  ;;  %v1482_v56 = vld [vmem:[#allocation5 + $0x8e0] sm:$0xff] }
 0x171   : > { %v1480_v57 = vld [vmem:[#allocation5 + $0x8d0] sm:$0xff] }
 0x172   : > { %4985 = vmatpush1.bf16.msra.mxu0 %v4984_v2  ;;  %v5084_v2 = vpack.c.bf16 %v1444_v60, %v1440_v58  ;;  %v5102_v58 = vpack.c.bf16 %v1485_v52, %v1481_v51  ;;  %v1487_v60 = vld [vmem:[#allocation5 + $0x908] sm:$0xff] }
 0x173   : > { %5065 = vmatpush1.bf16.msra.mxu1 %v5064_v3  ;;  %4987 = vmatprep.subr.bf16.mxu0 %v4986_v4  ;;  %v5006_v3 = vpack.c.bf16 %v1451_v62, %v1447_v61  ;;  %v1446_v4 = vld [vmem:[#allocation5 + $0x7c0] sm:$0xff]  ;;  %v1491_v61 = vld [vmem:[#allocation5 + $0x928] sm:$0xff]  ;;  %v1489_v62 = vld [vmem:[#allocation5 + $0x918] sm:$0xff] }
 0x174   : > { %5067 = vmatprep.subr.bf16.mxu1 %v5066_v8  ;;  %v1452_v8 = vld [vmem:[#allocation5 + $0x7f0] sm:$0xff]  ;;  %v5008_v13 = vpack.c.bf16 %v1450_v5, %v1446_v4 }
 0x176   : > { %4989 = vmatpush1.bf16.msra.mxu0 %v4988_v16  ;;  %v5088_v16 = vpack.c.bf16 %v1452_v8, %v1448_v6  ;;  %v5026_v6 = vpack.c.bf16 %v1491_v61, %v1487_v60  ;;  %v1490_v8 = vld [vmem:[#allocation5 + $0x920] sm:$0xff]  ;;  %v1873_v60 = vld [vmem:[#allocation5 + $0xa38] sm:$0xff] }
 0x177   : > { %5069 = vmatpush1.bf16.msra.mxu1 %v5068_v19  ;;  %4991 = vmatprep.subr.bf16.mxu0 %v4990_v21  ;;  %v5010_v19 = vpack.c.bf16 %v1459_v10, %v1455_v9  ;;  %v1454_v21 = vld [vmem:[#allocation5 + $0x800] sm:$0xff]  ;;  %v1488_v9 = vld [vmem:[#allocation5 + $0x910] sm:$0xff]  ;;  %v5106_v10 = vpack.c.bf16 %v1493_v63, %v1489_v62 }
 0x178   : > { %5071 = vmatprep.subr.bf16.mxu1 %v5070_v27  ;;  %v1460_v27 = vld [vmem:[#allocation5 + $0x830] sm:$0xff]  ;;  %v5012_v33 = vpack.c.bf16 %v1458_v22, %v1454_v21  ;;  %v6654_v21 = vld [vmem:[%s6560_s30 + $0x38] sm:$0xff]  ;;  %v6009_v62 = vld [vmem:[%s6560_s30 + $0x10] sm:$0xff] }
 0x179   : > { %v1537_v22 = vrot.slane %v6654_v21, 6  ;;  %v1532_v63 = vrot.slane %v6009_v62, 6 }
 0x17a   : > { %4993 = vmatpush1.bf16.msra.mxu0 %v4992_v17  ;;  %v5092_v17 = vpack.c.bf16 %v1460_v27, %v1456_v24  ;;  %v6659_v27 = vld [vmem:[%s6560_s30 + $0x30] sm:$0xff] }
 0x17b   : > { %5073 = vmatpush1.bf16.msra.mxu1 %v5072_v34  ;;  %4995 = vmatprep.subr.bf16.mxu0 %v4994_v36  ;;  %v5014_v34 = vpack.c.bf16 %v1467_v29, %v1463_v28  ;;  %v1462_v36 = vld [vmem:[#allocation5 + $0x840] sm:$0xff]  ;;  %v1535_v28 = vrot.slane %v6659_v27, 6  ;;  %v5108_v29 = vpack.c.bf16 %v1492_v11, %v1488_v9  ;;  %v1872_v9 = vld [vmem:[#allocation5 + $0xa30] sm:$0xff]  ;;  %v1879_v11 = vld [vmem:[#allocation5 + $0xa68] sm:$0xff] }
 0x17c   : > { %5075 = vmatprep.subr.bf16.mxu1 %v5074_v39  ;;  %v1468_v39 = vld [vmem:[#allocation5 + $0x870] sm:$0xff]  ;;  %v5016_v43 = vpack.c.bf16 %v1466_v37, %v1462_v36  ;;  %v1503_v37 = vld [vmem:[#allocation5 + $0x988] sm:$0xff] }
 0x17d   : > { %v1500_v36 = vld [vmem:[#allocation5 + $0x970] sm:$0xff] }
 0x17e   : > { %4997 = vmatpush1.bf16.msra.mxu0 %v4996_v44  ;;  %v5096_v44 = vpack.c.bf16 %v1468_v39, %v1464_v38  ;;  %v1507_v38 = vld [vmem:[#allocation5 + $0x9a8] sm:$0xff]  ;;  %v1509_v39 = vld [vmem:[#allocation5 + $0x9b8] sm:$0xff] }
 0x17f   : > { %5077 = vmatpush1.bf16.msra.mxu1 %v5076_v45  ;;  %4999 = vmatprep.subr.bf16.mxu0 %v4998_v23  ;;  %v5018_v45 = vpack.c.bf16 %v1475_v41, %v1471_v40  ;;  %v1470_v23 = vld [vmem:[#allocation5 + $0x880] sm:$0xff]  ;;  %v1538_v40 = vsel %vm1525_vm1, %v1530_v15, %v1537_v22  ;;  %v1513_v15 = vld [vmem:[#allocation5 + $0x9d8] sm:$0xff]  ;;  %v6675_v22 = vld [vmem:[%s6560_s30 + $0x40] sm:$0xff] }
 0x180   : > { %5079 = vmatprep.subr.bf16.mxu1 %v5078_v49  ;;  %v1476_v49 = vld [vmem:[#allocation5 + $0x8b0] sm:$0xff]  ;;  %v5020_v35 = vpack.c.bf16 %v1474_v46, %v1470_v23 }
 0x181   : > { %v1504_v23 = vld [vmem:[#allocation5 + $0x990] sm:$0xff] }
 0x182   : > { %5001 = vmatpush1.bf16.msra.mxu0 %v5000_v53  ;;  %v5100_v53 = vpack.c.bf16 %v1476_v49, %v1472_v47  ;;  %v1508_v47 = vld [vmem:[#allocation5 + $0x9b0] sm:$0xff]  ;;  %v1515_v49 = vld [vmem:[#allocation5 + $0x9e8] sm:$0xff] }
 0x183   : > { %5081 = vmatpush1.bf16.msra.mxu1 %v5080_v54  ;;  %5003 = vmatprep.subr.bf16.mxu0 %v5002_v55  ;;  %v5022_v54 = vpack.c.bf16 %v1483_v50, %v1479_v20  ;;  %v1478_v55 = vld [vmem:[#allocation5 + $0x8c0] sm:$0xff]  ;;  %v1517_v20 = vld [vmem:[#allocation5 + $0x9f8] sm:$0xff]  ;;  %v5116_v51 = vpack.c.bf16 %v1508_v47, %v1504_v23  ;;  %v1895_v47 = vld [vmem:[#allocation5 + $0xae8] sm:$0xff] }
 0x184   : > { %5083 = vmatprep.subr.bf16.mxu1 %v5082_v59  ;;  %v1484_v59 = vld [vmem:[#allocation5 + $0x8f0] sm:$0xff]  ;;  %v5024_v0 = vpack.c.bf16 %v1482_v56, %v1478_v55  ;;  %v5118_v55 = vpack.c.bf16 %v1517_v20, %v1513_v15 }
 0x185   : > { %v5104_v5 = vpack.c.bf16 %v1484_v59, %v1480_v57  ;;  %v1516_v56 = vld [vmem:[#allocation5 + $0x9f0] sm:$0xff]  ;;  %v1867_v57 = vld [vmem:[#allocation5 + $0xa08] sm:$0xff]  ;;  %v1869_v59 = vld [vmem:[#allocation5 + $0xa18] sm:$0xff] }
 0x186   : > { %5005 = vmatpush1.bf16.msra.mxu0 %v5004_v1  ;;  %v6005_v1 = vld [vmem:[%s6560_s30] sm:$0xff] }
 0x187   : > { %5085 = vmatpush1.bf16.msra.mxu1 %v5084_v2  ;;  %5007 = vmatprep.subr.bf16.mxu0 %v5006_v3  ;;  %v1526_v2 = vrot.slane %v6005_v1, 6  ;;  %v6650_v3 = vld [vmem:[%s6560_s30 + $0x18] sm:$0xff] }
 0x188   : > { %5087 = vmatprep.subr.bf16.mxu1 %v5086_v7  ;;  %v1527_v4 = vrot.slane %v6650_v3, 6  ;;  %v1486_v7 = vld [vmem:[#allocation5 + $0x900] sm:$0xff] }
 0x18a   : > { %5009 = vmatpush1.bf16.msra.mxu0 %v5008_v13  ;;  %v1499_v13 = vld [vmem:[#allocation5 + $0x968] sm:$0xff]  ;;  %v1528_v24 = vsel %vm1525_vm1, %v1526_v2, %v1527_v4  ;;  %v1536_v42 = vsel %vm1525_vm1, %v1527_v4, %v1535_v28 }
 0x18b   : > { %5089 = vmatpush1.bf16.msra.mxu1 %v5088_v16  ;;  %5011 = vmatprep.subr.bf16.mxu0 %v5010_v19  ;;  %v1497_v16 = vld [vmem:[#allocation5 + $0x958] sm:$0xff]  ;;  %v5030_v30 = vpack.c.bf16 %v1499_v13, %v1495_v12 }
 0x18c   : > { %5091 = vmatprep.subr.bf16.mxu1 %v5090_v25  ;;  %v1501_v19 = vld [vmem:[#allocation5 + $0x978] sm:$0xff]  ;;  %v5028_v25 = vpack.c.bf16 %v1490_v8, %v1486_v7  ;;  %v1868_v7 = vld [vmem:[#allocation5 + $0xa10] sm:$0xff]  ;;  %v5202_v8 = vpack.c.bf16 %v1873_v60, %v1869_v59 }
 0x18d   : > { %v1877_v12 = vld [vmem:[#allocation5 + $0xa58] sm:$0xff] }
 0x18e   : > { %5013 = vmatpush1.bf16.msra.mxu0 %v5012_v33  ;;  %v1498_v33 = vld [vmem:[#allocation5 + $0x960] sm:$0xff]  ;;  %v1881_v13 = vld [vmem:[#allocation5 + $0xa78] sm:$0xff] }
 0x18f   : > { %5093 = vmatpush1.bf16.msra.mxu1 %v5092_v17  ;;  %5015 = vmatprep.subr.bf16.mxu0 %v5014_v34  ;;  %v1496_v17 = vld [vmem:[#allocation5 + $0x950] sm:$0xff]  ;;  %v5110_v34 = vpack.c.bf16 %v1501_v19, %v1497_v16  ;;  %v5032_v41 = vpack.c.bf16 %v1498_v33, %v1494_v32  ;;  %v5206_v33 = vpack.c.bf16 %v1881_v13, %v1877_v12  ;;  %v1905_v59 = vld [vmem:[#allocation5 + $0xb38] sm:$0xff]  ;;  %v1906_v13 = vld [vmem:[#allocation5 + $0xb40] sm:$0xff] }
 0x190   : > { %5095 = vmatprep.subr.bf16.mxu1 %v5094_v18  ;;  %v1505_v18 = vld [vmem:[#allocation5 + $0x998] sm:$0xff]  ;;  %v5112_v31 = vpack.c.bf16 %v1500_v36, %v1496_v17  ;;  %v1876_v32 = vld [vmem:[#allocation5 + $0xa50] sm:$0xff]  ;;  %v1887_v36 = vld [vmem:[#allocation5 + $0xaa8] sm:$0xff] }
 0x191   : > { %v5114_v46 = vpack.c.bf16 %v1509_v39, %v1505_v18  ;;  %v1880_v17 = vld [vmem:[#allocation5 + $0xa70] sm:$0xff]  ;;  %v2033_v18 = vrot.slane %v6634_v14, 4  ;;  %v2034_v39 = vrot.slane %v6654_v21, 4  ;;  %v1891_v14 = vld [vmem:[#allocation5 + $0xac8] sm:$0xff] }
 0x192   : > { %5017 = vmatpush1.bf16.msra.mxu0 %v5016_v43  ;;  %v5034_v43 = vpack.c.bf16 %v1507_v38, %v1503_v37  ;;  %v1885_v37 = vld [vmem:[#allocation5 + $0xa98] sm:$0xff] }
 0x193   : > { %5097 = vmatpush1.bf16.msra.mxu1 %v5096_v44  ;;  %5019 = vmatprep.subr.bf16.mxu0 %v5018_v45  ;;  %v1502_v44 = vld [vmem:[#allocation5 + $0x980] sm:$0xff]  ;;  %v1889_v38 = vld [vmem:[#allocation5 + $0xab8] sm:$0xff]  ;;  %v2035_v15 = vsel %vm2029_vm2, %v2033_v18, %v2034_v39 }
 0x194   : > { %5099 = vmatprep.subr.bf16.mxu1 %v5098_v48  ;;  %v1506_v45 = vld [vmem:[#allocation5 + $0x9a0] sm:$0xff]  ;;  %v1511_v48 = vld [vmem:[#allocation5 + $0x9c8] sm:$0xff]  ;;  %v5210_v23 = vpack.c.bf16 %v1889_v38, %v1885_v37  ;;  %v1916_v38 = vld [vmem:[#allocation5 + $0xb90] sm:$0xff] }
 0x195   : > { %v5036_v50 = vpack.c.bf16 %v1506_v45, %v1502_v44  ;;  %v5038_v52 = vpack.c.bf16 %v1515_v49, %v1511_v48  ;;  %v1886_v44 = vld [vmem:[#allocation5 + $0xaa0] sm:$0xff]  ;;  %v1884_v45 = vld [vmem:[#allocation5 + $0xa90] sm:$0xff]  ;;  %v1893_v48 = vld [vmem:[#allocation5 + $0xad8] sm:$0xff] }
 0x196   : > { %5021 = vmatpush1.bf16.msra.mxu0 %v5020_v35  ;;  %v1510_v35 = vld [vmem:[#allocation5 + $0x9c0] sm:$0xff]  ;;  %v1897_v49 = vld [vmem:[#allocation5 + $0xaf8] sm:$0xff] }
 0x197   : > { %5101 = vmatpush1.bf16.msra.mxu1 %v5100_v53  ;;  %5023 = vmatprep.subr.bf16.mxu0 %v5022_v54  ;;  %v1514_v53 = vld [vmem:[#allocation5 + $0x9e0] sm:$0xff]  ;;  %v1512_v54 = vld [vmem:[#allocation5 + $0x9d0] sm:$0xff] }
 0x198   : > { %5103 = vmatprep.subr.bf16.mxu1 %v5102_v58  ;;  %v1871_v58 = vld [vmem:[#allocation5 + $0xa28] sm:$0xff]  ;;  %v5040_v61 = vpack.c.bf16 %v1514_v53, %v1510_v35  ;;  %v5120_v2 = vpack.c.bf16 %v1516_v56, %v1512_v54  ;;  %v1894_v35 = vld [vmem:[#allocation5 + $0xae0] sm:$0xff]  ;;  %v1892_v53 = vld [vmem:[#allocation5 + $0xad0] sm:$0xff]  ;;  %v5214_v54 = vpack.c.bf16 %v1897_v49, %v1893_v48 }
 0x199   : > { %v5122_v4 = vpack.c.bf16 %v1871_v58, %v1867_v57  ;;  %v1899_v56 = vld [vmem:[#allocation5 + $0xb08] sm:$0xff]  ;;  %v1901_v58 = vld [vmem:[#allocation5 + $0xb18] sm:$0xff]  ;;  %v1918_v37 = vld [vmem:[#allocation5 + $0xba0] sm:$0xff] }
 0x19a   : > { %5025 = vmatpush1.bf16.msra.mxu0 %v5024_v0  ;;  %v6670_v0 = vld [vmem:[%s6560_s30 + $0x28] sm:$0xff]  ;;  %v1903_v57 = vld [vmem:[#allocation5 + $0xb28] sm:$0xff] }
 0x19b   : > { %5105 = vmatpush1.bf16.msra.mxu1 %v5104_v5  ;;  %5027 = vmatprep.subr.bf16.mxu0 %v5026_v6  ;;  %v1533_v1 = vrot.slane %v6670_v0, 6  ;;  %v1866_v5 = vld [vmem:[#allocation5 + $0xa00] sm:$0xff]  ;;  %v5138_v62 = vpack.c.bf16 %v1903_v57, %v1899_v56  ;;  %v1928_v49 = vld [vmem:[#allocation5 + $0xbf0] sm:$0xff] }
 0x19c   : > { %5107 = vmatprep.subr.bf16.mxu1 %v5106_v10  ;;  %v1870_v6 = vld [vmem:[#allocation5 + $0xa20] sm:$0xff]  ;;  %v1875_v10 = vld [vmem:[#allocation5 + $0xa48] sm:$0xff]  ;;  %v1932_v56 = vld [vmem:[#allocation5 + $0xc10] sm:$0xff] }
 0x19d   : > { %1614 = vmatmul.mubr.f32.vlgmr.msra.gmra.mrb[2].mxu0 %v1528_v24  ;;  %v1534_v16 = vsel %vm1525_vm1, %v1532_v63, %v1533_v1  ;;  %v5124_v19 = vpack.c.bf16 %v1870_v6, %v1866_v5  ;;  %v5126_v28 = vpack.c.bf16 %v1879_v11, %v1875_v10  ;;  %v1898_v63 = vld [vmem:[#allocation5 + $0xb00] sm:$0xff]  ;;  %v1904_v5 = vld [vmem:[#allocation5 + $0xb30] sm:$0xff]  ;;  %v1907_v6 = vld [vmem:[#allocation5 + $0xb48] sm:$0xff] }
 0x19e   : > { %5029 = vmatpush1.bf16.msra.mxu0 %v5028_v25  ;;  %1768 = vmatmul.mubr.f32.vlgmr.msra.gmra.mrb[2].mxu1 %v1528_v24  ;;  %v1539_v24 = vrot.slane %v6675_v22, 6  ;;  %v5204_v25 = vpack.c.bf16 %v1872_v9, %v1868_v7  ;;  %v1911_v7 = vld [vmem:[#allocation5 + $0xb68] sm:$0xff]  ;;  %v1913_v9 = vld [vmem:[#allocation5 + $0xb78] sm:$0xff] }
 0x19f   : > { %5109 = vmatpush1.bf16.msra.mxu1 %v5108_v29  ;;  %5031 = vmatprep.subr.bf16.mxu0 %v5030_v30  ;;  %v1874_v29 = vld [vmem:[#allocation5 + $0xa40] sm:$0xff]  ;;  %v5142_v12 = vpack.c.bf16 %v1911_v7, %v1907_v6  ;;  %v1940_v6 = vld [vmem:[#allocation5 + $0xc50] sm:$0xff] }
 0x1a0   : > { %5111 = vmatprep.subr.bf16.mxu1 %v5110_v34  ;;  %1619 = vmatprep.mubr.f32.mxu0 %v1538_v40  ;;  %v1878_v30 = vld [vmem:[#allocation5 + $0xa60] sm:$0xff]  ;;  %v1883_v34 = vld [vmem:[#allocation5 + $0xa88] sm:$0xff] }
 0x1a1   : > { %1773 = vmatprep.mubr.f32.mxu1 %v1538_v40  ;;  %1620 = vmatmul.mubr.f32.gmra.mrb[4].mxu0 %v1536_v42  ;;  %v5128_v40 = vpack.c.bf16 %v1878_v30, %v1874_v29  ;;  %v1919_v29 = vld [vmem:[#allocation5 + $0xba8] sm:$0xff]  ;;  %v1917_v30 = vld [vmem:[#allocation5 + $0xb98] sm:$0xff] }
 0x1a2   : > { %5033 = vmatpush1.bf16.msra.mxu0 %v5032_v41  ;;  %1774 = vmatmul.mubr.f32.gmra.mrb[4].mxu1 %v1536_v42  ;;  %v1540_v41 = vsel %vm1525_vm1, %v1533_v1, %v1539_v24  ;;  %v5208_v42 = vpack.c.bf16 %v1880_v17, %v1876_v32  ;;  %v1902_v1 = vld [vmem:[#allocation5 + $0xb20] sm:$0xff]  ;;  %v1921_v32 = vld [vmem:[#allocation5 + $0xbb8] sm:$0xff] }
 0x1a3   : > { %5113 = vmatpush1.bf16.msra.mxu1 %v5112_v31  ;;  %5035 = vmatprep.subr.bf16.mxu0 %v5034_v43  ;;  %v5130_v31 = vpack.c.bf16 %v1887_v36, %v1883_v34  ;;  %v1882_v43 = vld [vmem:[#allocation5 + $0xa80] sm:$0xff]  ;;  %v5140_v10 = vpack.c.bf16 %v1902_v1, %v1898_v63  ;;  %v5226_v18 = vpack.c.bf16 %v1921_v32, %v1917_v30  ;;  %v1952_v30 = vld [vmem:[#allocation5 + $0xcb0] sm:$0xff]  ;;  %v1955_v32 = vld [vmem:[#allocation5 + $0xcc8] sm:$0xff] }
 0x1a4   : > { %5115 = vmatprep.subr.bf16.mxu1 %v5114_v46  ;;  %1690 = vmatprep.mubr.f32.mxu0 %v6284_v26  ;;  %v1888_v46 = vld [vmem:[#allocation5 + $0xab0] sm:$0xff]  ;;  %v5132_v20 = vpack.c.bf16 %v1886_v44, %v1882_v43  ;;  %v1914_v36 = vld [vmem:[#allocation5 + $0xb80] sm:$0xff]  ;;  %v1929_v43 = vld [vmem:[#allocation5 + $0xbf8] sm:$0xff] }
 0x1a5   : > { %1844 = vmatprep.mubr.f32.mxu1 %v6284_v26  ;;  %v5148_v44 = vpack.c.bf16 %v1918_v37, %v1914_v36 }
 0x1a6   : > { %5037 = vmatpush1.bf16.msra.mxu0 %v5036_v50  ;;  %v5212_v50 = vpack.c.bf16 %v1888_v46, %v1884_v45  ;;  %v1922_v46 = vld [vmem:[#allocation5 + $0xbc0] sm:$0xff] }
 0x1a7   : > { %5117 = vmatpush1.bf16.msra.mxu1 %v5116_v51  ;;  %5039 = vmatprep.subr.bf16.mxu0 %v5038_v52  ;;  %v5134_v51 = vpack.c.bf16 %v1895_v47, %v1891_v14  ;;  %v1890_v52 = vld [vmem:[#allocation5 + $0xac0] sm:$0xff]  ;;  %v1924_v47 = vld [vmem:[#allocation5 + $0xbd0] sm:$0xff] }
 0x1a8   : > { %5119 = vmatprep.subr.bf16.mxu1 %v5118_v55  ;;  %v1896_v55 = vld [vmem:[#allocation5 + $0xaf0] sm:$0xff]  ;;  %v5136_v60 = vpack.c.bf16 %v1894_v35, %v1890_v52  ;;  %v1926_v14 = vld [vmem:[#allocation5 + $0xbe0] sm:$0xff]  ;;  %v5232_v35 = vpack.c.bf16 %v1928_v49, %v1924_v47 }
 0x1a9   : > { %v5152_v52 = vpack.c.bf16 %v1926_v14, %v1922_v46  ;;  %v1966_v49 = vld [vmem:[#allocation5 + $0xd20] sm:$0xff] }
 0x1aa   : > { %5041 = vmatpush1.bf16.msra.mxu0 %v5040_v61  ;;  %v5216_v61 = vpack.c.bf16 %v1896_v55, %v1892_v53  ;;  %v1934_v55 = vld [vmem:[#allocation5 + $0xc20] sm:$0xff] }
 0x1ab   : > { %5121 = vmatpush1.bf16.msra.mxu1 %v5120_v2  ;;  %5123 = vmatprep.subr.bf16.mxu0 %v5122_v4  ;;  %v1900_v2 = vld [vmem:[#allocation5 + $0xb10] sm:$0xff]  ;;  %v5218_v4 = vpack.c.bf16 %v1905_v59, %v1901_v58  ;;  %v1939_v59 = vld [vmem:[#allocation5 + $0xc48] sm:$0xff] }
 0x1ac   : > { %5203 = vmatprep.subr.bf16.mxu1 %v5202_v8  ;;  %v1909_v8 = vld [vmem:[#allocation5 + $0xb58] sm:$0xff]  ;;  %v5220_v11 = vpack.c.bf16 %v1904_v5, %v1900_v2  ;;  %v1936_v58 = vld [vmem:[#allocation5 + $0xc30] sm:$0xff]  ;;  %v1942_v5 = vld [vmem:[#allocation5 + $0xc60] sm:$0xff] }
 0x1ad   : > { %4361 = vmatmul.mubr.msk.f32.vlgmr.msra.gmra.mrb[2].mxu0 %vm374_vm0, %v1534_v16  ;;  %v5222_v24 = vpack.c.bf16 %v1913_v9, %v1909_v8  ;;  %v5236_v1 = vpack.c.bf16 %v1936_v58, %v1932_v56  ;;  %v1944_v8 = vld [vmem:[#allocation5 + $0xc70] sm:$0xff]  ;;  %v1947_v9 = vld [vmem:[#allocation5 + $0xc88] sm:$0xff]  ;;  %v1974_v58 = vld [vmem:[#allocation5 + $0xd60] sm:$0xff] }
 0x1ae   : > { %4363 = vmatmul.mubr.msk.f32.vlgmr.msra.gmra.mrb[2].mxu1 %vm374_vm0, %v1534_v16  ;;  %5125 = vmatpush1.bf16.msra.mxu0 %v5124_v19  ;;  %v1910_v16 = vld [vmem:[#allocation5 + $0xb60] sm:$0xff]  ;;  %v1908_v19 = vld [vmem:[#allocation5 + $0xb50] sm:$0xff] }
 0x1af   : > { %5205 = vmatpush1.bf16.msra.mxu1 %v5204_v25  ;;  %5127 = vmatprep.subr.bf16.mxu0 %v5126_v28  ;;  %v1912_v25 = vld [vmem:[#allocation5 + $0xb70] sm:$0xff]  ;;  %v1915_v28 = vld [vmem:[#allocation5 + $0xb88] sm:$0xff] }
 0x1b0   : > { %5207 = vmatprep.subr.bf16.mxu1 %v5206_v33  ;;  %1696 = vmatprep.mubr.f32.mxu0 %v6284_v26  ;;  %v5144_v33 = vpack.c.bf16 %v1910_v16, %v1906_v13  ;;  %v5224_v17 = vpack.c.bf16 %v1912_v25, %v1908_v19  ;;  %v5146_v34 = vpack.c.bf16 %v1919_v29, %v1915_v28  ;;  %v1950_v25 = vld [vmem:[#allocation5 + $0xca0] sm:$0xff]  ;;  %v1948_v28 = vld [vmem:[#allocation5 + $0xc90] sm:$0xff] }
 0x1b1   : > { %1850 = vmatprep.mubr.f32.mxu1 %v6284_v26  ;;  %4362 = vmatmul.mubr.msk.f32.gmra.mrb[4].mxu0 %vm374_vm0, %v1540_v41  ;;  %v5240_v16 = vpack.c.bf16 %v1944_v8, %v1940_v6  ;;  %v5244_v37 = vpack.c.bf16 %v1952_v30, %v1948_v28  ;;  %v1982_v8 = vld [vmem:[#allocation5 + $0xda0] sm:$0xff]  ;;  %v1993_v28 = vld [vmem:[#allocation5 + $0xdf8] sm:$0xff] }
 0x1b2   : > { %5129 = vmatpush1.bf16.msra.mxu0 %v5128_v40  ;;  %4364 = vmatmul.mubr.msk.f32.gmra.mrb[4].mxu1 %vm374_vm0, %v1540_v41  ;;  %v1920_v40 = vld [vmem:[#allocation5 + $0xbb0] sm:$0xff]  ;;  %v1923_v41 = vld [vmem:[#allocation5 + $0xbc8] sm:$0xff] }
 0x1b3   : > { %5209 = vmatpush1.bf16.msra.mxu1 %v5208_v42  ;;  %5131 = vmatprep.subr.bf16.mxu0 %v5130_v31  ;;  %v1927_v42 = vld [vmem:[#allocation5 + $0xbe8] sm:$0xff]  ;;  %v1925_v31 = vld [vmem:[#allocation5 + $0xbd8] sm:$0xff]  ;;  %v5228_v45 = vpack.c.bf16 %v1920_v40, %v1916_v38  ;;  %v1958_v40 = vld [vmem:[#allocation5 + $0xce0] sm:$0xff] }
 0x1b4   : > { %5211 = vmatprep.subr.bf16.mxu1 %v5210_v23  ;;  %2117 = vmatprep.mubr.f32.mxu0 %v2035_v15  ;;  %v5150_v23 = vpack.c.bf16 %v1927_v42, %v1923_v41  ;;  %v5230_v48 = vpack.c.bf16 %v1929_v43, %v1925_v31  ;;  %v1956_v41 = vld [vmem:[#allocation5 + $0xcd0] sm:$0xff]  ;;  %v1963_v43 = vld [vmem:[#allocation5 + $0xd08] sm:$0xff] }
 0x1b5   : > { %2271 = vmatprep.mubr.f32.mxu1 %v2035_v15  ;;  %v1931_v15 = vld [vmem:[#allocation5 + $0xc08] sm:$0xff]  ;;  %v1960_v31 = vld [vmem:[#allocation5 + $0xcf0] sm:$0xff] }
 0x1b6   : > { %5133 = vmatpush1.bf16.msra.mxu0 %v5132_v20  ;;  %v1935_v20 = vld [vmem:[#allocation5 + $0xc28] sm:$0xff]  ;;  %v5248_v14 = vpack.c.bf16 %v1960_v31, %v1956_v41  ;;  %v1997_v41 = vld [vmem:[#allocation5 + $0xe18] sm:$0xff] }
 0x1b7   : > { %5213 = vmatpush1.bf16.msra.mxu1 %v5212_v50  ;;  %5135 = vmatprep.subr.bf16.mxu0 %v5134_v51  ;;  %v1933_v50 = vld [vmem:[#allocation5 + $0xc18] sm:$0xff]  ;;  %v5154_v53 = vpack.c.bf16 %v1935_v20, %v1931_v15  ;;  %v1964_v15 = vld [vmem:[#allocation5 + $0xd10] sm:$0xff] }
 0x1b8   : > { %5215 = vmatprep.subr.bf16.mxu1 %v5214_v54  ;;  %v1937_v51 = vld [vmem:[#allocation5 + $0xc38] sm:$0xff]  ;;  %v1930_v54 = vld [vmem:[#allocation5 + $0xc00] sm:$0xff] }
 0x1b9   : > { %v5234_v57 = vpack.c.bf16 %v1937_v51, %v1933_v50  ;;  %v5156_v63 = vpack.c.bf16 %v1934_v55, %v1930_v54  ;;  %v1968_v50 = vld [vmem:[#allocation5 + $0xd30] sm:$0xff]  ;;  %v1971_v51 = vld [vmem:[#allocation5 + $0xd48] sm:$0xff] }
 0x1ba   : > { %5137 = vmatpush1.bf16.msra.mxu0 %v5136_v60  ;;  %v1943_v60 = vld [vmem:[#allocation5 + $0xc68] sm:$0xff]  ;;  %v5252_v55 = vpack.c.bf16 %v1968_v50, %v1964_v15  ;;  %v2005_v50 = vld [vmem:[#allocation5 + $0xe58] sm:$0xff] }
 0x1bb   : > { %5217 = vmatpush1.bf16.msra.mxu1 %v5216_v61  ;;  %5139 = vmatprep.subr.bf16.mxu0 %v5138_v62  ;;  %v1941_v61 = vld [vmem:[#allocation5 + $0xc58] sm:$0xff]  ;;  %v5158_v2 = vpack.c.bf16 %v1943_v60, %v1939_v59  ;;  %v1972_v59 = vld [vmem:[#allocation5 + $0xd50] sm:$0xff]  ;;  %v2003_v15 = vld [vmem:[#allocation5 + $0xe48] sm:$0xff] }
 0x1bc   : > { %5219 = vmatprep.subr.bf16.mxu1 %v5218_v4  ;;  %v1945_v62 = vld [vmem:[#allocation5 + $0xc78] sm:$0xff]  ;;  %v1938_v4 = vld [vmem:[#allocation5 + $0xc40] sm:$0xff] }
 0x1bd   : > { %v5238_v7 = vpack.c.bf16 %v1945_v62, %v1941_v61  ;;  %v5160_v13 = vpack.c.bf16 %v1942_v5, %v1938_v4  ;;  %v1976_v61 = vld [vmem:[#allocation5 + $0xd70] sm:$0xff]  ;;  %v1979_v62 = vld [vmem:[#allocation5 + $0xd88] sm:$0xff] }
 0x1be   : > { %5141 = vmatpush1.bf16.msra.mxu0 %v5140_v10  ;;  %v1951_v10 = vld [vmem:[#allocation5 + $0xca8] sm:$0xff]  ;;  %v5256_v5 = vpack.c.bf16 %v1976_v61, %v1972_v59  ;;  %v2004_v59 = vld [vmem:[#allocation5 + $0xe50] sm:$0xff] }
 0x1bf   : > { %5221 = vmatpush1.bf16.msra.mxu1 %v5220_v11  ;;  %5143 = vmatprep.subr.bf16.mxu0 %v5142_v12  ;;  %v1949_v11 = vld [vmem:[#allocation5 + $0xc98] sm:$0xff]  ;;  %v5162_v19 = vpack.c.bf16 %v1951_v10, %v1947_v9  ;;  %v1980_v9 = vld [vmem:[#allocation5 + $0xd90] sm:$0xff] }
 0x1c0   : > { %5223 = vmatprep.subr.bf16.mxu1 %v5222_v24  ;;  %v1953_v12 = vld [vmem:[#allocation5 + $0xcb8] sm:$0xff]  ;;  %v1946_v24 = vld [vmem:[#allocation5 + $0xc80] sm:$0xff]  ;;  %v2008_v61 = vld [vmem:[#allocation5 + $0xe70] sm:$0xff] }
 0x1c1   : > { %v5242_v29 = vpack.c.bf16 %v1953_v12, %v1949_v11  ;;  %v5164_v36 = vpack.c.bf16 %v1950_v25, %v1946_v24  ;;  %v1984_v12 = vld [vmem:[#allocation5 + $0xdb0] sm:$0xff]  ;;  %v1989_v25 = vld [vmem:[#allocation5 + $0xdd8] sm:$0xff] }
 0x1c2   : > { %5145 = vmatpush1.bf16.msra.mxu0 %v5144_v33  ;;  %v1959_v33 = vld [vmem:[#allocation5 + $0xce8] sm:$0xff] }
 0x1c3   : > { %5225 = vmatpush1.bf16.msra.mxu1 %v5224_v17  ;;  %5147 = vmatprep.subr.bf16.mxu0 %v5146_v34  ;;  %v1957_v17 = vld [vmem:[#allocation5 + $0xcd8] sm:$0xff]  ;;  %v5166_v38 = vpack.c.bf16 %v1959_v33, %v1955_v32  ;;  %v5260_v32 = vpack.c.bf16 %v1984_v12, %v1980_v9  ;;  %v2010_v9 = vld [vmem:[#allocation5 + $0xe80] sm:$0xff]  ;;  %v2012_v12 = vld [vmem:[#allocation5 + $0xe90] sm:$0xff] }
 0x1c4   : > { %5227 = vmatprep.subr.bf16.mxu1 %v5226_v18  ;;  %v1961_v34 = vld [vmem:[#allocation5 + $0xcf8] sm:$0xff]  ;;  %v1954_v18 = vld [vmem:[#allocation5 + $0xcc0] sm:$0xff] }
 0x1c5   : > { %v5246_v42 = vpack.c.bf16 %v1961_v34, %v1957_v17  ;;  %v5168_v46 = vpack.c.bf16 %v1958_v40, %v1954_v18  ;;  %v1986_v17 = vld [vmem:[#allocation5 + $0xdc0] sm:$0xff]  ;;  %v1995_v18 = vld [vmem:[#allocation5 + $0xe08] sm:$0xff] }
 0x1c6   : > { %5149 = vmatpush1.bf16.msra.mxu0 %v5148_v44  ;;  %v1967_v44 = vld [vmem:[#allocation5 + $0xd28] sm:$0xff]  ;;  %v1990_v34 = vld [vmem:[#allocation5 + $0xde0] sm:$0xff] }
 0x1c7   : > { %5229 = vmatpush1.bf16.msra.mxu1 %v5228_v45  ;;  %5151 = vmatprep.subr.bf16.mxu0 %v5150_v23  ;;  %v1965_v45 = vld [vmem:[#allocation5 + $0xd18] sm:$0xff]  ;;  %v5170_v47 = vpack.c.bf16 %v1967_v44, %v1963_v43  ;;  %v1999_v40 = vld [vmem:[#allocation5 + $0xe28] sm:$0xff]  ;;  %v5184_v31 = vpack.c.bf16 %v1990_v34, %v1986_v17  ;;  %v2030_v43 = vrot.slane %v6650_v3, 4  ;;  %v2031_v44 = vrot.slane %v6659_v27, 4  ;;  %v2018_v34 = vld [vmem:[#allocation5 + $0xec0] sm:$0xff] }
 0x1c8   : > { %5231 = vmatprep.subr.bf16.mxu1 %v5230_v48  ;;  %v1969_v23 = vld [vmem:[#allocation5 + $0xd38] sm:$0xff]  ;;  %v1962_v48 = vld [vmem:[#allocation5 + $0xd00] sm:$0xff] }
 0x1c9   : > { %v5250_v20 = vpack.c.bf16 %v1969_v23, %v1965_v45  ;;  %v5172_v54 = vpack.c.bf16 %v1966_v49, %v1962_v48  ;;  %v5186_v23 = vpack.c.bf16 %v1999_v40, %v1995_v18  ;;  %v2000_v49 = vld [vmem:[#allocation5 + $0xe30] sm:$0xff]  ;;  %v2032_v27 = vsel %vm2029_vm2, %v2030_v43, %v2031_v44  ;;  %v2371_v40 = vld [vmem:[#allocation5 + $0xf08] sm:$0xff] }
 0x1ca   : > { %5153 = vmatpush1.bf16.msra.mxu0 %v5152_v52  ;;  %v1975_v52 = vld [vmem:[#allocation5 + $0xd68] sm:$0xff]  ;;  %v2024_v18 = vld [vmem:[#allocation5 + $0xef0] sm:$0xff] }
 0x1cb   : > { %5233 = vmatpush1.bf16.msra.mxu1 %v5232_v35  ;;  %5155 = vmatprep.subr.bf16.mxu0 %v5154_v53  ;;  %v1973_v35 = vld [vmem:[#allocation5 + $0xd58] sm:$0xff]  ;;  %v5174_v56 = vpack.c.bf16 %v1975_v52, %v1971_v51 }
 0x1cc   : > { %5235 = vmatprep.subr.bf16.mxu1 %v5234_v57  ;;  %v1977_v53 = vld [vmem:[#allocation5 + $0xd78] sm:$0xff]  ;;  %v1970_v57 = vld [vmem:[#allocation5 + $0xd40] sm:$0xff] }
 0x1cd   : > { %v5254_v60 = vpack.c.bf16 %v1977_v53, %v1973_v35  ;;  %v5176_v4 = vpack.c.bf16 %v1974_v58, %v1970_v57  ;;  %v2009_v51 = vld [vmem:[#allocation5 + $0xe78] sm:$0xff]  ;;  %v2002_v57 = vld [vmem:[#allocation5 + $0xe40] sm:$0xff] }
 0x1ce   : > { %5157 = vmatpush1.bf16.msra.mxu0 %v5156_v63  ;;  %v1983_v63 = vld [vmem:[#allocation5 + $0xda8] sm:$0xff]  ;;  %v6701_v52 = vld [vmem:[%s6560_s30 + $0x50] sm:$0xff]  ;;  %v6706_v53 = vld [vmem:[%s6560_s30 + $0x48] sm:$0xff] }
 0x1cf   : > { %5237 = vmatpush1.bf16.msra.mxu1 %v5236_v1  ;;  %5159 = vmatprep.subr.bf16.mxu0 %v5158_v2  ;;  %v1981_v1 = vld [vmem:[#allocation5 + $0xd98] sm:$0xff]  ;;  %v5178_v6 = vpack.c.bf16 %v1983_v63, %v1979_v62  ;;  %v2041_v3 = vrot.slane %v6701_v52, 4  ;;  %v2006_v58 = vld [vmem:[#allocation5 + $0xe60] sm:$0xff]  ;;  %v2011_v62 = vld [vmem:[#allocation5 + $0xe88] sm:$0xff] }
 0x1d0   : > { %5239 = vmatprep.subr.bf16.mxu1 %v5238_v7  ;;  %v1985_v2 = vld [vmem:[#allocation5 + $0xdb8] sm:$0xff]  ;;  %v1978_v7 = vld [vmem:[#allocation5 + $0xd80] sm:$0xff]  ;;  %v2015_v63 = vld [vmem:[#allocation5 + $0xea8] sm:$0xff] }
 0x1d1   : > { %v5258_v11 = vpack.c.bf16 %v1985_v2, %v1981_v1  ;;  %v5180_v30 = vpack.c.bf16 %v1982_v8, %v1978_v7  ;;  %v2013_v1 = vld [vmem:[#allocation5 + $0xe98] sm:$0xff]  ;;  %v5272_v7 = vpack.c.bf16 %v2008_v61, %v2004_v59  ;;  %v5194_v8 = vpack.c.bf16 %v2015_v63, %v2011_v62  ;;  %v2387_v61 = vld [vmem:[#allocation5 + $0xf88] sm:$0xff] }
 0x1d2   : > { %5161 = vmatpush1.bf16.msra.mxu0 %v5160_v13  ;;  %v1987_v13 = vld [vmem:[#allocation5 + $0xdc8] sm:$0xff]  ;;  %v2017_v2 = vld [vmem:[#allocation5 + $0xeb8] sm:$0xff] }
 0x1d3   : > { %5241 = vmatpush1.bf16.msra.mxu1 %v5240_v16  ;;  %5163 = vmatprep.subr.bf16.mxu0 %v5162_v19  ;;  %v1991_v16 = vld [vmem:[#allocation5 + $0xde8] sm:$0xff]  ;;  %v2389_v63 = vld [vmem:[#allocation5 + $0xf98] sm:$0xff] }
 0x1d4   : > { %5243 = vmatprep.subr.bf16.mxu1 %v5242_v29  ;;  %v5182_v33 = vpack.c.bf16 %v1991_v16, %v1987_v13  ;;  %v5274_v13 = vpack.c.bf16 %v2017_v2, %v2013_v1  ;;  %v2016_v16 = vld [vmem:[#allocation5 + $0xeb0] sm:$0xff]  ;;  %v2391_v62 = vld [vmem:[#allocation5 + $0xfa8] sm:$0xff]  ;;  %v2393_v1 = vld [vmem:[#allocation5 + $0xfb8] sm:$0xff]  ;;  %v2537_v2 = vrot.slane %v6654_v21, 2 }
 0x1d5   : > { %v2395_v21 = vld [vmem:[#allocation5 + $0xfc8] sm:$0xff] }
 0x1d6   : > { %5165 = vmatpush1.bf16.msra.mxu0 %v5164_v36  ;;  %v1988_v36 = vld [vmem:[#allocation5 + $0xdd0] sm:$0xff] }
 0x1d7   : > { %5245 = vmatpush1.bf16.msra.mxu1 %v5244_v37  ;;  %5167 = vmatprep.subr.bf16.mxu0 %v5166_v38  ;;  %v5262_v37 = vpack.c.bf16 %v1993_v28, %v1989_v25  ;;  %v1992_v38 = vld [vmem:[#allocation5 + $0xdf0] sm:$0xff]  ;;  %v2019_v25 = vld [vmem:[#allocation5 + $0xec8] sm:$0xff] }
 0x1d8   : > { %5247 = vmatprep.subr.bf16.mxu1 %v5246_v42  ;;  %v2001_v42 = vld [vmem:[#allocation5 + $0xe38] sm:$0xff]  ;;  %v5264_v45 = vpack.c.bf16 %v1992_v38, %v1988_v36  ;;  %v2023_v28 = vld [vmem:[#allocation5 + $0xee8] sm:$0xff]  ;;  %v2022_v36 = vld [vmem:[#allocation5 + $0xee0] sm:$0xff] }
 0x1d9   : > { %v5266_v48 = vpack.c.bf16 %v2001_v42, %v1997_v41  ;;  %v5198_v17 = vpack.c.bf16 %v2023_v28, %v2019_v25  ;;  %v2375_v41 = vld [vmem:[#allocation5 + $0xf28] sm:$0xff]  ;;  %v2373_v42 = vld [vmem:[#allocation5 + $0xf18] sm:$0xff]  ;;  %v5200_v43 = vpack.c.bf16 %v2022_v36, %v2018_v34  ;;  %v2394_v34 = vld [vmem:[#allocation5 + $0xfc0] sm:$0xff] }
 0x1da   : > { %5169 = vmatpush1.bf16.msra.mxu0 %v5168_v46  ;;  %v1994_v46 = vld [vmem:[#allocation5 + $0xe00] sm:$0xff]  ;;  %v2399_v25 = vld [vmem:[#allocation5 + $0xfe8] sm:$0xff]  ;;  %v2397_v28 = vld [vmem:[#allocation5 + $0xfd8] sm:$0xff] }
 0x1db   : > { %5249 = vmatpush1.bf16.msra.mxu1 %v5248_v14  ;;  %5171 = vmatprep.subr.bf16.mxu0 %v5170_v47  ;;  %v1998_v14 = vld [vmem:[#allocation5 + $0xe20] sm:$0xff]  ;;  %v1996_v47 = vld [vmem:[#allocation5 + $0xe10] sm:$0xff] }
 0x1dc   : > { %5251 = vmatprep.subr.bf16.mxu1 %v5250_v20  ;;  %v2007_v20 = vld [vmem:[#allocation5 + $0xe68] sm:$0xff]  ;;  %v5188_v35 = vpack.c.bf16 %v1998_v14, %v1994_v46  ;;  %v5282_v46 = vpack.c.bf16 %v2375_v41, %v2371_v40  ;;  %v2370_v14 = vld [vmem:[#allocation5 + $0xf00] sm:$0xff] }
 0x1dd   : > { %v2398_v36 = vld [vmem:[#allocation5 + $0xfe0] sm:$0xff]  ;;  %v2403_v40 = vld [vmem:[#allocation5 + $0x1008] sm:$0xff] }
 0x1de   : > { %5173 = vmatpush1.bf16.msra.mxu0 %v5172_v54  ;;  %v2039_v54 = vrot.slane %v6706_v53, 4  ;;  %v2407_v41 = vld [vmem:[#allocation5 + $0x1028] sm:$0xff] }
 0x1df   : > { %5253 = vmatpush1.bf16.msra.mxu1 %v5252_v55  ;;  %5175 = vmatprep.subr.bf16.mxu0 %v5174_v56  ;;  %v5268_v55 = vpack.c.bf16 %v2000_v49, %v1996_v47  ;;  %v5190_v56 = vpack.c.bf16 %v2007_v20, %v2003_v15  ;;  %v2374_v47 = vld [vmem:[#allocation5 + $0xf20] sm:$0xff]  ;;  %v2376_v15 = vld [vmem:[#allocation5 + $0xf30] sm:$0xff]  ;;  %v2379_v20 = vld [vmem:[#allocation5 + $0xf48] sm:$0xff] }
 0x1e0   : > { %v6690_v10 = vpop.f32.mrb[0].mxu0  ;;  %5255 = vmatprep.subr.bf16.mxu1 %v5254_v60  ;;  %v5270_v60 = vpack.c.bf16 %v2009_v51, %v2005_v50  ;;  %v2383_v50 = vld [vmem:[#allocation5 + $0xf68] sm:$0xff]  ;;  %v2381_v51 = vld [vmem:[#allocation5 + $0xf58] sm:$0xff] }
 0x1e1   : > { %v6692_v19 = vpop.f32.mrb[0].mxu1  ;;  %v6694_v24 = vpop.f32.mrb[1].mxu0 }
 0x1e2   : > { %v6696_v29 = vpop.f32.mrb[1].mxu1  ;;  %5177 = vmatpush1.bf16.msra.mxu0 %v5176_v4  ;;  %v2042_v4 = vsel %vm2029_vm2, %v2034_v39, %v2041_v3  ;;  %v2021_v39 = vld [vmem:[#allocation5 + $0xed8] sm:$0xff] }
 0x1e3   : > { %5257 = vmatpush1.bf16.msra.mxu1 %v5256_v5  ;;  %5179 = vmatprep.subr.bf16.mxu0 %v5178_v6  ;;  %v5192_v5 = vpack.c.bf16 %v2006_v58, %v2002_v57  ;;  %v2040_v6 = vsel %vm2029_vm2, %v2031_v44, %v2039_v54  ;;  %v2036_v44 = vrot.slane %v6670_v0, 4  ;;  %v2385_v3 = vld [vmem:[#allocation5 + $0xf78] sm:$0xff]  ;;  %v2382_v57 = vld [vmem:[#allocation5 + $0xf60] sm:$0xff]  ;;  %v2380_v58 = vld [vmem:[#allocation5 + $0xf50] sm:$0xff] }
 0x1e4   : > { %5259 = vmatprep.subr.bf16.mxu1 %v5258_v11  ;;  %v2014_v11 = vld [vmem:[#allocation5 + $0xea0] sm:$0xff]  ;;  %v5366_v59 = vpack.c.bf16 %v2385_v3, %v2381_v51 }
 0x1e6   : > { %5181 = vmatpush1.bf16.msra.mxu0 %v5180_v30  ;;  %v2025_v30 = vld [vmem:[#allocation5 + $0xef8] sm:$0xff] }
 0x1e7   : > { %5261 = vmatpush1.bf16.msra.mxu1 %v5260_v32  ;;  %5183 = vmatprep.subr.bf16.mxu0 %v5182_v33  ;;  %v5196_v32 = vpack.c.bf16 %v2014_v11, %v2010_v9  ;;  %v5276_v33 = vpack.c.bf16 %v2016_v16, %v2012_v12  ;;  %v5278_v38 = vpack.c.bf16 %v2025_v30, %v2021_v39  ;;  %v2386_v9 = vld [vmem:[#allocation5 + $0xf80] sm:$0xff]  ;;  %v2388_v12 = vld [vmem:[#allocation5 + $0xf90] sm:$0xff]  ;;  %v2401_v39 = vld [vmem:[#allocation5 + $0xff8] sm:$0xff] }
 0x1e8   : > { %5263 = vmatprep.subr.bf16.mxu1 %v5262_v37  ;;  %v2020_v37 = vld [vmem:[#allocation5 + $0xed0] sm:$0xff]  ;;  %v2390_v11 = vld [vmem:[#allocation5 + $0xfa0] sm:$0xff] }
 0x1e9   : > { %v2392_v16 = vld [vmem:[#allocation5 + $0xfb0] sm:$0xff] }
 0x1ea   : > { %5185 = vmatpush1.bf16.msra.mxu0 %v5184_v31  ;;  %v2377_v31 = vld [vmem:[#allocation5 + $0xf38] sm:$0xff] }
 0x1eb   : > { %5265 = vmatpush1.bf16.msra.mxu1 %v5264_v45  ;;  %5187 = vmatprep.subr.bf16.mxu0 %v5186_v23  ;;  %v2037_v45 = vrot.slane %v6675_v22, 4  ;;  %v5280_v23 = vpack.c.bf16 %v2024_v18, %v2020_v37  ;;  %v5362_v49 = vpack.c.bf16 %v2377_v31, %v2373_v42  ;;  %v6719_v22 = vld [vmem:[%s6560_s30 + $0x58] sm:$0xff]  ;;  %v2396_v37 = vld [vmem:[#allocation5 + $0xfd0] sm:$0xff]  ;;  %v2405_v42 = vld [vmem:[#allocation5 + $0x1018] sm:$0xff] }
 0x1ec   : > { %5267 = vmatprep.subr.bf16.mxu1 %v5266_v48  ;;  %v2372_v48 = vld [vmem:[#allocation5 + $0xf10] sm:$0xff]  ;;  %v2409_v31 = vld [vmem:[#allocation5 + $0x1038] sm:$0xff] }
 0x1ed   : > { %2118 = vmatmul.mubr.f32.vlgmr.msra.gmra.mrb[2].mxu0 %v2032_v27  ;;  %v2038_v0 = vsel %vm2029_vm2, %v2036_v44, %v2037_v45  ;;  %v5364_v54 = vpack.c.bf16 %v2376_v15, %v2372_v48  ;;  %v2400_v18 = vld [vmem:[#allocation5 + $0xff0] sm:$0xff]  ;;  %v2415_v15 = vld [vmem:[#allocation5 + $0x1068] sm:$0xff] }
 0x1ee   : > { %5189 = vmatpush1.bf16.msra.mxu0 %v5188_v35  ;;  %2272 = vmatmul.mubr.f32.vlgmr.msra.gmra.mrb[2].mxu1 %v2032_v27  ;;  %v5284_v27 = vpack.c.bf16 %v2374_v47, %v2370_v14  ;;  %v2043_v35 = vrot.slane %v6719_v22, 4  ;;  %v5376_v44 = vpack.c.bf16 %v2400_v18, %v2396_v37  ;;  %v2404_v14 = vld [vmem:[#allocation5 + $0x1010] sm:$0xff]  ;;  %v5378_v47 = vpack.c.bf16 %v2409_v31, %v2405_v42 }
 0x1ef   : > { %5269 = vmatpush1.bf16.msra.mxu1 %v5268_v55  ;;  %5191 = vmatprep.subr.bf16.mxu0 %v5190_v56  ;;  %v5286_v55 = vpack.c.bf16 %v2383_v50, %v2379_v20  ;;  %v2378_v56 = vld [vmem:[#allocation5 + $0xf40] sm:$0xff]  ;;  %v2408_v48 = vld [vmem:[#allocation5 + $0x1030] sm:$0xff]  ;;  %v2413_v20 = vld [vmem:[#allocation5 + $0x1058] sm:$0xff] }
 0x1f0   : > { %5271 = vmatprep.subr.bf16.mxu1 %v5270_v60  ;;  %2123 = vmatprep.mubr.f32.mxu0 %v2042_v4  ;;  %v2384_v60 = vld [vmem:[#allocation5 + $0xf70] sm:$0xff]  ;;  %v2417_v50 = vld [vmem:[#allocation5 + $0x1078] sm:$0xff]  ;;  %v5380_v3 = vpack.c.bf16 %v2408_v48, %v2404_v14 }
 0x1f1   : > { %2277 = vmatprep.mubr.f32.mxu1 %v2042_v4  ;;  %2124 = vmatmul.mubr.f32.gmra.mrb[4].mxu0 %v2040_v6  ;;  %v2538_v4 = vrot.slane %v6701_v52, 2  ;;  %v2436_v42 = vld [vmem:[#allocation5 + $0x1110] sm:$0xff] }
 0x1f2   : > { %5193 = vmatpush1.bf16.msra.mxu0 %v5192_v5  ;;  %2278 = vmatmul.mubr.f32.gmra.mrb[4].mxu1 %v2040_v6  ;;  %v5288_v5 = vpack.c.bf16 %v2382_v57, %v2378_v56  ;;  %v2044_v6 = vsel %vm2029_vm2, %v2037_v45, %v2043_v35  ;;  %v5298_v45 = vpack.c.bf16 %v2407_v41, %v2403_v40  ;;  %v2414_v35 = vld [vmem:[#allocation5 + $0x1060] sm:$0xff]  ;;  %v2416_v56 = vld [vmem:[#allocation5 + $0x1070] sm:$0xff]  ;;  %v2419_v57 = vld [vmem:[#allocation5 + $0x1088] sm:$0xff] }
 0x1f3   : > { %5273 = vmatpush1.bf16.msra.mxu1 %v5272_v7  ;;  %5195 = vmatprep.subr.bf16.mxu0 %v5194_v8  ;;  %v5368_v7 = vpack.c.bf16 %v2384_v60, %v2380_v58  ;;  %v5290_v8 = vpack.c.bf16 %v2391_v62, %v2387_v61  ;;  %v2539_v30 = vsel %vm2533_vm3, %v2537_v2, %v2538_v4  ;;  %v2423_v58 = vld [vmem:[#allocation5 + $0x10a8] sm:$0xff]  ;;  %v2425_v60 = vld [vmem:[#allocation5 + $0x10b8] sm:$0xff]  ;;  %v2422_v2 = vld [vmem:[#allocation5 + $0x10a0] sm:$0xff] }
 0x1f4   : > { %5275 = vmatprep.subr.bf16.mxu1 %v5274_v13  ;;  %2194 = vmatprep.mubr.f32.mxu0 %v6284_v26  ;;  %v5370_v13 = vpack.c.bf16 %v2393_v1, %v2389_v63  ;;  %v5306_v63 = vpack.c.bf16 %v2423_v58, %v2419_v57  ;;  %v2418_v1 = vld [vmem:[#allocation5 + $0x1080] sm:$0xff] }
 0x1f5   : > { %2348 = vmatprep.mubr.f32.mxu1 %v6284_v26  ;;  %v2434_v40 = vld [vmem:[#allocation5 + $0x1100] sm:$0xff] }
 0x1f6   : > { %5197 = vmatpush1.bf16.msra.mxu0 %v5196_v32  ;;  %v5292_v32 = vpack.c.bf16 %v2390_v11, %v2386_v9  ;;  %v2431_v9 = vld [vmem:[#allocation5 + $0x10e8] sm:$0xff]  ;;  %v2429_v11 = vld [vmem:[#allocation5 + $0x10d8] sm:$0xff]  ;;  %v2438_v41 = vld [vmem:[#allocation5 + $0x1120] sm:$0xff] }
 0x1f7   : > { %5277 = vmatpush1.bf16.msra.mxu1 %v5276_v33  ;;  %5199 = vmatprep.subr.bf16.mxu0 %v5198_v17  ;;  %v5372_v33 = vpack.c.bf16 %v2392_v16, %v2388_v12  ;;  %v5294_v17 = vpack.c.bf16 %v2399_v25, %v2395_v21  ;;  %v2433_v12 = vld [vmem:[#allocation5 + $0x10f8] sm:$0xff]  ;;  %v2426_v25 = vld [vmem:[#allocation5 + $0x10c0] sm:$0xff]  ;;  %v5316_v14 = vpack.c.bf16 %v2438_v41, %v2434_v40 }
 0x1f8   : > { %5279 = vmatprep.subr.bf16.mxu1 %v5278_v38  ;;  %v5374_v38 = vpack.c.bf16 %v2401_v39, %v2397_v28  ;;  %v2430_v28 = vld [vmem:[#allocation5 + $0x10e0] sm:$0xff]  ;;  %v2428_v39 = vld [vmem:[#allocation5 + $0x10d0] sm:$0xff]  ;;  %v2477_v40 = vld [vmem:[#allocation5 + $0x1258] sm:$0xff] }
 0x1f9   : > { %v5312_v37 = vpack.c.bf16 %v2430_v28, %v2426_v25  ;;  %v2450_v57 = vld [vmem:[#allocation5 + $0x1180] sm:$0xff]  ;;  %v2469_v25 = vld [vmem:[#allocation5 + $0x1218] sm:$0xff] }
 0x1fa   : > { %5201 = vmatpush1.bf16.msra.mxu0 %v5200_v43  ;;  %v5296_v43 = vpack.c.bf16 %v2398_v36, %v2394_v34  ;;  %v2437_v34 = vld [vmem:[#allocation5 + $0x1118] sm:$0xff]  ;;  %v2454_v58 = vld [vmem:[#allocation5 + $0x11a0] sm:$0xff] }
 0x1fb   : > { %5281 = vmatpush1.bf16.msra.mxu1 %v5280_v23  ;;  %5283 = vmatprep.subr.bf16.mxu0 %v5282_v46  ;;  %v2402_v23 = vld [vmem:[#allocation5 + $0x1000] sm:$0xff]  ;;  %v2441_v36 = vld [vmem:[#allocation5 + $0x1138] sm:$0xff] }
 0x1fc   : > { %5363 = vmatprep.subr.bf16.mxu1 %v5362_v49  ;;  %v2406_v46 = vld [vmem:[#allocation5 + $0x1020] sm:$0xff]  ;;  %v2411_v49 = vld [vmem:[#allocation5 + $0x1048] sm:$0xff]  ;;  %v5394_v31 = vpack.c.bf16 %v2441_v36, %v2437_v34  ;;  %v2473_v28 = vld [vmem:[#allocation5 + $0x1238] sm:$0xff] }
 0x1fd   : > { %4365 = vmatmul.mubr.msk.f32.vlgmr.msra.gmra.mrb[2].mxu0 %vm374_vm0, %v2038_v0  ;;  %v5300_v51 = vpack.c.bf16 %v2406_v46, %v2402_v23  ;;  %v2445_v23 = vld [vmem:[#allocation5 + $0x1158] sm:$0xff]  ;;  %v2468_v34 = vld [vmem:[#allocation5 + $0x1210] sm:$0xff]  ;;  %v5410_v36 = vpack.c.bf16 %v2473_v28, %v2469_v25  ;;  %v2498_v28 = vld [vmem:[#allocation5 + $0x1300] sm:$0xff] }
 0x1fe   : > { %4367 = vmatmul.mubr.msk.f32.vlgmr.msra.gmra.mrb[2].mxu1 %vm374_vm0, %v2038_v0  ;;  %5285 = vmatpush1.bf16.msra.mxu0 %v5284_v27  ;;  %v5302_v0 = vpack.c.bf16 %v2415_v15, %v2411_v49  ;;  %v2410_v27 = vld [vmem:[#allocation5 + $0x1040] sm:$0xff]  ;;  %v2449_v46 = vld [vmem:[#allocation5 + $0x1178] sm:$0xff] }
 0x1ff   : > { %5365 = vmatpush1.bf16.msra.mxu1 %v5364_v54  ;;  %5287 = vmatprep.subr.bf16.mxu0 %v5286_v55  ;;  %v2412_v54 = vld [vmem:[#allocation5 + $0x1050] sm:$0xff]  ;;  %v5382_v55 = vpack.c.bf16 %v2417_v50, %v2413_v20  ;;  %v5304_v61 = vpack.c.bf16 %v2414_v35, %v2410_v27  ;;  %v2442_v49 = vld [vmem:[#allocation5 + $0x1140] sm:$0xff]  ;;  %v5398_v50 = vpack.c.bf16 %v2449_v46, %v2445_v23  ;;  %v2453_v27 = vld [vmem:[#allocation5 + $0x1198] sm:$0xff] }
 0x200   : > { %5367 = vmatprep.subr.bf16.mxu1 %v5366_v59  ;;  %2200 = vmatprep.mubr.f32.mxu0 %v6284_v26  ;;  %v2421_v59 = vld [vmem:[#allocation5 + $0x1098] sm:$0xff]  ;;  %v5384_v62 = vpack.c.bf16 %v2416_v56, %v2412_v54  ;;  %v2446_v15 = vld [vmem:[#allocation5 + $0x1160] sm:$0xff]  ;;  %v2444_v20 = vld [vmem:[#allocation5 + $0x1150] sm:$0xff] }
 0x201   : > { %2354 = vmatprep.mubr.f32.mxu1 %v6284_v26  ;;  %4366 = vmatmul.mubr.msk.f32.gmra.mrb[4].mxu0 %vm374_vm0, %v2044_v6  ;;  %v2457_v35 = vld [vmem:[#allocation5 + $0x11b8] sm:$0xff]  ;;  %v5320_v54 = vpack.c.bf16 %v2446_v15, %v2442_v49  ;;  %v2476_v23 = vld [vmem:[#allocation5 + $0x1250] sm:$0xff] }
 0x202   : > { %5289 = vmatpush1.bf16.msra.mxu0 %v5288_v5  ;;  %4368 = vmatmul.mubr.msk.f32.gmra.mrb[4].mxu1 %vm374_vm0, %v2044_v6  ;;  %v2420_v5 = vld [vmem:[#allocation5 + $0x1090] sm:$0xff]  ;;  %v5386_v6 = vpack.c.bf16 %v2425_v60, %v2421_v59  ;;  %v5402_v60 = vpack.c.bf16 %v2457_v35, %v2453_v27  ;;  %v2481_v41 = vld [vmem:[#allocation5 + $0x1278] sm:$0xff] }
 0x203   : > { %5369 = vmatpush1.bf16.msra.mxu1 %v5368_v7  ;;  %5291 = vmatprep.subr.bf16.mxu0 %v5290_v8  ;;  %v2424_v7 = vld [vmem:[#allocation5 + $0x10b0] sm:$0xff]  ;;  %v2427_v8 = vld [vmem:[#allocation5 + $0x10c8] sm:$0xff]  ;;  %v5414_v46 = vpack.c.bf16 %v2481_v41, %v2477_v40  ;;  %v2485_v49 = vld [vmem:[#allocation5 + $0x1298] sm:$0xff] }
 0x204   : > { %5371 = vmatprep.subr.bf16.mxu1 %v5370_v13  ;;  %2621 = vmatprep.mubr.f32.mxu0 %v2539_v30  ;;  %v5308_v13 = vpack.c.bf16 %v2422_v2, %v2418_v1  ;;  %v5388_v16 = vpack.c.bf16 %v2424_v7, %v2420_v5  ;;  %v5310_v21 = vpack.c.bf16 %v2431_v9, %v2427_v8  ;;  %v2452_v59 = vld [vmem:[#allocation5 + $0x1190] sm:$0xff]  ;;  %v2461_v1 = vld [vmem:[#allocation5 + $0x11d8] sm:$0xff]  ;;  %v2458_v8 = vld [vmem:[#allocation5 + $0x11c0] sm:$0xff] }
 0x205   : > { %2775 = vmatprep.mubr.f32.mxu1 %v2539_v30  ;;  %v5390_v30 = vpack.c.bf16 %v2433_v12, %v2429_v11  ;;  %v2465_v2 = vld [vmem:[#allocation5 + $0x11f8] sm:$0xff]  ;;  %v5324_v5 = vpack.c.bf16 %v2454_v58, %v2450_v57  ;;  %v2462_v9 = vld [vmem:[#allocation5 + $0x11e0] sm:$0xff]  ;;  %v2460_v11 = vld [vmem:[#allocation5 + $0x11d0] sm:$0xff] }
 0x206   : > { %5293 = vmatpush1.bf16.msra.mxu0 %v5292_v32  ;;  %v2432_v32 = vld [vmem:[#allocation5 + $0x10f0] sm:$0xff]  ;;  %v5406_v12 = vpack.c.bf16 %v2465_v2, %v2461_v1  ;;  %v2489_v15 = vld [vmem:[#allocation5 + $0x12b8] sm:$0xff] }
 0x207   : > { %5373 = vmatpush1.bf16.msra.mxu1 %v5372_v33  ;;  %5295 = vmatprep.subr.bf16.mxu0 %v5294_v17  ;;  %v2435_v33 = vld [vmem:[#allocation5 + $0x1108] sm:$0xff]  ;;  %v2484_v27 = vld [vmem:[#allocation5 + $0x1290] sm:$0xff]  ;;  %v5418_v35 = vpack.c.bf16 %v2489_v15, %v2485_v49  ;;  %v2493_v57 = vld [vmem:[#allocation5 + $0x12d8] sm:$0xff] }
 0x208   : > { %5375 = vmatprep.subr.bf16.mxu1 %v5374_v38  ;;  %v2439_v17 = vld [vmem:[#allocation5 + $0x1128] sm:$0xff]  ;;  %v5392_v38 = vpack.c.bf16 %v2432_v32, %v2428_v39  ;;  %v5328_v39 = vpack.c.bf16 %v2462_v9, %v2458_v8  ;;  %v2497_v58 = vld [vmem:[#allocation5 + $0x12f8] sm:$0xff]  ;;  %v2492_v1 = vld [vmem:[#allocation5 + $0x12d0] sm:$0xff] }
 0x209   : > { %v5314_v18 = vpack.c.bf16 %v2439_v17, %v2435_v33  ;;  %v2466_v33 = vld [vmem:[#allocation5 + $0x1200] sm:$0xff]  ;;  %v5422_v2 = vpack.c.bf16 %v2497_v58, %v2493_v57  ;;  %v2501_v8 = vld [vmem:[#allocation5 + $0x1318] sm:$0xff]  ;;  %v6742_v41 = vld [vmem:[%s6560_s30 + $0x60] sm:$0xff] }
 0x20a   : > { %5297 = vmatpush1.bf16.msra.mxu0 %v5296_v43  ;;  %v2440_v43 = vld [vmem:[#allocation5 + $0x1130] sm:$0xff]  ;;  %v2470_v17 = vld [vmem:[#allocation5 + $0x1220] sm:$0xff]  ;;  %v2505_v9 = vld [vmem:[#allocation5 + $0x1338] sm:$0xff] }
 0x20b   : > { %5377 = vmatpush1.bf16.msra.mxu1 %v5376_v44  ;;  %5299 = vmatprep.subr.bf16.mxu0 %v5298_v45  ;;  %v2443_v44 = vld [vmem:[#allocation5 + $0x1148] sm:$0xff]  ;;  %v2517_v49 = vld [vmem:[#allocation5 + $0x1398] sm:$0xff] }
 0x20c   : > { %5379 = vmatprep.subr.bf16.mxu1 %v5378_v47  ;;  %v2447_v45 = vld [vmem:[#allocation5 + $0x1168] sm:$0xff]  ;;  %v5396_v47 = vpack.c.bf16 %v2440_v43, %v2436_v42  ;;  %v5332_v42 = vpack.c.bf16 %v2470_v17, %v2466_v33  ;;  %v2504_v33 = vld [vmem:[#allocation5 + $0x1330] sm:$0xff]  ;;  %v2521_v15 = vld [vmem:[#allocation5 + $0x13b8] sm:$0xff] }
 0x20d   : > { %v5318_v48 = vpack.c.bf16 %v2447_v45, %v2443_v44  ;;  %v2474_v44 = vld [vmem:[#allocation5 + $0x1240] sm:$0xff]  ;;  %v2507_v17 = vld [vmem:[#allocation5 + $0x1348] sm:$0xff] }
 0x20e   : > { %5301 = vmatpush1.bf16.msra.mxu0 %v5300_v51  ;;  %v2448_v51 = vld [vmem:[#allocation5 + $0x1170] sm:$0xff]  ;;  %v2478_v45 = vld [vmem:[#allocation5 + $0x1260] sm:$0xff]  ;;  %v2523_v57 = vld [vmem:[#allocation5 + $0x13c8] sm:$0xff] }
 0x20f   : > { %5381 = vmatpush1.bf16.msra.mxu1 %v5380_v3  ;;  %5303 = vmatprep.subr.bf16.mxu0 %v5302_v0  ;;  %v2451_v3 = vld [vmem:[#allocation5 + $0x1188] sm:$0xff] }
 0x210   : > { %5383 = vmatprep.subr.bf16.mxu1 %v5382_v55  ;;  %v2455_v0 = vld [vmem:[#allocation5 + $0x11a8] sm:$0xff]  ;;  %v5400_v55 = vpack.c.bf16 %v2448_v51, %v2444_v20  ;;  %v5336_v20 = vpack.c.bf16 %v2478_v45, %v2474_v44  ;;  %v2506_v44 = vld [vmem:[#allocation5 + $0x1340] sm:$0xff] }
 0x211   : > { %v5322_v56 = vpack.c.bf16 %v2455_v0, %v2451_v3  ;;  %v2482_v3 = vld [vmem:[#allocation5 + $0x1280] sm:$0xff]  ;;  %v2527_v58 = vld [vmem:[#allocation5 + $0x13e8] sm:$0xff] }
 0x212   : > { %5305 = vmatpush1.bf16.msra.mxu0 %v5304_v61  ;;  %v2456_v61 = vld [vmem:[#allocation5 + $0x11b0] sm:$0xff]  ;;  %v2486_v0 = vld [vmem:[#allocation5 + $0x12a0] sm:$0xff] }
 0x213   : > { %5385 = vmatpush1.bf16.msra.mxu1 %v5384_v62  ;;  %5307 = vmatprep.subr.bf16.mxu0 %v5306_v63  ;;  %v2459_v62 = vld [vmem:[#allocation5 + $0x11c8] sm:$0xff]  ;;  %v2510_v45 = vld [vmem:[#allocation5 + $0x1360] sm:$0xff] }
 0x214   : > { %5387 = vmatprep.subr.bf16.mxu1 %v5386_v6  ;;  %v2463_v63 = vld [vmem:[#allocation5 + $0x11e8] sm:$0xff]  ;;  %v5404_v6 = vpack.c.bf16 %v2456_v61, %v2452_v59  ;;  %v5340_v59 = vpack.c.bf16 %v2486_v0, %v2482_v3 }
 0x215   : > { %v5326_v7 = vpack.c.bf16 %v2463_v63, %v2459_v62  ;;  %v2490_v62 = vld [vmem:[#allocation5 + $0x12c0] sm:$0xff] }
 0x216   : > { %5309 = vmatpush1.bf16.msra.mxu0 %v5308_v13  ;;  %v2464_v13 = vld [vmem:[#allocation5 + $0x11f0] sm:$0xff]  ;;  %v2494_v63 = vld [vmem:[#allocation5 + $0x12e0] sm:$0xff] }
 0x217   : > { %5389 = vmatpush1.bf16.msra.mxu1 %v5388_v16  ;;  %5311 = vmatprep.subr.bf16.mxu0 %v5310_v21  ;;  %v2467_v16 = vld [vmem:[#allocation5 + $0x1208] sm:$0xff] }
 0x218   : > { %5391 = vmatprep.subr.bf16.mxu1 %v5390_v30  ;;  %v2471_v21 = vld [vmem:[#allocation5 + $0x1228] sm:$0xff]  ;;  %v5408_v30 = vpack.c.bf16 %v2464_v13, %v2460_v11  ;;  %v5344_v11 = vpack.c.bf16 %v2494_v63, %v2490_v62  ;;  %v5358_v62 = vpack.c.bf16 %v2527_v58, %v2523_v57  ;;  %v2522_v63 = vld [vmem:[#allocation5 + $0x13c0] sm:$0xff]  ;;  %v2901_v58 = vld [vmem:[#allocation5 + $0x14d8] sm:$0xff] }
 0x219   : > { %v5330_v32 = vpack.c.bf16 %v2471_v21, %v2467_v16  ;;  %v2535_v16 = vrot.slane %v6706_v53, 2  ;;  %v2903_v57 = vld [vmem:[#allocation5 + $0x14e8] sm:$0xff] }
 0x21a   : > { %5313 = vmatpush1.bf16.msra.mxu0 %v5312_v37  ;;  %v2472_v37 = vld [vmem:[#allocation5 + $0x1230] sm:$0xff] }
 0x21b   : > { %5393 = vmatpush1.bf16.msra.mxu1 %v5392_v38  ;;  %5315 = vmatprep.subr.bf16.mxu0 %v5314_v18  ;;  %v2475_v38 = vld [vmem:[#allocation5 + $0x1248] sm:$0xff] }
 0x21c   : > { %5395 = vmatprep.subr.bf16.mxu1 %v5394_v31  ;;  %v2479_v18 = vld [vmem:[#allocation5 + $0x1268] sm:$0xff]  ;;  %v5412_v31 = vpack.c.bf16 %v2472_v37, %v2468_v34  ;;  %v2513_v37 = vld [vmem:[#allocation5 + $0x1378] sm:$0xff] }
 0x21d   : > { %v5334_v43 = vpack.c.bf16 %v2479_v18, %v2475_v38  ;;  %v2511_v34 = vld [vmem:[#allocation5 + $0x1368] sm:$0xff]  ;;  %v6737_v38 = vld [vmem:[%s6560_s30 + $0x68] sm:$0xff] }
 0x21e   : > { %5317 = vmatpush1.bf16.msra.mxu0 %v5316_v14  ;;  %v2480_v14 = vld [vmem:[#allocation5 + $0x1270] sm:$0xff]  ;;  %v2545_v18 = vrot.slane %v6737_v38, 2 }
 0x21f   : > { %5397 = vmatpush1.bf16.msra.mxu1 %v5396_v47  ;;  %5319 = vmatprep.subr.bf16.mxu0 %v5318_v48  ;;  %v2483_v47 = vld [vmem:[#allocation5 + $0x1288] sm:$0xff] }
 0x220   : > { %5399 = vmatprep.subr.bf16.mxu1 %v5398_v50  ;;  %v2487_v48 = vld [vmem:[#allocation5 + $0x12a8] sm:$0xff]  ;;  %v5416_v50 = vpack.c.bf16 %v2480_v14, %v2476_v23  ;;  %v2508_v23 = vld [vmem:[#allocation5 + $0x1350] sm:$0xff] }
 0x221   : > { %v5338_v51 = vpack.c.bf16 %v2487_v48, %v2483_v47  ;;  %v2512_v14 = vld [vmem:[#allocation5 + $0x1370] sm:$0xff]  ;;  %v2515_v47 = vld [vmem:[#allocation5 + $0x1388] sm:$0xff] }
 0x222   : > { %5321 = vmatpush1.bf16.msra.mxu0 %v5320_v54  ;;  %v2488_v54 = vld [vmem:[#allocation5 + $0x12b0] sm:$0xff]  ;;  %v2519_v48 = vld [vmem:[#allocation5 + $0x13a8] sm:$0xff]  ;;  %v5432_v3 = vpack.c.bf16 %v2512_v14, %v2508_v23 }
 0x223   : > { %5401 = vmatpush1.bf16.msra.mxu1 %v5400_v55  ;;  %5323 = vmatprep.subr.bf16.mxu0 %v5322_v56  ;;  %v2491_v55 = vld [vmem:[#allocation5 + $0x12c8] sm:$0xff]  ;;  %v5354_v0 = vpack.c.bf16 %v2519_v48, %v2515_v47  ;;  %v2884_v23 = vld [vmem:[#allocation5 + $0x1450] sm:$0xff] }
 0x224   : > { %5403 = vmatprep.subr.bf16.mxu1 %v5402_v60  ;;  %v2495_v56 = vld [vmem:[#allocation5 + $0x12e8] sm:$0xff]  ;;  %v5420_v60 = vpack.c.bf16 %v2488_v54, %v2484_v27  ;;  %v2514_v27 = vld [vmem:[#allocation5 + $0x1380] sm:$0xff]  ;;  %v2516_v54 = vld [vmem:[#allocation5 + $0x1390] sm:$0xff] }
 0x225   : > { %v5342_v61 = vpack.c.bf16 %v2495_v56, %v2491_v55  ;;  %v5434_v55 = vpack.c.bf16 %v2521_v15, %v2517_v49  ;;  %v2520_v56 = vld [vmem:[#allocation5 + $0x13b0] sm:$0xff]  ;;  %v2891_v47 = vld [vmem:[#allocation5 + $0x1488] sm:$0xff]  ;;  %v2893_v49 = vld [vmem:[#allocation5 + $0x1498] sm:$0xff] }
 0x226   : > { %5325 = vmatpush1.bf16.msra.mxu0 %v5324_v5  ;;  %v2496_v5 = vld [vmem:[#allocation5 + $0x12f0] sm:$0xff]  ;;  %v2895_v48 = vld [vmem:[#allocation5 + $0x14a8] sm:$0xff]  ;;  %v2897_v15 = vld [vmem:[#allocation5 + $0x14b8] sm:$0xff] }
 0x227   : > { %5405 = vmatpush1.bf16.msra.mxu1 %v5404_v6  ;;  %5327 = vmatprep.subr.bf16.mxu0 %v5326_v7  ;;  %v2499_v6 = vld [vmem:[#allocation5 + $0x1308] sm:$0xff]  ;;  %v5424_v21 = vpack.c.bf16 %v2496_v5, %v2492_v1  ;;  %v2526_v1 = vld [vmem:[#allocation5 + $0x13e0] sm:$0xff]  ;;  %v2888_v14 = vld [vmem:[#allocation5 + $0x1470] sm:$0xff] }
 0x228   : > { %5407 = vmatprep.subr.bf16.mxu1 %v5406_v12  ;;  %v2503_v7 = vld [vmem:[#allocation5 + $0x1328] sm:$0xff]  ;;  %v6015_v12 = vld [vmem:[%s6560_s30 + $0x30] sm:$0xff] }
 0x229   : > { %v2534_v13 = vrot.slane %v6015_v12, 2  ;;  %v5346_v25 = vpack.c.bf16 %v2503_v7, %v2499_v6  ;;  %v2528_v6 = vld [vmem:[#allocation5 + $0x13f0] sm:$0xff]  ;;  %v2875_v7 = vld [vmem:[#allocation5 + $0x1408] sm:$0xff]  ;;  %v5360_v12 = vpack.c.bf16 %v2526_v1, %v2522_v63  ;;  %v2902_v63 = vld [vmem:[#allocation5 + $0x14e0] sm:$0xff] }
 0x22a   : > { %5329 = vmatpush1.bf16.msra.mxu0 %v5328_v39  ;;  %v2502_v39 = vld [vmem:[#allocation5 + $0x1320] sm:$0xff]  ;;  %v2900_v1 = vld [vmem:[#allocation5 + $0x14d0] sm:$0xff] }
 0x22b   : > { %5409 = vmatpush1.bf16.msra.mxu1 %v5408_v30  ;;  %5331 = vmatprep.subr.bf16.mxu0 %v5330_v32  ;;  %v2500_v30 = vld [vmem:[#allocation5 + $0x1310] sm:$0xff]  ;;  %v5426_v32 = vpack.c.bf16 %v2505_v9, %v2501_v8  ;;  %v2536_v53 = vsel %vm2533_vm3, %v2534_v13, %v2535_v16  ;;  %v5348_v40 = vpack.c.bf16 %v2502_v39, %v2498_v28  ;;  %v2879_v8 = vld [vmem:[#allocation5 + $0x1428] sm:$0xff]  ;;  %v2877_v9 = vld [vmem:[#allocation5 + $0x1418] sm:$0xff] }
 0x22c   : > { %5411 = vmatprep.subr.bf16.mxu1 %v5410_v36  ;;  %v2509_v36 = vld [vmem:[#allocation5 + $0x1358] sm:$0xff]  ;;  %v6018_v13 = vld [vmem:[%s6560_s30 + $0x40] sm:$0xff]  ;;  %v5442_v28 = vpack.c.bf16 %v2879_v8, %v2875_v7  ;;  %v2874_v39 = vld [vmem:[#allocation5 + $0x1400] sm:$0xff] }
 0x22d   : > { %v2911_v7 = vld [vmem:[#allocation5 + $0x1528] sm:$0xff]  ;;  %v2909_v8 = vld [vmem:[#allocation5 + $0x1518] sm:$0xff] }
 0x22e   : > { %5333 = vmatpush1.bf16.msra.mxu0 %v5332_v42  ;;  %v2543_v42 = vrot.slane %v6742_v41, 2 }
 0x22f   : > { %5413 = vmatpush1.bf16.msra.mxu1 %v5412_v31  ;;  %5335 = vmatprep.subr.bf16.mxu0 %v5334_v43  ;;  %v5428_v31 = vpack.c.bf16 %v2504_v33, %v2500_v30  ;;  %v5350_v43 = vpack.c.bf16 %v2511_v34, %v2507_v17  ;;  %v2878_v30 = vld [vmem:[#allocation5 + $0x1420] sm:$0xff]  ;;  %v2880_v17 = vld [vmem:[#allocation5 + $0x1430] sm:$0xff]  ;;  %v2883_v34 = vld [vmem:[#allocation5 + $0x1448] sm:$0xff] }
 0x230   : > { %5415 = vmatprep.subr.bf16.mxu1 %v5414_v46  ;;  %v5430_v46 = vpack.c.bf16 %v2513_v37, %v2509_v36  ;;  %v2887_v36 = vld [vmem:[#allocation5 + $0x1468] sm:$0xff]  ;;  %v2885_v37 = vld [vmem:[#allocation5 + $0x1458] sm:$0xff] }
 0x232   : > { %5337 = vmatpush1.bf16.msra.mxu0 %v5336_v20  ;;  %v2546_v20 = vsel %vm2533_vm3, %v2538_v4, %v2545_v18  ;;  %v2525_v4 = vld [vmem:[#allocation5 + $0x13d8] sm:$0xff] }
 0x233   : > { %5417 = vmatpush1.bf16.msra.mxu1 %v5416_v50  ;;  %5339 = vmatprep.subr.bf16.mxu0 %v5338_v51  ;;  %v5352_v50 = vpack.c.bf16 %v2510_v45, %v2506_v44  ;;  %v2544_v51 = vsel %vm2533_vm3, %v2535_v16, %v2543_v42  ;;  %v2540_v16 = vrot.slane %v6018_v13, 2  ;;  %v2889_v18 = vld [vmem:[#allocation5 + $0x1478] sm:$0xff]  ;;  %v2882_v44 = vld [vmem:[#allocation5 + $0x1440] sm:$0xff] }
 0x234   : > { %5419 = vmatprep.subr.bf16.mxu1 %v5418_v35  ;;  %v2518_v35 = vld [vmem:[#allocation5 + $0x13a0] sm:$0xff] }
 0x235   : > { %v2886_v45 = vld [vmem:[#allocation5 + $0x1460] sm:$0xff] }
 0x236   : > { %5341 = vmatpush1.bf16.msra.mxu0 %v5340_v59  ;;  %v2529_v59 = vld [vmem:[#allocation5 + $0x13f8] sm:$0xff] }
 0x237   : > { %5421 = vmatpush1.bf16.msra.mxu1 %v5420_v60  ;;  %5343 = vmatprep.subr.bf16.mxu0 %v5342_v61  ;;  %v5356_v60 = vpack.c.bf16 %v2518_v35, %v2514_v27  ;;  %v5436_v61 = vpack.c.bf16 %v2520_v56, %v2516_v54  ;;  %v5438_v5 = vpack.c.bf16 %v2529_v59, %v2525_v4  ;;  %v2894_v27 = vld [vmem:[#allocation5 + $0x14a0] sm:$0xff]  ;;  %v2892_v35 = vld [vmem:[#allocation5 + $0x1490] sm:$0xff]  ;;  %v2899_v56 = vld [vmem:[#allocation5 + $0x14c8] sm:$0xff] }
 0x238   : > { %5423 = vmatprep.subr.bf16.mxu1 %v5422_v2  ;;  %v2524_v2 = vld [vmem:[#allocation5 + $0x13d0] sm:$0xff]  ;;  %v5530_v54 = vpack.c.bf16 %v2897_v15, %v2893_v49  ;;  %v2905_v4 = vld [vmem:[#allocation5 + $0x14f8] sm:$0xff] }
 0x239   : > { %v2924_v49 = vld [vmem:[#allocation5 + $0x1590] sm:$0xff] }
 0x23a   : > { %5345 = vmatpush1.bf16.msra.mxu0 %v5344_v11  ;;  %v2881_v11 = vld [vmem:[#allocation5 + $0x1438] sm:$0xff] }
 0x23b   : > { %5425 = vmatpush1.bf16.msra.mxu1 %v5424_v21  ;;  %5347 = vmatprep.subr.bf16.mxu0 %v5346_v25  ;;  %v2541_v21 = vrot.slane %v6719_v22, 2  ;;  %v5440_v25 = vpack.c.bf16 %v2528_v6, %v2524_v2  ;;  %v5522_v33 = vpack.c.bf16 %v2881_v11, %v2877_v9  ;;  %v6755_v22 = vld [vmem:[%s6560_s30 + $0x70] sm:$0xff]  ;;  %v5534_v2 = vpack.c.bf16 %v2905_v4, %v2901_v58  ;;  %v2907_v6 = vld [vmem:[#allocation5 + $0x1508] sm:$0xff]  ;;  %v2936_v4 = vld [vmem:[#allocation5 + $0x15f0] sm:$0xff] }
 0x23c   : > { %5427 = vmatprep.subr.bf16.mxu1 %v5426_v32  ;;  %v2876_v32 = vld [vmem:[#allocation5 + $0x1410] sm:$0xff]  ;;  %v2547_v42 = vrot.slane %v6755_v22, 2  ;;  %v2913_v9 = vld [vmem:[#allocation5 + $0x1538] sm:$0xff]  ;;  %v5458_v13 = vpack.c.bf16 %v2911_v7, %v2907_v6  ;;  %v2942_v6 = vld [vmem:[#allocation5 + $0x1620] sm:$0xff] }
 0x23d   : > { %2622 = vmatmul.mubr.f32.vlgmr.msra.gmra.mrb[2].mxu0 %v2536_v53  ;;  %v2940_v7 = vld [vmem:[#allocation5 + $0x1610] sm:$0xff] }
 0x23e   : > { %5349 = vmatpush1.bf16.msra.mxu0 %v5348_v40  ;;  %2776 = vmatmul.mubr.f32.vlgmr.msra.gmra.mrb[2].mxu1 %v2536_v53  ;;  %v2542_v53 = vsel %vm2533_vm3, %v2540_v16, %v2541_v21  ;;  %v5444_v40 = vpack.c.bf16 %v2878_v30, %v2874_v39  ;;  %v2906_v16 = vld [vmem:[#allocation5 + $0x1500] sm:$0xff]  ;;  %v2912_v39 = vld [vmem:[#allocation5 + $0x1530] sm:$0xff]  ;;  %v2915_v30 = vld [vmem:[#allocation5 + $0x1548] sm:$0xff] }
 0x23f   : > { %5429 = vmatpush1.bf16.msra.mxu1 %v5428_v31  ;;  %5351 = vmatprep.subr.bf16.mxu0 %v5350_v43  ;;  %v5524_v31 = vpack.c.bf16 %v2880_v17, %v2876_v32  ;;  %v5446_v43 = vpack.c.bf16 %v2887_v36, %v2883_v34  ;;  %v2919_v32 = vld [vmem:[#allocation5 + $0x1568] sm:$0xff]  ;;  %v2921_v17 = vld [vmem:[#allocation5 + $0x1578] sm:$0xff] }
 0x240   : > { %5431 = vmatprep.subr.bf16.mxu1 %v5430_v46  ;;  %2627 = vmatprep.mubr.f32.mxu0 %v2546_v20  ;;  %v5526_v46 = vpack.c.bf16 %v2889_v18, %v2885_v37  ;;  %v5462_v36 = vpack.c.bf16 %v2919_v32, %v2915_v30  ;;  %v2914_v37 = vld [vmem:[#allocation5 + $0x1540] sm:$0xff]  ;;  %v2948_v32 = vld [vmem:[#allocation5 + $0x1650] sm:$0xff] }
 0x241   : > { %2781 = vmatprep.mubr.f32.mxu1 %v2546_v20  ;;  %2628 = vmatmul.mubr.f32.gmra.mrb[4].mxu0 %v2544_v51  ;;  %v5448_v20 = vpack.c.bf16 %v2886_v45, %v2882_v44  ;;  %v2918_v18 = vld [vmem:[#allocation5 + $0x1560] sm:$0xff]  ;;  %v2925_v44 = vld [vmem:[#allocation5 + $0x1598] sm:$0xff] }
 0x242   : > { %5353 = vmatpush1.bf16.msra.mxu0 %v5352_v50  ;;  %2782 = vmatmul.mubr.f32.gmra.mrb[4].mxu1 %v2544_v51  ;;  %v2548_v50 = vsel %vm2533_vm3, %v2541_v21, %v2547_v42  ;;  %v5528_v51 = vpack.c.bf16 %v2888_v14, %v2884_v23  ;;  %v2910_v21 = vld [vmem:[#allocation5 + $0x1520] sm:$0xff]  ;;  %v2920_v42 = vld [vmem:[#allocation5 + $0x1570] sm:$0xff]  ;;  %v2929_v45 = vld [vmem:[#allocation5 + $0x15b8] sm:$0xff]  ;;  %v5464_v23 = vpack.c.bf16 %v2918_v18, %v2914_v37 }
 0x243   : > { %5433 = vmatpush1.bf16.msra.mxu1 %v5432_v3  ;;  %5355 = vmatprep.subr.bf16.mxu0 %v5354_v0  ;;  %v5450_v3 = vpack.c.bf16 %v2895_v48, %v2891_v47  ;;  %v2890_v0 = vld [vmem:[#allocation5 + $0x1480] sm:$0xff]  ;;  %v5460_v34 = vpack.c.bf16 %v2910_v21, %v2906_v16  ;;  %v5546_v15 = vpack.c.bf16 %v2929_v45, %v2925_v44  ;;  %v2953_v16 = vld [vmem:[#allocation5 + $0x1678] sm:$0xff]  ;;  %v2960_v45 = vld [vmem:[#allocation5 + $0x16b0] sm:$0xff] }
 0x244   : > { %5435 = vmatprep.subr.bf16.mxu1 %v5434_v55  ;;  %2698 = vmatprep.mubr.f32.mxu0 %v6284_v26  ;;  %v2896_v55 = vld [vmem:[#allocation5 + $0x14b0] sm:$0xff]  ;;  %v5452_v59 = vpack.c.bf16 %v2894_v27, %v2890_v0  ;;  %v2922_v47 = vld [vmem:[#allocation5 + $0x1580] sm:$0xff]  ;;  %v2937_v0 = vld [vmem:[#allocation5 + $0x15f8] sm:$0xff] }
 0x245   : > { %2852 = vmatprep.mubr.f32.mxu1 %v6284_v26  ;;  %v2926_v48 = vld [vmem:[#allocation5 + $0x15a0] sm:$0xff]  ;;  %v2961_v37 = vld [vmem:[#allocation5 + $0x16b8] sm:$0xff] }
 0x246   : > { %5357 = vmatpush1.bf16.msra.mxu0 %v5356_v60  ;;  %v5532_v60 = vpack.c.bf16 %v2896_v55, %v2892_v35  ;;  %v5468_v27 = vpack.c.bf16 %v2926_v48, %v2922_v47  ;;  %v2930_v55 = vld [vmem:[#allocation5 + $0x15c0] sm:$0xff]  ;;  %v2969_v47 = vld [vmem:[#allocation5 + $0x16f8] sm:$0xff] }
 0x247   : > { %5437 = vmatpush1.bf16.msra.mxu1 %v5436_v61  ;;  %5359 = vmatprep.subr.bf16.mxu0 %v5358_v62  ;;  %v5454_v61 = vpack.c.bf16 %v2903_v57, %v2899_v56  ;;  %v2898_v62 = vld [vmem:[#allocation5 + $0x14c0] sm:$0xff]  ;;  %v2932_v57 = vld [vmem:[#allocation5 + $0x15d0] sm:$0xff] }
 0x248   : > { %5439 = vmatprep.subr.bf16.mxu1 %v5438_v5  ;;  %v2904_v5 = vld [vmem:[#allocation5 + $0x14f0] sm:$0xff]  ;;  %v5456_v11 = vpack.c.bf16 %v2902_v63, %v2898_v62  ;;  %v2934_v56 = vld [vmem:[#allocation5 + $0x15e0] sm:$0xff]  ;;  %v2945_v62 = vld [vmem:[#allocation5 + $0x1638] sm:$0xff] }
 0x249   : > { %v5472_v63 = vpack.c.bf16 %v2934_v56, %v2930_v55  ;;  %v2950_v30 = vld [vmem:[#allocation5 + $0x1660] sm:$0xff]  ;;  %v2977_v55 = vld [vmem:[#allocation5 + $0x1738] sm:$0xff] }
 0x24a   : > { %5361 = vmatpush1.bf16.msra.mxu0 %v5360_v12  ;;  %v5536_v12 = vpack.c.bf16 %v2904_v5, %v2900_v1  ;;  %v5552_v1 = vpack.c.bf16 %v2936_v4, %v2932_v57  ;;  %v2938_v5 = vld [vmem:[#allocation5 + $0x1600] sm:$0xff] }
 0x24b   : > { %5441 = vmatpush1.bf16.msra.mxu1 %v5440_v25  ;;  %5443 = vmatprep.subr.bf16.mxu0 %v5442_v28  ;;  %v2908_v25 = vld [vmem:[#allocation5 + $0x1510] sm:$0xff]  ;;  %v5538_v28 = vpack.c.bf16 %v2913_v9, %v2909_v8  ;;  %v5476_v21 = vpack.c.bf16 %v2942_v6, %v2938_v5  ;;  %v2970_v4 = vld [vmem:[#allocation5 + $0x1700] sm:$0xff]  ;;  %v2985_v5 = vld [vmem:[#allocation5 + $0x1778] sm:$0xff] }
 0x24c   : > { %5523 = vmatprep.subr.bf16.mxu1 %v5522_v33  ;;  %v2917_v33 = vld [vmem:[#allocation5 + $0x1558] sm:$0xff]  ;;  %v2944_v9 = vld [vmem:[#allocation5 + $0x1630] sm:$0xff] }
 0x24d   : > { %4369 = vmatmul.mubr.msk.f32.vlgmr.msra.gmra.mrb[2].mxu0 %vm374_vm0, %v2542_v53 }
 0x24e   : > { %4371 = vmatmul.mubr.msk.f32.vlgmr.msra.gmra.mrb[2].mxu1 %vm374_vm0, %v2542_v53  ;;  %5445 = vmatpush1.bf16.msra.mxu0 %v5444_v40  ;;  %v2916_v53 = vld [vmem:[#allocation5 + $0x1550] sm:$0xff]  ;;  %v5542_v40 = vpack.c.bf16 %v2921_v17, %v2917_v33 }
 0x24f   : > { %5525 = vmatpush1.bf16.msra.mxu1 %v5524_v31  ;;  %5447 = vmatprep.subr.bf16.mxu0 %v5446_v43  ;;  %v2923_v31 = vld [vmem:[#allocation5 + $0x1588] sm:$0xff]  ;;  %v2952_v17 = vld [vmem:[#allocation5 + $0x1670] sm:$0xff] }
 0x250   : > { %5527 = vmatprep.subr.bf16.mxu1 %v5526_v46  ;;  %2704 = vmatprep.mubr.f32.mxu0 %v6284_v26  ;;  %v2927_v43 = vld [vmem:[#allocation5 + $0x15a8] sm:$0xff]  ;;  %v5544_v46 = vpack.c.bf16 %v2920_v42, %v2916_v53  ;;  %v5560_v53 = vpack.c.bf16 %v2952_v17, %v2948_v32  ;;  %v2954_v42 = vld [vmem:[#allocation5 + $0x1680] sm:$0xff] }
 0x251   : > { %2858 = vmatprep.mubr.f32.mxu1 %v6284_v26  ;;  %4370 = vmatmul.mubr.msk.f32.gmra.mrb[4].mxu0 %vm374_vm0, %v2548_v50  ;;  %v5466_v14 = vpack.c.bf16 %v2927_v43, %v2923_v31  ;;  %v2958_v31 = vld [vmem:[#allocation5 + $0x16a0] sm:$0xff]  ;;  %v2956_v43 = vld [vmem:[#allocation5 + $0x1690] sm:$0xff] }
 0x252   : > { %5449 = vmatpush1.bf16.msra.mxu0 %v5448_v20  ;;  %4372 = vmatmul.mubr.msk.f32.gmra.mrb[4].mxu1 %vm374_vm0, %v2548_v50  ;;  %v2928_v20 = vld [vmem:[#allocation5 + $0x15b0] sm:$0xff]  ;;  %v2931_v50 = vld [vmem:[#allocation5 + $0x15c8] sm:$0xff]  ;;  %v5484_v48 = vpack.c.bf16 %v2958_v31, %v2954_v42  ;;  %v2986_v17 = vld [vmem:[#allocation5 + $0x1780] sm:$0xff] }
 0x253   : > { %5529 = vmatpush1.bf16.msra.mxu1 %v5528_v51  ;;  %5451 = vmatprep.subr.bf16.mxu0 %v5450_v3  ;;  %v2935_v51 = vld [vmem:[#allocation5 + $0x15e8] sm:$0xff]  ;;  %v2933_v3 = vld [vmem:[#allocation5 + $0x15d8] sm:$0xff]  ;;  %v5548_v35 = vpack.c.bf16 %v2928_v20, %v2924_v49  ;;  %v5564_v49 = vpack.c.bf16 %v2960_v45, %v2956_v43  ;;  %v2962_v20 = vld [vmem:[#allocation5 + $0x16c0] sm:$0xff] }
 0x254   : > { %5531 = vmatprep.subr.bf16.mxu1 %v5530_v54  ;;  %3102 = vmatprep.mubr.f32.mxu0 %v6701_v52  ;;  %v5470_v54 = vpack.c.bf16 %v2935_v51, %v2931_v50  ;;  %v5550_v58 = vpack.c.bf16 %v2937_v0, %v2933_v3  ;;  %v2966_v50 = vld [vmem:[#allocation5 + $0x16e0] sm:$0xff]  ;;  %v2964_v51 = vld [vmem:[#allocation5 + $0x16d0] sm:$0xff]  ;;  %v3001_v42 = vld [vmem:[#allocation5 + $0x17f8] sm:$0xff] }
 0x255   : > { %3256 = vmatprep.mubr.f32.mxu1 %v6701_v52  ;;  %v5540_v52 = vpack.c.bf16 %v2912_v39, %v2908_v25  ;;  %v5556_v25 = vpack.c.bf16 %v2944_v9, %v2940_v7  ;;  %v2946_v39 = vld [vmem:[#allocation5 + $0x1640] sm:$0xff]  ;;  %v2968_v0 = vld [vmem:[#allocation5 + $0x16f0] sm:$0xff]  ;;  %v5488_v56 = vpack.c.bf16 %v2966_v50, %v2962_v20  ;;  %v3009_v20 = vld [vmem:[#allocation5 + $0x1838] sm:$0xff] }
 0x256   : > { %5453 = vmatpush1.bf16.msra.mxu0 %v5452_v59  ;;  %v2939_v59 = vld [vmem:[#allocation5 + $0x1608] sm:$0xff]  ;;  %v5480_v18 = vpack.c.bf16 %v2950_v30, %v2946_v39  ;;  %v5568_v57 = vpack.c.bf16 %v2968_v0, %v2964_v51  ;;  %v2978_v9 = vld [vmem:[#allocation5 + $0x1740] sm:$0xff]  ;;  %v2993_v39 = vld [vmem:[#allocation5 + $0x17b8] sm:$0xff] }
 0x257   : > { %5533 = vmatpush1.bf16.msra.mxu1 %v5532_v60  ;;  %5455 = vmatprep.subr.bf16.mxu0 %v5454_v61  ;;  %v2943_v60 = vld [vmem:[#allocation5 + $0x1628] sm:$0xff]  ;;  %v2941_v61 = vld [vmem:[#allocation5 + $0x1618] sm:$0xff]  ;;  %v2994_v45 = vld [vmem:[#allocation5 + $0x17c0] sm:$0xff] }
 0x258   : > { %5535 = vmatprep.subr.bf16.mxu1 %v5534_v2  ;;  %v5474_v2 = vpack.c.bf16 %v2943_v60, %v2939_v59  ;;  %v5554_v8 = vpack.c.bf16 %v2945_v62, %v2941_v61  ;;  %v2974_v59 = vld [vmem:[#allocation5 + $0x1720] sm:$0xff]  ;;  %v2972_v60 = vld [vmem:[#allocation5 + $0x1710] sm:$0xff] }
 0x259   : > { %v2976_v62 = vld [vmem:[#allocation5 + $0x1730] sm:$0xff]  ;;  %v5492_v6 = vpack.c.bf16 %v2974_v59, %v2970_v4  ;;  %v3002_v0 = vld [vmem:[#allocation5 + $0x1800] sm:$0xff]  ;;  %v3017_v4 = vld [vmem:[#allocation5 + $0x1878] sm:$0xff] }
 0x25a   : > { %5457 = vmatpush1.bf16.msra.mxu0 %v5456_v11  ;;  %v2947_v11 = vld [vmem:[#allocation5 + $0x1648] sm:$0xff]  ;;  %v5572_v7 = vpack.c.bf16 %v2976_v62, %v2972_v60  ;;  %v3010_v62 = vld [vmem:[#allocation5 + $0x1840] sm:$0xff] }
 0x25b   : > { %5537 = vmatpush1.bf16.msra.mxu1 %v5536_v12  ;;  %5459 = vmatprep.subr.bf16.mxu0 %v5458_v13  ;;  %v2951_v12 = vld [vmem:[#allocation5 + $0x1668] sm:$0xff]  ;;  %v2949_v13 = vld [vmem:[#allocation5 + $0x1658] sm:$0xff] }
 0x25c   : > { %5539 = vmatprep.subr.bf16.mxu1 %v5538_v28  ;;  %v5478_v28 = vpack.c.bf16 %v2951_v12, %v2947_v11  ;;  %v5558_v33 = vpack.c.bf16 %v2953_v16, %v2949_v13  ;;  %v2982_v11 = vld [vmem:[#allocation5 + $0x1760] sm:$0xff]  ;;  %v2980_v12 = vld [vmem:[#allocation5 + $0x1750] sm:$0xff] }
 0x25d   : > { %v2984_v16 = vld [vmem:[#allocation5 + $0x1770] sm:$0xff]  ;;  %v5496_v30 = vpack.c.bf16 %v2982_v11, %v2978_v9  ;;  %v3021_v9 = vld [vmem:[#allocation5 + $0x1898] sm:$0xff] }
 0x25e   : > { %5461 = vmatpush1.bf16.msra.mxu0 %v5460_v34  ;;  %v2955_v34 = vld [vmem:[#allocation5 + $0x1688] sm:$0xff]  ;;  %v5576_v32 = vpack.c.bf16 %v2984_v16, %v2980_v12  ;;  %v3025_v11 = vld [vmem:[#allocation5 + $0x18b8] sm:$0xff] }
 0x25f   : > { %5541 = vmatpush1.bf16.msra.mxu1 %v5540_v52  ;;  %5463 = vmatprep.subr.bf16.mxu0 %v5462_v36  ;;  %v2959_v52 = vld [vmem:[#allocation5 + $0x16a8] sm:$0xff]  ;;  %v2957_v36 = vld [vmem:[#allocation5 + $0x1698] sm:$0xff] }
 0x260   : > { %5543 = vmatprep.subr.bf16.mxu1 %v5542_v40  ;;  %v5482_v40 = vpack.c.bf16 %v2959_v52, %v2955_v34  ;;  %v5562_v44 = vpack.c.bf16 %v2961_v37, %v2957_v36  ;;  %v2990_v34 = vld [vmem:[#allocation5 + $0x17a0] sm:$0xff]  ;;  %v2988_v52 = vld [vmem:[#allocation5 + $0x1790] sm:$0xff] }
 0x261   : > { %v2992_v37 = vld [vmem:[#allocation5 + $0x17b0] sm:$0xff]  ;;  %v5500_v31 = vpack.c.bf16 %v2990_v34, %v2986_v17  ;;  %v3029_v17 = vld [vmem:[#allocation5 + $0x18d8] sm:$0xff] }
 0x262   : > { %5465 = vmatpush1.bf16.msra.mxu0 %v5464_v23  ;;  %v2963_v23 = vld [vmem:[#allocation5 + $0x16c8] sm:$0xff]  ;;  %v5580_v43 = vpack.c.bf16 %v2992_v37, %v2988_v52  ;;  %v3033_v34 = vld [vmem:[#allocation5 + $0x18f8] sm:$0xff] }
 0x263   : > { %5545 = vmatpush1.bf16.msra.mxu1 %v5544_v46  ;;  %5467 = vmatprep.subr.bf16.mxu0 %v5466_v14  ;;  %v2967_v46 = vld [vmem:[#allocation5 + $0x16e8] sm:$0xff]  ;;  %v2965_v14 = vld [vmem:[#allocation5 + $0x16d8] sm:$0xff] }
 0x264   : > { %5547 = vmatprep.subr.bf16.mxu1 %v5546_v15  ;;  %v5486_v15 = vpack.c.bf16 %v2967_v46, %v2963_v23  ;;  %v5566_v3 = vpack.c.bf16 %v2969_v47, %v2965_v14  ;;  %v2998_v23 = vld [vmem:[#allocation5 + $0x17e0] sm:$0xff]  ;;  %v2996_v46 = vld [vmem:[#allocation5 + $0x17d0] sm:$0xff] }
 0x265   : > { %v3000_v47 = vld [vmem:[#allocation5 + $0x17f0] sm:$0xff]  ;;  %v5504_v50 = vpack.c.bf16 %v2998_v23, %v2994_v45  ;;  %v3431_v45 = vld [vmem:[#allocation8 + $0x188] sm:$0xff] }
 0x266   : > { %5469 = vmatpush1.bf16.msra.mxu0 %v5468_v27  ;;  %v2971_v27 = vld [vmem:[#allocation5 + $0x1708] sm:$0xff]  ;;  %v5584_v51 = vpack.c.bf16 %v3000_v47, %v2996_v46  ;;  %v3382_v47 = vld [vmem:[#allocation8] sm:$0xff] }
 0x267   : > { %5549 = vmatpush1.bf16.msra.mxu1 %v5548_v35  ;;  %5471 = vmatprep.subr.bf16.mxu0 %v5470_v54  ;;  %v2975_v35 = vld [vmem:[#allocation5 + $0x1728] sm:$0xff]  ;;  %v2973_v54 = vld [vmem:[#allocation5 + $0x1718] sm:$0xff] }
 0x268   : > { %5551 = vmatprep.subr.bf16.mxu1 %v5550_v58  ;;  %v5490_v58 = vpack.c.bf16 %v2975_v35, %v2971_v27  ;;  %v5570_v61 = vpack.c.bf16 %v2977_v55, %v2973_v54  ;;  %v3006_v27 = vld [vmem:[#allocation5 + $0x1820] sm:$0xff]  ;;  %v3004_v35 = vld [vmem:[#allocation5 + $0x1810] sm:$0xff] }
 0x269   : > { %v3008_v55 = vld [vmem:[#allocation5 + $0x1830] sm:$0xff]  ;;  %v5508_v59 = vpack.c.bf16 %v3006_v27, %v3002_v0 }
 0x26a   : > { %5473 = vmatpush1.bf16.msra.mxu0 %v5472_v63  ;;  %v2979_v63 = vld [vmem:[#allocation5 + $0x1748] sm:$0xff]  ;;  %v5588_v60 = vpack.c.bf16 %v3008_v55, %v3004_v35  ;;  %v3385_v55 = vld [vmem:[#allocation8 + $0x18] sm:$0xff] }
 0x26b   : > { %5553 = vmatpush1.bf16.msra.mxu1 %v5552_v1  ;;  %5475 = vmatprep.subr.bf16.mxu0 %v5474_v2  ;;  %v2983_v1 = vld [vmem:[#allocation5 + $0x1768] sm:$0xff]  ;;  %v2981_v2 = vld [vmem:[#allocation5 + $0x1758] sm:$0xff] }
 0x26c   : > { %5555 = vmatprep.subr.bf16.mxu1 %v5554_v8  ;;  %v5494_v8 = vpack.c.bf16 %v2983_v1, %v2979_v63  ;;  %v5574_v13 = vpack.c.bf16 %v2985_v5, %v2981_v2  ;;  %v3014_v63 = vld [vmem:[#allocation5 + $0x1860] sm:$0xff]  ;;  %v3012_v1 = vld [vmem:[#allocation5 + $0x1850] sm:$0xff] }
 0x26d   : > { %v3016_v5 = vld [vmem:[#allocation5 + $0x1870] sm:$0xff]  ;;  %v5512_v12 = vpack.c.bf16 %v3014_v63, %v3010_v62  ;;  %v3435_v62 = vld [vmem:[#allocation8 + $0x1a8] sm:$0xff] }
 0x26e   : > { %5477 = vmatpush1.bf16.msra.mxu0 %v5476_v21  ;;  %v2987_v21 = vld [vmem:[#allocation5 + $0x1788] sm:$0xff] }
 0x26f   : > { %5557 = vmatpush1.bf16.msra.mxu1 %v5556_v25  ;;  %5479 = vmatprep.subr.bf16.mxu0 %v5478_v28  ;;  %v2991_v25 = vld [vmem:[#allocation5 + $0x17a8] sm:$0xff]  ;;  %v2989_v28 = vld [vmem:[#allocation5 + $0x1798] sm:$0xff] }
 0x270   : > { %5559 = vmatprep.subr.bf16.mxu1 %v5558_v33  ;;  %v5498_v33 = vpack.c.bf16 %v2991_v25, %v2987_v21  ;;  %v5578_v36 = vpack.c.bf16 %v2993_v39, %v2989_v28  ;;  %v3018_v21 = vld [vmem:[#allocation5 + $0x1880] sm:$0xff]  ;;  %v3020_v28 = vld [vmem:[#allocation5 + $0x1890] sm:$0xff]  ;;  %v5594_v39 = vpack.c.bf16 %v3025_v11, %v3021_v9  ;;  %v3419_v9 = vld [vmem:[#allocation8 + $0x128] sm:$0xff] }
 0x271   : > { %v3022_v25 = vld [vmem:[#allocation5 + $0x18a0] sm:$0xff]  ;;  %v3404_v11 = vld [vmem:[#allocation8 + $0xb0] sm:$0xff] }
 0x272   : > { %5481 = vmatpush1.bf16.msra.mxu0 %v5480_v18  ;;  %v2995_v18 = vld [vmem:[#allocation5 + $0x17c8] sm:$0xff]  ;;  %v5516_v52 = vpack.c.bf16 %v3022_v25, %v3018_v21 }
 0x273   : > { %5561 = vmatpush1.bf16.msra.mxu1 %v5560_v53  ;;  %5483 = vmatprep.subr.bf16.mxu0 %v5482_v40  ;;  %v2999_v53 = vld [vmem:[#allocation5 + $0x17e8] sm:$0xff]  ;;  %v2997_v40 = vld [vmem:[#allocation5 + $0x17d8] sm:$0xff] }
 0x274   : > { %5563 = vmatprep.subr.bf16.mxu1 %v5562_v44  ;;  %v5502_v44 = vpack.c.bf16 %v2999_v53, %v2995_v18  ;;  %v5582_v14 = vpack.c.bf16 %v3001_v42, %v2997_v40  ;;  %v3026_v18 = vld [vmem:[#allocation5 + $0x18c0] sm:$0xff]  ;;  %v3028_v40 = vld [vmem:[#allocation5 + $0x18d0] sm:$0xff]  ;;  %v5598_v42 = vpack.c.bf16 %v3033_v34, %v3029_v17  ;;  %v3421_v17 = vld [vmem:[#allocation8 + $0x138] sm:$0xff] }
 0x275   : > { %v3030_v53 = vld [vmem:[#allocation5 + $0x18e0] sm:$0xff] }
 0x276   : > { %5485 = vmatpush1.bf16.msra.mxu0 %v5484_v48  ;;  %v3003_v48 = vld [vmem:[#allocation5 + $0x1808] sm:$0xff]  ;;  %v3406_v34 = vld [vmem:[#allocation8 + $0xc0] sm:$0xff] }
 0x277   : > { %5565 = vmatpush1.bf16.msra.mxu1 %v5564_v49  ;;  %5487 = vmatprep.subr.bf16.mxu0 %v5486_v15  ;;  %v3007_v49 = vld [vmem:[#allocation5 + $0x1828] sm:$0xff]  ;;  %v3005_v15 = vld [vmem:[#allocation5 + $0x1818] sm:$0xff] }
 0x278   : > { %5567 = vmatprep.subr.bf16.mxu1 %v5566_v3  ;;  %v5506_v3 = vpack.c.bf16 %v3007_v49, %v3003_v48  ;;  %v5586_v54 = vpack.c.bf16 %v3009_v20, %v3005_v15  ;;  %v3383_v48 = vld [vmem:[#allocation8 + $0x8] sm:$0xff]  ;;  %v3414_v49 = vld [vmem:[#allocation8 + $0x100] sm:$0xff]  ;;  %v3400_v20 = vld [vmem:[#allocation8 + $0x90] sm:$0xff] }
 0x279   : > { %v3415_v15 = vld [vmem:[#allocation8 + $0x108] sm:$0xff]  ;;  %v5604_v0 = vpack.c.bf16 %v3383_v48, %v3382_v47  ;;  %v3392_v48 = vld [vmem:[#allocation8 + $0x50] sm:$0xff] }
 0x27a   : > { %5489 = vmatpush1.bf16.msra.mxu0 %v5488_v56  ;;  %v3011_v56 = vld [vmem:[#allocation5 + $0x1848] sm:$0xff]  ;;  %v5636_v27 = vpack.c.bf16 %v3415_v15, %v3414_v49  ;;  %v3393_v49 = vld [vmem:[#allocation8 + $0x58] sm:$0xff]  ;;  %v3424_v15 = vld [vmem:[#allocation8 + $0x150] sm:$0xff] }
 0x27b   : > { %5569 = vmatpush1.bf16.msra.mxu1 %v5568_v57  ;;  %5491 = vmatprep.subr.bf16.mxu0 %v5490_v58  ;;  %v3015_v57 = vld [vmem:[#allocation5 + $0x1868] sm:$0xff]  ;;  %v3013_v58 = vld [vmem:[#allocation5 + $0x1858] sm:$0xff] }
 0x27c   : > { %5571 = vmatprep.subr.bf16.mxu1 %v5570_v61  ;;  %v5510_v61 = vpack.c.bf16 %v3015_v57, %v3011_v56  ;;  %v5590_v2 = vpack.c.bf16 %v3017_v4, %v3013_v58  ;;  %v3416_v56 = vld [vmem:[#allocation8 + $0x110] sm:$0xff]  ;;  %v6021_v57 = vld [vmem:[%s6560_s30 + $0x58] sm:$0xff]  ;;  %v3417_v4 = vld [vmem:[#allocation8 + $0x118] sm:$0xff] }
 0x27e   : > { %5493 = vmatpush1.bf16.msra.mxu0 %v5492_v6  ;;  %v3019_v6 = vld [vmem:[#allocation5 + $0x1888] sm:$0xff] }
 0x27f   : > { %5573 = vmatpush1.bf16.msra.mxu1 %v5572_v7  ;;  %5495 = vmatprep.subr.bf16.mxu0 %v5494_v8  ;;  %v3023_v7 = vld [vmem:[#allocation5 + $0x18a8] sm:$0xff]  ;;  %v6020_v8 = vld [vmem:[%s6560_s30 + $0x48] sm:$0xff] }
 0x280   : > { %5575 = vmatprep.subr.bf16.mxu1 %v5574_v13  ;;  %v5592_v13 = vpack.c.bf16 %v3016_v5, %v3012_v1  ;;  %v5514_v16 = vpack.c.bf16 %v3023_v7, %v3019_v6  ;;  %v5640_v1 = vpack.c.bf16 %v3417_v4, %v3416_v56  ;;  %v3386_v5 = vld [vmem:[#allocation8 + $0x20] sm:$0xff]  ;;  %v3387_v6 = vld [vmem:[#allocation8 + $0x28] sm:$0xff] }
 0x281   : > { %v3418_v7 = vld [vmem:[#allocation8 + $0x120] sm:$0xff]  ;;  %v5612_v21 = vpack.c.bf16 %v3387_v6, %v3386_v5  ;;  %v3445_v5 = vld [vmem:[#allocation8 + $0x1f8] sm:$0xff]  ;;  %v3396_v6 = vld [vmem:[#allocation8 + $0x70] sm:$0xff] }
 0x282   : > { %5497 = vmatpush1.bf16.msra.mxu0 %v5496_v30  ;;  %v3024_v30 = vld [vmem:[#allocation5 + $0x18b0] sm:$0xff]  ;;  %v5644_v25 = vpack.c.bf16 %v3419_v9, %v3418_v7  ;;  %v3394_v56 = vld [vmem:[#allocation8 + $0x60] sm:$0xff]  ;;  %v3397_v7 = vld [vmem:[#allocation8 + $0x78] sm:$0xff] }
 0x283   : > { %5577 = vmatpush1.bf16.msra.mxu1 %v5576_v32  ;;  %5499 = vmatprep.subr.bf16.mxu0 %v5498_v33  ;;  %v3027_v32 = vld [vmem:[#allocation5 + $0x18c8] sm:$0xff]  ;;  %v3426_v4 = vld [vmem:[#allocation8 + $0x160] sm:$0xff]  ;;  %v5632_v9 = vpack.c.bf16 %v3397_v7, %v3396_v6 }
 0x284   : > { %5579 = vmatprep.subr.bf16.mxu1 %v5578_v36  ;;  %v3031_v33 = vld [vmem:[#allocation5 + $0x18e8] sm:$0xff]  ;;  %v5596_v36 = vpack.c.bf16 %v3024_v30, %v3020_v28  ;;  %v3389_v30 = vld [vmem:[#allocation8 + $0x38] sm:$0xff] }
 0x285   : > { %v5518_v37 = vpack.c.bf16 %v3031_v33, %v3027_v32  ;;  %v3420_v32 = vld [vmem:[#allocation8 + $0x130] sm:$0xff] }
 0x286   : > { %5501 = vmatpush1.bf16.msra.mxu0 %v5500_v31  ;;  %v3032_v31 = vld [vmem:[#allocation5 + $0x18f0] sm:$0xff] }
 0x287   : > { %5581 = vmatpush1.bf16.msra.mxu1 %v5580_v43  ;;  %5503 = vmatprep.subr.bf16.mxu0 %v5502_v44  ;;  %v3399_v43 = vld [vmem:[#allocation8 + $0x88] sm:$0xff]  ;;  %v3430_v44 = vld [vmem:[#allocation8 + $0x180] sm:$0xff]  ;;  %v5600_v23 = vpack.c.bf16 %v3032_v31, %v3028_v40 }
 0x288   : > { %5583 = vmatprep.subr.bf16.mxu1 %v5582_v14  ;;  %v5634_v14 = vpack.c.bf16 %v3431_v45, %v3430_v44  ;;  %v3390_v40 = vld [vmem:[#allocation8 + $0x40] sm:$0xff]  ;;  %v3408_v44 = vld [vmem:[#allocation8 + $0xd0] sm:$0xff]  ;;  %v3409_v45 = vld [vmem:[#allocation8 + $0xd8] sm:$0xff] }
 0x289   : > { %v3422_v31 = vld [vmem:[#allocation8 + $0x140] sm:$0xff]  ;;  %v5622_v47 = vpack.c.bf16 %v3409_v45, %v3408_v44 }
 0x28a   : > { %5505 = vmatpush1.bf16.msra.mxu0 %v5504_v50  ;;  %v3401_v50 = vld [vmem:[#allocation8 + $0x98] sm:$0xff] }
 0x28b   : > { %5585 = vmatpush1.bf16.msra.mxu1 %v5584_v51  ;;  %5507 = vmatprep.subr.bf16.mxu0 %v5506_v3  ;;  %v3432_v51 = vld [vmem:[#allocation8 + $0x190] sm:$0xff]  ;;  %v3433_v3 = vld [vmem:[#allocation8 + $0x198] sm:$0xff]  ;;  %v5606_v35 = vpack.c.bf16 %v3401_v50, %v3400_v20 }
 0x28c   : > { %5587 = vmatprep.subr.bf16.mxu1 %v5586_v54  ;;  %v3384_v54 = vld [vmem:[#allocation8 + $0x10] sm:$0xff]  ;;  %v5638_v58 = vpack.c.bf16 %v3433_v3, %v3432_v51  ;;  %v3425_v50 = vld [vmem:[#allocation8 + $0x158] sm:$0xff]  ;;  %v3410_v51 = vld [vmem:[#allocation8 + $0xe0] sm:$0xff] }
 0x28d   : > { %3103 = vmatmul.mubr.f32.vlgmr.msra.gmra.mrb[2].mxu0 %v6020_v8  ;;  %v5608_v63 = vpack.c.bf16 %v3385_v55, %v3384_v54  ;;  %v3411_v3 = vld [vmem:[#allocation8 + $0xe8] sm:$0xff]  ;;  %v5656_v54 = vpack.c.bf16 %v3425_v50, %v3424_v15 }
 0x28e   : > { %5509 = vmatpush1.bf16.msra.mxu0 %v5508_v59  ;;  %3257 = vmatmul.mubr.f32.vlgmr.msra.gmra.mrb[2].mxu1 %v6020_v8  ;;  %v3402_v59 = vld [vmem:[#allocation8 + $0xa0] sm:$0xff]  ;;  %v5626_v55 = vpack.c.bf16 %v3411_v3, %v3410_v51  ;;  %v3598_v15 = vld [vmem:[#allocation8 + $0x208] sm:$0xff] }
 0x28f   : > { %5589 = vmatpush1.bf16.msra.mxu1 %v5588_v60  ;;  %5511 = vmatprep.subr.bf16.mxu0 %v5510_v61  ;;  %v3403_v60 = vld [vmem:[#allocation8 + $0xa8] sm:$0xff]  ;;  %v3434_v61 = vld [vmem:[#allocation8 + $0x1a0] sm:$0xff] }
 0x290   : > { %5591 = vmatprep.subr.bf16.mxu1 %v5590_v2  ;;  %3108 = vmatprep.mubr.f32.mxu0 %v6737_v38  ;;  %v5610_v2 = vpack.c.bf16 %v3403_v60, %v3402_v59  ;;  %v5642_v8 = vpack.c.bf16 %v3435_v62, %v3434_v61  ;;  %v3427_v59 = vld [vmem:[#allocation8 + $0x168] sm:$0xff]  ;;  %v3412_v62 = vld [vmem:[#allocation8 + $0xf0] sm:$0xff] }
 0x291   : > { %3262 = vmatprep.mubr.f32.mxu1 %v6737_v38  ;;  %3109 = vmatmul.mubr.f32.gmra.mrb[4].mxu0 %v6742_v41  ;;  %v3398_v38 = vld [vmem:[#allocation8 + $0x80] sm:$0xff]  ;;  %v5660_v61 = vpack.c.bf16 %v3427_v59, %v3426_v4  ;;  %v3630_v50 = vld [vmem:[#allocation8 + $0x308] sm:$0xff] }
 0x292   : > { %5513 = vmatpush1.bf16.msra.mxu0 %v5512_v12  ;;  %3263 = vmatmul.mubr.f32.gmra.mrb[4].mxu1 %v6742_v41  ;;  %v5520_v41 = vpack.c.bf16 %v3030_v53, %v3026_v18  ;;  %v5602_v46 = vpack.c.bf16 %v3399_v43, %v3398_v38  ;;  %v3405_v12 = vld [vmem:[#allocation8 + $0xb8] sm:$0xff]  ;;  %v5648_v18 = vpack.c.bf16 %v3421_v17, %v3420_v32  ;;  %v3423_v43 = vld [vmem:[#allocation8 + $0x148] sm:$0xff]  ;;  %v552_v32 = vlaneseq }
 0x293   : > { %5593 = vmatpush1.bf16.msra.mxu1 %v5592_v13  ;;  %5515 = vmatprep.subr.bf16.mxu0 %v5514_v16  ;;  %v3436_v13 = vld [vmem:[#allocation8 + $0x1b0] sm:$0xff]  ;;  %v3437_v16 = vld [vmem:[#allocation8 + $0x1b8] sm:$0xff]  ;;  %v5614_v28 = vpack.c.bf16 %v3405_v12, %v3404_v11 }
 0x294   : > { %5595 = vmatprep.subr.bf16.mxu1 %v5594_v39  ;;  %3179 = vmatprep.mubr.f32.mxu0 %v6284_v26  ;;  %v3388_v39 = vld [vmem:[#allocation8 + $0x30] sm:$0xff]  ;;  %v5646_v33 = vpack.c.bf16 %v3437_v16, %v3436_v13  ;;  %v3429_v12 = vld [vmem:[#allocation8 + $0x178] sm:$0xff]  ;;  %v3613_v16 = vld [vmem:[#allocation8 + $0x280] sm:$0xff] }
 0x295   : > { %3333 = vmatprep.mubr.f32.mxu1 %v6284_v26  ;;  %v3428_v11 = vld [vmem:[#allocation8 + $0x170] sm:$0xff] }
 0x296   : > { %5517 = vmatpush1.bf16.msra.mxu0 %v5516_v52  ;;  %v3407_v52 = vld [vmem:[#allocation8 + $0xc8] sm:$0xff]  ;;  %v5664_v13 = vpack.c.bf16 %v3429_v12, %v3428_v11  ;;  %v3617_v12 = vld [vmem:[#allocation8 + $0x2a0] sm:$0xff] }
 0x297   : > { %5597 = vmatpush1.bf16.msra.mxu1 %v5596_v36  ;;  %5519 = vmatprep.subr.bf16.mxu0 %v5518_v37  ;;  %v3438_v36 = vld [vmem:[#allocation8 + $0x1c0] sm:$0xff]  ;;  %v3439_v37 = vld [vmem:[#allocation8 + $0x1c8] sm:$0xff]  ;;  %v5618_v53 = vpack.c.bf16 %v3407_v52, %v3406_v34 }
 0x298   : > { %5599 = vmatprep.subr.bf16.mxu1 %v5598_v42  ;;  %v3391_v42 = vld [vmem:[#allocation8 + $0x48] sm:$0xff]  ;;  %v5650_v38 = vpack.c.bf16 %v3439_v37, %v3438_v36  ;;  %v550_v34 = vld [vmem:[#allocation10] sm:$0xf] }
 0x29a   : > { %5521 = vmatpush1.bf16.msra.mxu0 %v5520_v41  ;;  %v3440_v41 = vld [vmem:[#allocation8 + $0x1d0] sm:$0xff] }
 0x29b   : > { %5601 = vmatpush1.bf16.msra.mxu1 %v5600_v23  ;;  %5603 = vmatprep.subr.bf16.mxu0 %v5602_v46  ;;  %v3441_v23 = vld [vmem:[#allocation8 + $0x1d8] sm:$0xff]  ;;  %v5620_v46 = vpack.c.bf16 %v3391_v42, %v3390_v40 }
 0x29c   : > { %5635 = vmatprep.subr.bf16.mxu1 %v5634_v14  ;;  %v5652_v14 = vpack.c.bf16 %v3423_v43, %v3422_v31  ;;  %v5654_v20 = vpack.c.bf16 %v3441_v23, %v3440_v41 }
 0x29d   : > { %4373 = vmatmul.mubr.msk.f32.vlgmr.msra.gmra.mrb[2].mxu0 %vm374_vm0, %v6021_v57 }
 0x29e   : > { %4375 = vmatmul.mubr.msk.f32.vlgmr.msra.gmra.mrb[2].mxu1 %vm374_vm0, %v6021_v57  ;;  %3185 = vmatprep.mubr.f32.mxu0 %v6284_v26  ;;  %v3395_v57 = vld [vmem:[#allocation8 + $0x68] sm:$0xff] }
 0x29f   : > { %3339 = vmatprep.mubr.f32.mxu1 %v6284_v26  ;;  %5605 = vmatpush3.bf16.msra.mxu0 %v5604_v0  ;;  %v3442_v0 = vld [vmem:[#allocation8 + $0x1e0] sm:$0xff]  ;;  %v5628_v60 = vpack.c.bf16 %v3395_v57, %v3394_v56 }
 0x2a0   : > { %5637 = vmatpush3.bf16.msra.mxu1 %v5636_v27  ;;  %5607 = vmatprep.subr.bf16.mxu0 %v5606_v35  ;;  %v3443_v27 = vld [vmem:[#allocation8 + $0x1e8] sm:$0xff]  ;;  %v5624_v35 = vpack.c.bf16 %v3393_v49, %v3392_v48 }
 0x2a1   : > { %4374 = vmatmul.mubr.msk.f32.gmra.mrb[4].mxu0 %vm374_vm0, %v6755_v22  ;;  %5639 = vmatprep.subr.bf16.mxu1 %v5638_v58  ;;  %v5658_v58 = vpack.c.bf16 %v3443_v27, %v3442_v0  ;;  %v3616_v0 = vld [vmem:[#allocation8 + $0x298] sm:$0xff]  ;;  %v3647_v27 = vld [vmem:[#allocation8 + $0x390] sm:$0xff] }
 0x2a2   : > { %4376 = vmatmul.mubr.msk.f32.gmra.mrb[4].mxu1 %vm374_vm0, %v6755_v22  ;;  %v5616_v22 = vpack.c.bf16 %v3389_v30, %v3388_v39  ;;  %v3646_v39 = vld [vmem:[#allocation8 + $0x388] sm:$0xff] }
 0x2a3   : > { %5609 = vmatpush3.bf16.msra.mxu0 %v5608_v63  ;;  %v3413_v63 = vld [vmem:[#allocation8 + $0xf8] sm:$0xff] }
 0x2a4   : > { %5641 = vmatpush3.bf16.msra.mxu1 %v5640_v1  ;;  %5611 = vmatprep.subr.bf16.mxu0 %v5610_v2  ;;  %v3444_v1 = vld [vmem:[#allocation8 + $0x1f0] sm:$0xff]  ;;  %v5630_v2 = vpack.c.bf16 %v3413_v63, %v3412_v62  ;;  %v3600_v63 = vld [vmem:[#allocation8 + $0x218] sm:$0xff] }
 0x2a5   : > { %5643 = vmatprep.subr.bf16.mxu1 %v5642_v8  ;;  %v5662_v8 = vpack.c.bf16 %v3445_v5, %v3444_v1  ;;  %v3599_v62 = vld [vmem:[#allocation8 + $0x210] sm:$0xff] }
 0x2a7   : > { %5613 = vmatpush3.bf16.msra.mxu0 %v5612_v21  ;;  %v3614_v21 = vld [vmem:[#allocation8 + $0x288] sm:$0xff] }
 0x2a8   : > { %5645 = vmatpush3.bf16.msra.mxu1 %v5644_v25  ;;  %5615 = vmatprep.subr.bf16.mxu0 %v5614_v28  ;;  %v3645_v25 = vld [vmem:[#allocation8 + $0x380] sm:$0xff]  ;;  %v5666_v28 = vpack.c.bf16 %v3614_v21, %v3613_v16  ;;  %v5672_v21 = vpack.c.bf16 %v3600_v63, %v3599_v62  ;;  %v3608_v62 = vld [vmem:[#allocation8 + $0x258] sm:$0xff]  ;;  %v3639_v63 = vld [vmem:[#allocation8 + $0x350] sm:$0xff] }
 0x2a9   : > { %5647 = vmatprep.subr.bf16.mxu1 %v5646_v33  ;;  %v5698_v30 = vpack.c.bf16 %v3646_v39, %v3645_v25  ;;  %v6784_v33 = vshrl.u32 %v552_v32, 7  ;;  %v3649_v25 = vld [vmem:[#allocation8 + $0x3a0] sm:$0xff] }
 0x2ab   : > { %5617 = vmatpush3.bf16.msra.mxu0 %v5616_v22  ;;  %v554_v17 = vsub.s32 0, %v6784_v33  ;;  %v562_v52 = vsub.s32 2, %v6784_v33  ;;  %v558_v36 = vsub.s32 1, %v6784_v33  ;;  %v566_v37 = vsub.s32 3, %v6784_v33 }
 0x2ac   : > { %5649 = vmatpush3.bf16.msra.mxu1 %v5648_v18  ;;  %5619 = vmatprep.subr.bf16.mxu0 %v5618_v53 }
 0x2ad   : > { %5651 = vmatprep.subr.bf16.mxu1 %v5650_v38  ;;  %v555_v22 = vrot.slane %v550_v34, %v554_v17  ;;  %v563_v18 = vrot.slane %v550_v34, %v562_v52  ;;  %v559_v53 = vrot.slane %v550_v34, %v558_v36  ;;  %v567_v40 = vrot.slane %v550_v34, %v566_v37  ;;  %v3601_v34 = vld [vmem:[#allocation8 + $0x220] sm:$0xff]  ;;  %v3602_v52 = vld [vmem:[#allocation8 + $0x228] sm:$0xff] }
 0x2ae   : > { %v3633_v36 = vld [vmem:[#allocation8 + $0x320] sm:$0xff] }
 0x2af   : > { %5621 = vmatpush3.bf16.msra.mxu0 %v5620_v46  ;;  %v5802_v42 = vadd.f32 %v6690_v10, %v555_v22  ;;  %v5804_v31 = vadd.f32 %v6692_v19, %v563_v18  ;;  %v5803_v38 = vadd.f32 %v6694_v24, %v559_v53  ;;  %v5805_v43 = vadd.f32 %v6696_v29, %v567_v40  ;;  %v3597_v46 = vld [vmem:[#allocation8 + $0x200] sm:$0xff]  ;;  %v3615_v19 = vld [vmem:[#allocation8 + $0x290] sm:$0xff]  ;;  %v3648_v29 = vld [vmem:[#allocation8 + $0x398] sm:$0xff] }
 0x2b0   : > { %5653 = vmatpush3.bf16.msra.mxu1 %v5652_v14  ;;  %5623 = vmatprep.subr.bf16.mxu0 %v5622_v47  ;;  %v5702_v7 = vpack.c.bf16 %v3648_v29, %v3647_v27  ;;  %v3634_v18 = vld [vmem:[#allocation8 + $0x328] sm:$0xff]  ;;  %v3619_v53 = vld [vmem:[#allocation8 + $0x2b0] sm:$0xff]  ;;  %v3620_v40 = vld [vmem:[#allocation8 + $0x2b8] sm:$0xff] }
 0x2b1   : > { %5655 = vmatprep.subr.bf16.mxu1 %v5654_v20  ;;  %v862_v44 = vrot.slane %v5802_v42, %v554_v17  ;;  %v870_v41 = vrot.slane %v5804_v31, %v554_v17  ;;  %v866_v23 = vrot.slane %v5803_v38, %v554_v17  ;;  %v874_v49 = vrot.slane %v5805_v43, %v554_v17  ;;  %v3629_v20 = vld [vmem:[#allocation8 + $0x300] sm:$0xff]  ;;  %v3651_v31 = vld [vmem:[#allocation8 + $0x3b0] sm:$0xff]  ;;  %v3652_v38 = vld [vmem:[#allocation8 + $0x3b8] sm:$0xff] }
 0x2b2   : > { %v5700_v56 = vpack.c.bf16 %v3630_v50, %v3629_v20  ;;  %v5676_v43 = vpack.c.bf16 %v3602_v52, %v3601_v34  ;;  %v3654_v20 = vld [vmem:[#allocation8 + $0x3c8] sm:$0xff]  ;;  %v3623_v29 = vld [vmem:[#allocation8 + $0x2d0] sm:$0xff] }
 0x2b3   : > { %5625 = vmatpush3.bf16.msra.mxu0 %v5624_v35  ;;  %v3638_v27 = vld [vmem:[#allocation8 + $0x348] sm:$0xff]  ;;  %v3627_v52 = vld [vmem:[#allocation8 + $0x2f0] sm:$0xff] }
 0x2b4   : > { %5657 = vmatpush3.bf16.msra.mxu1 %v5656_v54  ;;  %5627 = vmatprep.subr.bf16.mxu0 %v5626_v55  ;;  %v5668_v55 = vpack.c.bf16 %v3598_v15, %v3597_v46  ;;  %v3635_v46 = vld [vmem:[#allocation8 + $0x330] sm:$0xff]  ;;  %v3653_v15 = vld [vmem:[#allocation8 + $0x3c0] sm:$0xff]  ;;  %v3642_v34 = vld [vmem:[#allocation8 + $0x368] sm:$0xff] }
 0x2b5   : > { %5659 = vmatprep.subr.bf16.mxu1 %v5658_v58 }
 0x2b7   : > { %5629 = vmatpush3.bf16.msra.mxu0 %v5628_v60 }
 0x2b8   : > { %5661 = vmatpush3.bf16.msra.mxu1 %v5660_v61  ;;  %5631 = vmatprep.subr.bf16.mxu0 %v5630_v2  ;;  %v5670_v61 = vpack.c.bf16 %v3616_v0, %v3615_v19  ;;  %v3606_v19 = vld [vmem:[#allocation8 + $0x248] sm:$0xff]  ;;  %v3637_v0 = vld [vmem:[#allocation8 + $0x340] sm:$0xff] }
 0x2b9   : > { %5663 = vmatprep.subr.bf16.mxu1 %v5662_v8  ;;  %v3631_v8 = vld [vmem:[#allocation8 + $0x310] sm:$0xff] }
 0x2bb   : > { %5633 = vmatpush3.bf16.msra.mxu0 %v5632_v9  ;;  %v3632_v9 = vld [vmem:[#allocation8 + $0x318] sm:$0xff] }
 0x2bc   : > { %5665 = vmatpush3.bf16.msra.mxu1 %v5664_v13  ;;  %5667 = vmatprep.subr.bf16.mxu0 %v5666_v28  ;;  %v3618_v13 = vld [vmem:[#allocation8 + $0x2a8] sm:$0xff]  ;;  %v5704_v17 = vpack.c.bf16 %v3632_v9, %v3631_v8  ;;  %v3657_v8 = vld [vmem:[#allocation8 + $0x3e0] sm:$0xff] }
 0x2bd   : > { %5699 = vmatprep.subr.bf16.mxu1 %v5698_v30  ;;  %v3650_v28 = vld [vmem:[#allocation8 + $0x3a8] sm:$0xff]  ;;  %v5674_v22 = vpack.c.bf16 %v3618_v13, %v3617_v12 }
 0x2be   : > { %v5706_v42 = vpack.c.bf16 %v3650_v28, %v3649_v25  ;;  %v3658_v9 = vld [vmem:[#allocation8 + $0x3e8] sm:$0xff]  ;;  %v3641_v28 = vld [vmem:[#allocation8 + $0x360] sm:$0xff] }
 0x2bf   : > { %v3610_v25 = vld [vmem:[#allocation8 + $0x268] sm:$0xff] }
 0x370   : > { %v3181_v45 = vpop.f32.mrb[2].mxu0 }
 0x371   : > { %v5806_v14 = vadd.f32 %v3181_v45, %v862_v44  ;;  %v3335_v47 = vpop.f32.mrb[2].mxu1  ;;  %v3183_v48 = vpop.f32.mrb[3].mxu0  ;;  %v5678_v45 = vpack.c.bf16 %v3620_v40, %v3619_v53  ;;  %v5724_v40 = vpack.c.bf16 %v3642_v34, %v3641_v28  ;;  %v3866_v28 = vld [vmem:[#allocation8 + $0x5b0] sm:$0xff] }
 0x372   : > { %v5810_v51 = vadd.f32 %v3335_v47, %v870_v41  ;;  %v5807_v10 = vadd.f32 %v3183_v48, %v866_v23  ;;  %v3337_v3 = vpop.f32.mrb[3].mxu1  ;;  %v3636_v47 = vld [vmem:[#allocation8 + $0x338] sm:$0xff]  ;;  %v3621_v48 = vld [vmem:[#allocation8 + $0x2c0] sm:$0xff] }
 0x373   : > { %v5811_v24 = vadd.f32 %v3337_v3, %v874_v49  ;;  %v6796_v57 = vmax.f32 %v5806_v14, 0.0  ;;  %v5710_v14 = vpack.c.bf16 %v3652_v38, %v3651_v31  ;;  %v3605_v3 = vld [vmem:[#allocation8 + $0x240] sm:$0xff]  ;;  %v3611_v31 = vld [vmem:[#allocation8 + $0x270] sm:$0xff]  ;;  %v3612_v38 = vld [vmem:[#allocation8 + $0x278] sm:$0xff] }
 0x374   : > { %v6794_v35 = vmax.f32 %v5807_v10, 0.0  ;;  %v3187_v54 = vpop.f32.mrb[4].mxu0  ;;  %v6800_v1 = vmax.f32 %v5810_v51, 0.0  ;;  %v5712_v51 = vpack.c.bf16 %v3636_v47, %v3635_v46  ;;  %v3860_v46 = vld [vmem:[#allocation8 + $0x580] sm:$0xff]  ;;  %v5696_v47 = vpack.c.bf16 %v3612_v38, %v3611_v31  ;;  %v3837_v38 = vld [vmem:[#allocation8 + $0x4c8] sm:$0xff] }
 0x375   : > { %v6798_v58 = vmax.f32 %v5811_v24, 0.0  ;;  %v5808_v4 = vadd.f32 %v3187_v54, %v862_v44  ;;  %v3341_v59 = vpop.f32.mrb[4].mxu1  ;;  %v3189_v60 = vpop.f32.mrb[5].mxu0  ;;  %v5708_v44 = vpack.c.bf16 %v3634_v18, %v3633_v36  ;;  %v5714_v24 = vpack.c.bf16 %v3654_v20, %v3653_v15  ;;  %v3624_v54 = vld [vmem:[#allocation8 + $0x2d8] sm:$0xff]  ;;  %v3812_v20 = vld [vmem:[#allocation8 + $0x400] sm:$0xff] }
 0x376   : > { %v5812_v2 = vadd.f32 %v3341_v59, %v870_v41  ;;  %v5809_v5 = vadd.f32 %v3189_v60, %v866_v23  ;;  %v3343_v6 = vpop.f32.mrb[5].mxu1  ;;  %3510 = vmatprep.mubr.f32.mxu0 %v6794_v35  ;;  %v3603_v41 = vld [vmem:[#allocation8 + $0x230] sm:$0xff]  ;;  %v3604_v23 = vld [vmem:[#allocation8 + $0x238] sm:$0xff]  ;;  %v5716_v59 = vpack.c.bf16 %v3638_v27, %v3637_v0  ;;  %v5686_v60 = vpack.c.bf16 %v3624_v54, %v3623_v29  ;;  %v3836_v31 = vld [vmem:[#allocation8 + $0x4c0] sm:$0xff] }
 0x377   : > { %v5813_v11 = vadd.f32 %v3343_v6, %v874_v49  ;;  %3585 = vmatprep.mubr.f32.mxu1 %v6798_v58  ;;  %3511 = vmatmul.mubr.f32.vlgmr.msra.gmra.mrb[6].mxu0 %v6796_v57  ;;  %v6808_v39 = vmax.f32 %v5808_v4, 0.0  ;;  %v3622_v49 = vld [vmem:[#allocation8 + $0x2c8] sm:$0xff]  ;;  %v5680_v50 = vpack.c.bf16 %v3604_v23, %v3603_v41  ;;  %v5684_v4 = vpack.c.bf16 %v3606_v19, %v3605_v3  ;;  %v3625_v6 = vld [vmem:[#allocation8 + $0x2e0] sm:$0xff]  ;;  %v3628_v36 = vld [vmem:[#allocation8 + $0x2f8] sm:$0xff] }
 0x378   : > { %v6805_v16 = vmax.f32 %v5809_v5, 0.0  ;;  %3586 = vmatmul.mubr.f32.vlgmr.msra.gmra.mrb[6].mxu1 %v6800_v1  ;;  %5669 = vmatpush3.bf16.msra.mxu0 %v5668_v55  ;;  %v6812_v37 = vmax.f32 %v5812_v2, 0.0  ;;  %v5682_v10 = vpack.c.bf16 %v3622_v49, %v3621_v48  ;;  %v3655_v55 = vld [vmem:[#allocation8 + $0x3d0] sm:$0xff]  ;;  %v3640_v5 = vld [vmem:[#allocation8 + $0x358] sm:$0xff]  ;;  %v3828_v41 = vld [vmem:[#allocation8 + $0x480] sm:$0xff] }
 0x379   : > { %v6810_v30 = vmax.f32 %v5813_v11, 0.0  ;;  %5701 = vmatpush3.bf16.msra.mxu1 %v5700_v56  ;;  %5671 = vmatprep.subr.bf16.mxu0 %v5670_v61  ;;  %v3656_v56 = vld [vmem:[#allocation8 + $0x3d8] sm:$0xff]  ;;  %v3607_v61 = vld [vmem:[#allocation8 + $0x250] sm:$0xff]  ;;  %v5720_v12 = vpack.c.bf16 %v3640_v5, %v3639_v63  ;;  %v3829_v23 = vld [vmem:[#allocation8 + $0x488] sm:$0xff] }
 0x37a   : > { %3515 = vmatprep.mubr.f32.mxu0 %v6805_v16  ;;  %5703 = vmatprep.subr.bf16.mxu1 %v5702_v7  ;;  %v5718_v2 = vpack.c.bf16 %v3656_v56, %v3655_v55  ;;  %v3626_v7 = vld [vmem:[#allocation8 + $0x2e8] sm:$0xff]  ;;  %v5688_v11 = vpack.c.bf16 %v3608_v62, %v3607_v61  ;;  %v3660_v18 = vld [vmem:[#allocation8 + $0x3f8] sm:$0xff]  ;;  %v5730_v49 = vpack.c.bf16 %v3829_v23, %v3828_v41  ;;  %v3830_v3 = vld [vmem:[#allocation8 + $0x490] sm:$0xff] }
 0x37b   : > { %3590 = vmatprep.mubr.f32.mxu1 %v6810_v30  ;;  %3516 = vmatmul.mubr.f32.gmra.mrb[8].mxu0 %v6808_v39  ;;  %v5690_v13 = vpack.c.bf16 %v3626_v7, %v3625_v6  ;;  %v3831_v19 = vld [vmem:[#allocation8 + $0x498] sm:$0xff]  ;;  %v3862_v0 = vld [vmem:[#allocation8 + $0x590] sm:$0xff]  ;;  %v3832_v61 = vld [vmem:[#allocation8 + $0x4a0] sm:$0xff] }
 0x37c   : > { %3591 = vmatmul.mubr.f32.gmra.mrb[8].mxu1 %v6812_v37  ;;  %5673 = vmatpush3.bf16.msra.mxu0 %v5672_v21  ;;  %v3609_v21 = vld [vmem:[#allocation8 + $0x260] sm:$0xff]  ;;  %v5734_v54 = vpack.c.bf16 %v3831_v19, %v3830_v3  ;;  %v3814_v55 = vld [vmem:[#allocation8 + $0x410] sm:$0xff]  ;;  %v3815_v56 = vld [vmem:[#allocation8 + $0x418] sm:$0xff] }
 0x37d   : > { %5705 = vmatpush3.bf16.msra.mxu1 %v5704_v17  ;;  %3725 = vmatprep.mubr.f32.mxu0 %v6794_v35  ;;  %v5722_v17 = vpack.c.bf16 %v3658_v9, %v3657_v8  ;;  %v5692_v53 = vpack.c.bf16 %v3610_v25, %v3609_v21  ;;  %v3833_v62 = vld [vmem:[#allocation8 + $0x4a8] sm:$0xff]  ;;  %v3864_v63 = vld [vmem:[#allocation8 + $0x5a0] sm:$0xff]  ;;  %v5736_v5 = vpack.c.bf16 %v3815_v56, %v3814_v55  ;;  %v3834_v21 = vld [vmem:[#allocation8 + $0x4b0] sm:$0xff] }
 0x37e   : > { %3800 = vmatprep.mubr.f32.mxu1 %v6798_v58  ;;  %5675 = vmatprep.subr.bf16.mxu0 %v5674_v22  ;;  %v3659_v22 = vld [vmem:[#allocation8 + $0x3f0] sm:$0xff]  ;;  %v5738_v7 = vpack.c.bf16 %v3833_v62, %v3832_v61  ;;  %v3816_v8 = vld [vmem:[#allocation8 + $0x420] sm:$0xff]  ;;  %v3817_v9 = vld [vmem:[#allocation8 + $0x428] sm:$0xff] }
 0x37f   : > { %5707 = vmatprep.subr.bf16.mxu1 %v5706_v42  ;;  %v5694_v42 = vpack.c.bf16 %v3628_v36, %v3627_v52  ;;  %v3835_v25 = vld [vmem:[#allocation8 + $0x4b8] sm:$0xff]  ;;  %v5740_v34 = vpack.c.bf16 %v3817_v9, %v3816_v8  ;;  %v3820_v41 = vld [vmem:[#allocation8 + $0x440] sm:$0xff]  ;;  %v3821_v23 = vld [vmem:[#allocation8 + $0x448] sm:$0xff] }
 0x380   : > { %5677 = vmatpush3.bf16.msra.mxu0 %v5676_v43  ;;  %v3643_v43 = vld [vmem:[#allocation8 + $0x370] sm:$0xff]  ;;  %v5742_v36 = vpack.c.bf16 %v3835_v25, %v3834_v21  ;;  %v3823_v19 = vld [vmem:[#allocation8 + $0x458] sm:$0xff]  ;;  %v3872_v55 = vld [vmem:[#allocation8 + $0x5e0] sm:$0xff] }
 0x381   : > { %5709 = vmatpush3.bf16.msra.mxu1 %v5708_v44  ;;  %5679 = vmatprep.subr.bf16.mxu0 %v5678_v45  ;;  %v5726_v44 = vpack.c.bf16 %v3660_v18, %v3659_v22  ;;  %v3644_v45 = vld [vmem:[#allocation8 + $0x378] sm:$0xff]  ;;  %v3818_v22 = vld [vmem:[#allocation8 + $0x430] sm:$0xff]  ;;  %v3873_v56 = vld [vmem:[#allocation8 + $0x5e8] sm:$0xff] }
 0x382   : > { %5711 = vmatprep.subr.bf16.mxu1 %v5710_v14  ;;  %v3861_v14 = vld [vmem:[#allocation8 + $0x588] sm:$0xff]  ;;  %v5728_v48 = vpack.c.bf16 %v3644_v45, %v3643_v43  ;;  %v3819_v18 = vld [vmem:[#allocation8 + $0x438] sm:$0xff]  ;;  %v3868_v43 = vld [vmem:[#allocation8 + $0x5c0] sm:$0xff]  ;;  %v5746_v45 = vpack.c.bf16 %v3837_v38, %v3836_v31 }
 0x383   : > { %v5762_v15 = vpack.c.bf16 %v3861_v14, %v3860_v46  ;;  %v3852_v46 = vld [vmem:[#allocation8 + $0x540] sm:$0xff]  ;;  %v3822_v3 = vld [vmem:[#allocation8 + $0x450] sm:$0xff]  ;;  %v3825_v62 = vld [vmem:[#allocation8 + $0x468] sm:$0xff] }
 0x384   : > { %5681 = vmatpush3.bf16.msra.mxu0 %v5680_v50  ;;  %v3813_v50 = vld [vmem:[#allocation8 + $0x408] sm:$0xff]  ;;  %v3824_v61 = vld [vmem:[#allocation8 + $0x460] sm:$0xff]  ;;  %v3874_v8 = vld [vmem:[#allocation8 + $0x5f0] sm:$0xff] }
 0x385   : > { %5713 = vmatpush3.bf16.msra.mxu1 %v5712_v51  ;;  %5683 = vmatprep.subr.bf16.mxu0 %v5682_v10  ;;  %v3844_v51 = vld [vmem:[#allocation8 + $0x500] sm:$0xff]  ;;  %v3845_v10 = vld [vmem:[#allocation8 + $0x508] sm:$0xff]  ;;  %v5732_v27 = vpack.c.bf16 %v3813_v50, %v3812_v20  ;;  %v3871_v20 = vld [vmem:[#allocation8 + $0x5d8] sm:$0xff]  ;;  %v5748_v50 = vpack.c.bf16 %v3821_v23, %v3820_v41 }
 0x386   : > { %5715 = vmatprep.subr.bf16.mxu1 %v5714_v24  ;;  %v3863_v24 = vld [vmem:[#allocation8 + $0x598] sm:$0xff]  ;;  %v5764_v29 = vpack.c.bf16 %v3845_v10, %v3844_v51  ;;  %v3826_v21 = vld [vmem:[#allocation8 + $0x470] sm:$0xff] }
 0x387   : > { %v3875_v9 = vld [vmem:[#allocation8 + $0x5f8] sm:$0xff] }
 0x388   : > { %5685 = vmatpush3.bf16.msra.mxu0 %v5684_v4  ;;  %v3846_v4 = vld [vmem:[#allocation8 + $0x510] sm:$0xff]  ;;  %v3827_v25 = vld [vmem:[#allocation8 + $0x478] sm:$0xff] }
 0x389   : > { %5717 = vmatpush3.bf16.msra.mxu1 %v5716_v59  ;;  %5687 = vmatprep.subr.bf16.mxu0 %v5686_v60  ;;  %v5766_v59 = vpack.c.bf16 %v3863_v24, %v3862_v0  ;;  %v3847_v60 = vld [vmem:[#allocation8 + $0x518] sm:$0xff]  ;;  %v3854_v0 = vld [vmem:[#allocation8 + $0x550] sm:$0xff] }
 0x38a   : > { %5719 = vmatprep.subr.bf16.mxu1 %v5718_v2  ;;  %v3865_v2 = vld [vmem:[#allocation8 + $0x5a8] sm:$0xff]  ;;  %v5768_v6 = vpack.c.bf16 %v3847_v60, %v3846_v4  ;;  %v5752_v4 = vpack.c.bf16 %v3823_v19, %v3822_v3 }
 0x38c   : > { %5689 = vmatpush3.bf16.msra.mxu0 %v5688_v11  ;;  %v3848_v11 = vld [vmem:[#allocation8 + $0x520] sm:$0xff] }
 0x38d   : > { %5721 = vmatpush3.bf16.msra.mxu1 %v5720_v12  ;;  %5691 = vmatprep.subr.bf16.mxu0 %v5690_v13  ;;  %v5770_v12 = vpack.c.bf16 %v3865_v2, %v3864_v63  ;;  %v3849_v13 = vld [vmem:[#allocation8 + $0x528] sm:$0xff]  ;;  %v3856_v63 = vld [vmem:[#allocation8 + $0x560] sm:$0xff]  ;;  %v5786_v2 = vpack.c.bf16 %v3873_v56, %v3872_v55 }
 0x38e   : > { %5723 = vmatprep.subr.bf16.mxu1 %v5722_v17  ;;  %v3867_v17 = vld [vmem:[#allocation8 + $0x5b8] sm:$0xff]  ;;  %v5772_v52 = vpack.c.bf16 %v3849_v13, %v3848_v11  ;;  %v5756_v11 = vpack.c.bf16 %v3825_v62, %v3824_v61 }
 0x390   : > { %5693 = vmatpush3.bf16.msra.mxu0 %v5692_v53  ;;  %v3850_v53 = vld [vmem:[#allocation8 + $0x530] sm:$0xff] }
 0x391   : > { %5725 = vmatpush3.bf16.msra.mxu1 %v5724_v40  ;;  %5695 = vmatprep.subr.bf16.mxu0 %v5694_v42  ;;  %v5774_v40 = vpack.c.bf16 %v3867_v17, %v3866_v28  ;;  %v3851_v42 = vld [vmem:[#allocation8 + $0x538] sm:$0xff]  ;;  %v5790_v28 = vpack.c.bf16 %v3875_v9, %v3874_v8  ;;  %v3858_v17 = vld [vmem:[#allocation8 + $0x570] sm:$0xff] }
 0x392   : > { %5727 = vmatprep.subr.bf16.mxu1 %v5726_v44  ;;  %v5744_v44 = vpack.c.bf16 %v3819_v18, %v3818_v22  ;;  %v6835_v22 = vand.u32 127, %v552_v32 }
 0x394   : > { %5697 = vmatpush3.bf16.msra.mxu0 %v5696_v47  ;;  %v3853_v47 = vld [vmem:[#allocation8 + $0x548] sm:$0xff]  ;;  %v3367_v18 = vadd.s32 1, %v6835_v22 }
 0x395   : > { %5729 = vmatpush3.bf16.msra.mxu1 %v5728_v48  ;;  %5731 = vmatprep.subr.bf16.mxu0 %v5730_v49  ;;  %v3838_v48 = vld [vmem:[#allocation8 + $0x4d0] sm:$0xff]  ;;  %v3839_v49 = vld [vmem:[#allocation8 + $0x4d8] sm:$0xff]  ;;  %v5780_v51 = vpack.c.bf16 %v3853_v47, %v3852_v46 }
 0x396   : > { %5763 = vmatprep.subr.bf16.mxu1 %v5762_v15  ;;  %v3870_v15 = vld [vmem:[#allocation8 + $0x5d0] sm:$0xff]  ;;  %v5750_v10 = vpack.c.bf16 %v3839_v49, %v3838_v48  ;;  %vm3368_vm5 = vcmp.eq.s32.totalorder %v6784_v33, %v3367_v18 }
 0x397   : > { %3726 = vmatmul.mubr.f32.vlgmr.msra.gmra.mrb[10].mxu0 %v6796_v57  ;;  %v5782_v24 = vpack.c.bf16 %v3871_v20, %v3870_v15 }
 0x398   : > { %3801 = vmatmul.mubr.f32.vlgmr.msra.gmra.mrb[10].mxu1 %v6800_v1  ;;  %3730 = vmatprep.mubr.f32.mxu0 %v6805_v16 }
 0x399   : > { %3805 = vmatprep.mubr.f32.mxu1 %v6810_v30  ;;  %5733 = vmatpush3.bf16.msra.mxu0 %v5732_v27  ;;  %v3855_v27 = vld [vmem:[#allocation8 + $0x558] sm:$0xff] }
 0x39a   : > { %5765 = vmatpush3.bf16.msra.mxu1 %v5764_v29  ;;  %5735 = vmatprep.subr.bf16.mxu0 %v5734_v54  ;;  %v3840_v29 = vld [vmem:[#allocation8 + $0x4e0] sm:$0xff]  ;;  %v3841_v54 = vld [vmem:[#allocation8 + $0x4e8] sm:$0xff] }
 0x39b   : > { %3731 = vmatmul.mubr.f32.gmra.mrb[12].mxu0 %v6808_v39  ;;  %5767 = vmatprep.subr.bf16.mxu1 %v5766_v59  ;;  %v5784_v59 = vpack.c.bf16 %v3855_v27, %v3854_v0  ;;  %v5754_v60 = vpack.c.bf16 %v3841_v54, %v3840_v29 }
 0x39c   : > { %3806 = vmatmul.mubr.f32.gmra.mrb[12].mxu1 %v6812_v37  ;;  %3940 = vmatprep.mubr.f32.mxu0 %v6794_v35  ;;  %v3869_v35 = vld [vmem:[#allocation8 + $0x5c8] sm:$0xff] }
 0x39d   : > { %5737 = vmatpush3.bf16.msra.mxu0 %v5736_v5  ;;  %4015 = vmatprep.mubr.f32.mxu1 %v6798_v58  ;;  %v5776_v58 = vpack.c.bf16 %v3851_v42, %v3850_v53  ;;  %v5778_v14 = vpack.c.bf16 %v3869_v35, %v3868_v43  ;;  %v3857_v5 = vld [vmem:[#allocation8 + $0x568] sm:$0xff] }
 0x39e   : > { %5769 = vmatpush3.bf16.msra.mxu1 %v5768_v6  ;;  %5739 = vmatprep.subr.bf16.mxu0 %v5738_v7  ;;  %v3842_v6 = vld [vmem:[#allocation8 + $0x4f0] sm:$0xff]  ;;  %v3843_v7 = vld [vmem:[#allocation8 + $0x4f8] sm:$0xff] }
 0x39f   : > { %5771 = vmatprep.subr.bf16.mxu1 %v5770_v12  ;;  %v5788_v12 = vpack.c.bf16 %v3857_v5, %v3856_v63  ;;  %v5758_v13 = vpack.c.bf16 %v3843_v7, %v3842_v6 }
 0x3a1   : > { %5741 = vmatpush3.bf16.msra.mxu0 %v5740_v34  ;;  %v3859_v34 = vld [vmem:[#allocation8 + $0x578] sm:$0xff] }
 0x3a2   : > { %5773 = vmatpush3.bf16.msra.mxu1 %v5772_v52  ;;  %5743 = vmatprep.subr.bf16.mxu0 %v5742_v36  ;;  %v5760_v52 = vpack.c.bf16 %v3827_v25, %v3826_v21  ;;  %v5792_v36 = vpack.c.bf16 %v3859_v34, %v3858_v17 }
 0x3a3   : > { %5775 = vmatprep.subr.bf16.mxu1 %v5774_v40 }
 0x3a5   : > { %5745 = vmatpush3.bf16.msra.mxu0 %v5744_v44 }
 0x3a6   : > { %5777 = vmatpush3.bf16.msra.mxu1 %v5776_v58  ;;  %5747 = vmatprep.subr.bf16.mxu0 %v5746_v45  ;;  %v3364_v45 = vadd.s32 8, %v6784_v33 }
 0x3a7   : > { %5779 = vmatprep.subr.bf16.mxu1 %v5778_v14 }
 0x3a8   : > { %vm3369_vm7 = vcmp.eq.s32.totalorder %v3364_v45, %v3367_v18  ;;  %v3375_v6 = vadd.s32 1, %v3364_v45 }
 0x3a9   : > { %5749 = vmatpush3.bf16.msra.mxu0 %v5748_v50  ;;  %v4378_v46 = vsel %vm3369_vm7, 1.0, %v6284_v26 }
 0x3aa   : > { %5781 = vmatpush3.bf16.msra.mxu1 %v5780_v51  ;;  %5751 = vmatprep.subr.bf16.mxu0 %v5750_v10  ;;  %vm3377_vm8 = vcmp.eq.s32.totalorder %v3375_v6, %v6835_v22 }
 0x3ab   : > { %5783 = vmatprep.subr.bf16.mxu1 %v5782_v24  ;;  %v4380_v9 = vsel %vm3377_vm8, 1.0, %v6284_v26 }
 0x3ad   : > { %5753 = vmatpush3.bf16.msra.mxu0 %v5752_v4 }
 0x3ae   : > { %5785 = vmatpush3.bf16.msra.mxu1 %v5784_v59  ;;  %5755 = vmatprep.subr.bf16.mxu0 %v5754_v60 }
 0x3af   : > { %5787 = vmatprep.subr.bf16.mxu1 %v5786_v2 }
 0x3b1   : > { %5757 = vmatpush3.bf16.msra.mxu0 %v5756_v11 }
 0x3b2   : > { %5789 = vmatpush3.bf16.msra.mxu1 %v5788_v12  ;;  %5759 = vmatprep.subr.bf16.mxu0 %v5758_v13 }
 0x3b3   : > { %5791 = vmatprep.subr.bf16.mxu1 %v5790_v28  ;;  %v4385_v28 = vld [vmem:[#allocation11] ss:$0 sm:$0xff] }
 0x3b5   : > { %5761 = vmatpush3.bf16.msra.mxu0 %v5760_v52 }
 0x3b6   : > { %5793 = vmatpush3.bf16.msra.mxu1 %v5792_v36 }
 0x3b8   : > { %3941 = vmatmul.mubr.f32.vlgmr.msra.gmra.mrb[14].mxu0 %v6796_v57  ;;  %v4377_v57 = vsel %vm3368_vm5, 1.0, %v6284_v26 }
 0x3b9   : > { %4016 = vmatmul.mubr.f32.vlgmr.msra.gmra.mrb[14].mxu1 %v6800_v1  ;;  %3945 = vmatprep.mubr.f32.mxu0 %v6805_v16  ;;  %v3374_v1 = vadd.s32 1, %v6784_v33 }
 0x3ba   : > { %4020 = vmatprep.mubr.f32.mxu1 %v6810_v30 }
 0x3bb   : > { %vm3376_vm6 = vcmp.eq.s32.totalorder %v3374_v1, %v6835_v22 }
 0x3bc   : > { %3946 = vmatmul.mubr.f32.gmra.mrb[16].mxu0 %v6808_v39  ;;  %v4379_v16 = vsel %vm3376_vm6, 1.0, %v6284_v26 }
 0x3bd   : > { %4021 = vmatmul.mubr.f32.gmra.mrb[16].mxu1 %v6812_v37  ;;  %4639 = vmatprep.mubr.msk.f32.mxu0 %vm4026_vm4, %v4379_v16 }
 0x3be   : > { %4632 = vmatprep.mubr.msk.f32.mxu1 %vm4026_vm4, %v4377_v57 }
 0x44a   : > { %v4424_v39 = vpop.f32.mrb[6].mxu0 }
 0x44b   : > { %v4462_v32 = vpop.f32.mrb[6].mxu1  ;;  %v4425_v30 = vpop.f32.mrb[7].mxu0 }
 0x44c   : > { %v4426_v37 = vadd.f32 %v4425_v30, %v4424_v39  ;;  %v4463_v53 = vpop.f32.mrb[7].mxu1 }
 0x44d   : > { %v4464_v40 = vadd.f32 %v4463_v53, %v4462_v32 }
 0x44e   : > { %v4427_v42 = vpop.f32.mrb[8].mxu0 }
 0x44f   : > { %v3588_v31 = vadd.f32 %v4464_v40, %v4426_v37  ;;  %v4465_v38 = vpop.f32.mrb[8].mxu1  ;;  %v4428_v43 = vpop.f32.mrb[9].mxu0 }
 0x450   : > { %v4429_v35 = vadd.f32 %v4428_v43, %v4427_v42  ;;  %v4466_v44 = vpop.f32.mrb[9].mxu1 }
 0x451   : > { %v4467_v58 = vadd.f32 %v4466_v44, %v4465_v38 }
 0x453   : > { %v3593_v41 = vadd.f32 %v4467_v58, %v4429_v35 }
 0x455   : > { %v5794_v23 = vpack.c.bf16 %v3593_v41, %v3588_v31 }
 0x457   : > { %5795 = vmatprep.subr.bf16.mxu1 %v5794_v23 }
 0x458   : > { %5797 = vmatpush3.bf16.msra.mxu1 %v5794_v23 }
 0x45b   : > { %4633 = vmatmul.mubr.msk.f32.vlgmr.msra.gmra.mrb[18].mxu1 %vm4026_vm4, %v4378_v46 }
 0x46a   : > { %v4500_v14 = vpop.f32.mrb[10].mxu0 }
 0x46b   : > { %v4538_v47 = vpop.f32.mrb[10].mxu1  ;;  %v4501_v48 = vpop.f32.mrb[11].mxu0 }
 0x46c   : > { %v4502_v49 = vadd.f32 %v4501_v48, %v4500_v14  ;;  %v4539_v15 = vpop.f32.mrb[11].mxu1 }
 0x46d   : > { %v4540_v20 = vadd.f32 %v4539_v15, %v4538_v47 }
 0x46e   : > { %v4503_v50 = vpop.f32.mrb[12].mxu0 }
 0x46f   : > { %v4541_v51 = vpop.f32.mrb[12].mxu1  ;;  %v4504_v10 = vpop.f32.mrb[13].mxu0  ;;  %v3803_v3 = vadd.f32 %v4540_v20, %v4502_v49 }
 0x470   : > { %v4505_v33 = vadd.f32 %v4504_v10, %v4503_v50  ;;  %v4542_v19 = vpop.f32.mrb[13].mxu1 }
 0x471   : > { %v4543_v0 = vadd.f32 %v4542_v19, %v4541_v51 }
 0x473   : > { %v3808_v24 = vadd.f32 %v4543_v0, %v4505_v33 }
 0x48b   : > { %v4576_v27 = vpop.f32.mrb[14].mxu0 }
 0x48c   : > { %v4614_v29 = vpop.f32.mrb[14].mxu1  ;;  %v4577_v54 = vpop.f32.mrb[15].mxu0 }
 0x48d   : > { %v4578_v55 = vadd.f32 %v4577_v54, %v4576_v27  ;;  %v4615_v56 = vpop.f32.mrb[15].mxu1 }
 0x48e   : > { %v4616_v4 = vadd.f32 %v4615_v56, %v4614_v29 }
 0x48f   : > { %v4579_v59 = vpop.f32.mrb[16].mxu0 }
 0x490   : > { %v4018_v60 = vadd.f32 %v4616_v4, %v4578_v55  ;;  %v4617_v61 = vpop.f32.mrb[16].mxu1  ;;  %v4580_v62 = vpop.f32.mrb[17].mxu0 }
 0x491   : > { %v4581_v63 = vadd.f32 %v4580_v62, %v4579_v59  ;;  %v4618_v2 = vpop.f32.mrb[17].mxu1 }
 0x492   : > { %v4619_v5 = vadd.f32 %v4618_v2, %v4617_v61 }
 0x494   : > { %v4023_v7 = vadd.f32 %v4619_v5, %v4581_v63 }
 0x496   : > { %v5798_v8 = vpack.c.bf16 %v4023_v7, %v4018_v60 }
 0x498   : > { %5799 = vmatprep.subr.bf16.mxu0 %v5798_v8 }
 0x499   : > { %5801 = vmatpush3.bf16.msra.mxu0 %v5798_v8 }
 0x49c   : > { %4640 = vmatmul.mubr.msk.f32.vlgmr.msra.gmra.mrb[18].mxu0 %vm4026_vm4, %v4380_v9 }
 0x52e   : > { %v4634_v11 = vpop.f32.mrb[18].mxu1 }
 0x52f   : > { %v4105_v12 = vadd.f32 %v4634_v11, %v3808_v24  ;;  %v4099_v13 = vpop.f32.mrb[19].mxu1 }
 0x530   : > { %v4100_v21 = vadd.f32 %v4099_v13, %v3803_v3 }
 0x56f   : > { %v4641_v25 = vpop.f32.mrb[18].mxu0 }
 0x570   : > { %v4190_v17 = vadd.f32 %v4641_v25, %v4105_v12  ;;  %v4180_v34 = vpop.f32.mrb[19].mxu0 }
 0x571   : > { %v4189_v52 = vadd.f32 %v4180_v34, %v4100_v21 }
 0x572   : > { %v4199_v36 = vadd.f32 %v4385_v28, %v4190_v17 }
 0x573   : > { %v4198_v26 = vadd.f32 %v4385_v28, %v4189_v52 }
 0x574   : > { %v4201_v22 = vmax.f32 %v4199_v36, 0.0 }
 0x575   : > { %v4200_v18 = vmax.f32 %v4198_v26, 0.0 }
 0x576   : > { %4203 = vst [vmem:[%s338_s20 + $0x8] sm:$0xff] %v4201_v22 }
 0x577   : > { %4202 = vst [vmem:[%s338_s20] sm:$0xff] %v4200_v18 }
 0x578   : > { %6205 = shalt.err (!%p6202_p8)
}
 0x579   : > { %s6206_s11 = scalar_lea.hbm %s6858_s18, 256  ;;  %s6210_s28 = scalar_lea.hbm %s6908_s6, 512 }
 0x57a   : > { %p6207_p6 = scmp.ne.s32.totalorder %s6858_s18, %s6206_s11  ;;  %p6211_p3 = scmp.lt.u32.totalorder %s6858_s18, %s6908_s6 }
 0x57b   : > { %p6212_p0 = scmp.lt.u32.totalorder %s6210_s28, %s6206_s11  ;;  %p6214_p2 = scmp.lt.u32.totalorder %s6206_s11, %s6858_s18 }
 0x57c   : > { %p6208_p9 = pnand %p6207_p6, %p6927_p7 }
 0x57d   : > { %p6213_p5 = por %p6212_p0, %p6211_p3 }
 0x57e   : > { %p6209_p4 = pneg %p6208_p9 }
 0x57f   : > { %p6215_p10 = por %p6214_p2, %p6213_p5 }
 0x581   : > { %p6216_p1 = pnand %p6215_p10, %p6209_p4 }
 0x583   : > { %6219 = shalt.err (!%p6216_p1)
}
 0x584   : > { %s6286_s14 = smov 128   ;;  %s6287_s16 = smov 8  }
 0x585   : > { %5919 = dma.vmem_to_hbm [thread:$0]  (%p6927_p7), %s6853_s29, 256, %s6858_s18, %s4205_s25, %s6286_s14, %s6286_s14, %s6287_s16  }
 0x586 PF: > { %s4233_s26 = sand.u32 1, %s6258_s21   ;;  %p6928_p11 = scmp.ne.s32.totalorder %s6918_s17, 0 }
 0x587   : > { %p6929_p12 = scmp.ge.s32.totalorder %s6270_s24, 2  ;;  %s4234_s27 = scalar_lea.sflag [#allocation4], %s4233_s26 }
 0x589   : > { %p5942_p13 = pnand %p6929_p12, %p6928_p11 }
 0x58b   : > { %6253 = dma.done.wait (!%p5942_p13), %s4234_s27, 256  }
 0x58c   : > { %6255 = vsyncadd (!%p5942_p13), %s4234_s27, 4294967040  ;;  %p22_p8 = scmp.ge.s32.totalorder %s6483_s7, 4   ;;  %s6930_s21 = smov %s6262_s22 }
 0x58d   : > { %s6931_s22 = smov %s6266_s23  ;;  %s6932_s23 = smov %s6495_s19 }
 0x58e   : > { %s6933_s24 = smov %s6483_s7  ;;  %24 = sbr.rel (!%p22_p8) target bundleno = 8 (0x8), region = 115 }
 0x595   :  { %4239 = vsyncpa [#allocation3], 1 }
 0x596   :  { %4241 = vsyncpa [#allocation3 + $0x1], 1 }
 0x597   :  { %4242 = vsyncpa [#allocation6], 1 }
 0x598   :  { %4243 = vsyncpa [#allocation9], 1 }
 0x599   :  { %4244 = vsyncpa [#allocation12], 1 }
 0x59a   :  { %4245 = vsyncpa [#allocation4], 1 }
 0x59b   :  { %4247 = vsyncpa [#allocation4 + $0x1], 1 }

</bundles_post_ra>
